<compile_context>
chip_gen: v7x
topology: tpu7x:2x2x1
jax: 0.10.0
libtpu: 0.0.40
codegen_flags: <defaults>
</compile_context>

<pallas_src>
import jax
import jax.numpy as jnp
from jax.experimental import pallas as pl
from jax.experimental.pallas import tpu as pltpu


def _vq_kernel(x_ref, emb_ref, w2_ref,          # inputs
               q_ref, idx_ref, sse_ref, cnt_ref):  # outputs (per-tile)
    x = x_ref[...]            # (tm, D)  f32 rows
    emb = emb_ref[...]        # (K, D)   codebook (single copy, VMEM resident)
    w2 = w2_ref[...]          # (1, K)   |e_k|^2, precomputed in the wrapper

    k = emb.shape[0]

    # argmin_k |x - e_k|^2 == argmin_k (|e_k|^2 - 2 x.e_k); |x|^2 is a per-row
    # constant so it is dropped (saves an XLU reduce + broadcast per tile).
    xe = jnp.einsum('md,kd->mk', x, emb,
                    preferred_element_type=jnp.float32)          # (tm, K) MXU
    dist = w2 - 2.0 * xe

    # first-minimum argmin via min + iota (matches torch.argmin semantics).
    iota = jax.lax.broadcasted_iota(jnp.int32, dist.shape, 1)    # (tm, K)
    min_d = jnp.min(dist, axis=1, keepdims=True)                 # (tm, 1)
    idx = jnp.min(jnp.where(dist <= min_d, iota, k),
                  axis=1, keepdims=True)                         # (tm, 1) int32

    # one-hot lives only in VMEM/vregs; it is never written back to HBM.
    enc = (iota == idx).astype(jnp.float32)                      # (tm, K)
    quant = jnp.dot(enc, emb, preferred_element_type=jnp.float32)  # (tm, D)

    q_ref[...] = quant
    idx_ref[...] = idx

    # per-tile partial statistics (reduced in the wrapper -> grid is parallel).
    diff = quant - x
    sse_ref[...] = jnp.sum(diff * diff, keepdims=True)           # (1, 1)
    cnt_ref[...] = jnp.sum(enc, axis=0, keepdims=True)           # (1, K)


def _row_tile(m, cap=4096):
    """Largest divisor of m (multiple of 8) not exceeding cap; m itself if small."""
    if m <= cap:
        return m
    best = None
    for t in range(8, cap + 1, 8):
        if m % t == 0:
            best = t
    return best if best is not None else m


def vector_quantizer(x_nchw, embedding, commitment_cost, *, tm=None):
    """Forward pass of VectorQuantizer.

    Returns (loss, quantized_nchw, perplexity, encodings) matching the PyTorch
    module's forward-pass values.
    """
    n, c, h, w_sp = x_nchw.shape
    d = c
    k = embedding.shape[0]
    assert embedding.shape[1] == d

    x_nhwc = jnp.transpose(x_nchw, (0, 2, 3, 1))       # NCHW -> NHWC (glue)
    flat = x_nhwc.reshape(-1, d).astype(jnp.float32)   # (M, D)
    m = flat.shape[0]

    if tm is None:
        tm = _row_tile(m)
    assert m % tm == 0, "row tile must divide M"
    grid_m = m // tm

    emb = embedding.astype(jnp.float32)                # (K, D)
    w2 = jnp.sum(emb * emb, axis=1)[None, :]           # (1, K), hoisted out of kernel

    quant_flat, idx, sse_part, cnt_part = pl.pallas_call(
        _vq_kernel,
        out_shape=(
            jax.ShapeDtypeStruct((m, d), jnp.float32),       # quantized rows
            jax.ShapeDtypeStruct((m, 1), jnp.int32),         # argmin code indices
            jax.ShapeDtypeStruct((grid_m, 1), jnp.float32),  # per-tile SSE partials
            jax.ShapeDtypeStruct((grid_m, k), jnp.float32),  # per-tile code counts
        ),
        grid_spec=pltpu.PrefetchScalarGridSpec(
            num_scalar_prefetch=0,
            grid=(grid_m,),
            in_specs=[
                pl.BlockSpec((tm, d), lambda i: (i, 0)),     # input rows
                pl.BlockSpec((k, d), lambda i: (0, 0)),      # codebook (once)
                pl.BlockSpec((1, k), lambda i: (0, 0)),      # |e|^2
            ],
            out_specs=[
                pl.BlockSpec((tm, d), lambda i: (i, 0)),
                pl.BlockSpec((tm, 1), lambda i: (i, 0)),
                pl.BlockSpec((1, 1), lambda i: (i, 0)),
                pl.BlockSpec((1, k), lambda i: (i, 0)),
            ],
        ),
        compiler_params=pltpu.CompilerParams(
            dimension_semantics=("parallel",)),
    )(flat, emb, w2)

    # cheap wrapper-side reductions / reconstructions
    idx_flat = idx[:, 0]
    encodings = jax.nn.one_hot(idx_flat, k, dtype=jnp.float32)   # (M, K)

    mse = jnp.sum(sse_part) / jnp.float32(m * d)
    # q_latent_loss == e_latent_loss numerically (detach only affects grads)
    loss = (1.0 + commitment_cost) * mse

    avg = jnp.sum(cnt_part, axis=0) / jnp.float32(m)             # (K,)
    perplexity = jnp.exp(-jnp.sum(avg * jnp.log(avg + 1e-10)))

    quant_nhwc = quant_flat.reshape(n, h, w_sp, d)
    # straight-through estimator: numerically equal to quantized
    quant_st = x_nhwc + jax.lax.stop_gradient(quant_nhwc - x_nhwc)
    quant_nchw = jnp.transpose(quant_st, (0, 3, 1, 2))           # back to NCHW

    return loss, quant_nchw, perplexity, encodings


def _reference(x_nchw, embedding, commitment_cost):
    """Pure-JAX reference of the PyTorch forward (for a correctness check)."""
    x = jnp.transpose(x_nchw, (0, 2, 3, 1))
    d = embedding.shape[1]
    flat = x.reshape(-1, d)
    dist = (jnp.sum(flat ** 2, axis=1, keepdims=True)
            + jnp.sum(embedding ** 2, axis=1)
            - 2.0 * flat @ embedding.T)
    idx = jnp.argmin(dist, axis=1)
    enc = jax.nn.one_hot(idx, embedding.shape[0], dtype=jnp.float32)
    quant = (enc @ embedding).reshape(x.shape)
    mse = jnp.mean((quant - x) ** 2)
    loss = (1.0 + commitment_cost) * mse
    avg = jnp.mean(enc, axis=0)
    perp = jnp.exp(-jnp.sum(avg * jnp.log(avg + 1e-10)))
    return loss, jnp.transpose(quant, (0, 3, 1, 2)), perp, enc


if __name__ == "__main__":
    # module hyperparameters
    num_embeddings = 16
    embedding_dim = 4
    commitment_cost = 0.25

    key = jax.random.PRNGKey(0)
    k_x, k_w = jax.random.split(key)

    # input: NCHW, channels == embedding_dim
    x = jax.random.normal(k_x, (2, embedding_dim, 16, 16), dtype=jnp.float32)
    # nn.Embedding weight init: uniform(-1/K, 1/K), shape (K, D)
    embedding = jax.random.uniform(
        k_w, (num_embeddings, embedding_dim), dtype=jnp.float32,
        minval=-1.0 / num_embeddings, maxval=1.0 / num_embeddings)

    loss, quantized, perplexity, encodings = jax.block_until_ready(
        vector_quantizer(x, embedding, commitment_cost))

    # sanity check against the pure-JAX reference
    loss_r, quant_r, perp_r, enc_r = _reference(x, embedding, commitment_cost)
    assert quantized.shape == x.shape
    assert encodings.shape == (2 * 16 * 16, num_embeddings)
    assert jnp.allclose(loss, loss_r, atol=1e-5), (loss, loss_r)
    assert jnp.allclose(perplexity, perp_r, atol=1e-4), (perplexity, perp_r)
    assert jnp.allclose(quantized, quant_r, atol=1e-5)
    assert jnp.allclose(encodings, enc_r, atol=1e-6)

    print("KERNEL_OK")
</pallas_src>

<mosaic_0001>
module attributes {stable_mosaic.version = 11 : i64} {
  func.func @_vq_kernel(%arg0: i32, %arg1: memref<512x4xf32, #tpu.memory_space<vmem>>, %arg2: memref<16x4xf32, #tpu.memory_space<vmem>>, %arg3: memref<1x16xf32, #tpu.memory_space<vmem>>, %arg4: memref<512x4xf32, #tpu.memory_space<vmem>>, %arg5: memref<512x1xi32, #tpu.memory_space<vmem>>, %arg6: memref<1x1xf32, #tpu.memory_space<vmem>>, %arg7: memref<1x16xf32, #tpu.memory_space<vmem>>) attributes {dimension_semantics = [#tpu.dimension_semantics<parallel>], iteration_bounds = array<i64: 1>, scalar_prefetch = 0 : i64, scratch_operands = 0 : i64, tpu.core_type = #tpu.core_type<tc>, window_params = [{transform_indices = @transform_0, window_bounds = array<i64: 512, 4>}, {pipeline_mode = #tpu.pipeline_mode<synchronous>, transform_indices = @transform_1, window_bounds = array<i64: 16, 4>}, {pipeline_mode = #tpu.pipeline_mode<synchronous>, transform_indices = @transform_2, window_bounds = array<i64: 1, 16>}, {transform_indices = @transform_3, window_bounds = array<i64: 512, 4>}, {transform_indices = @transform_4, window_bounds = array<i64: 512, 1>}, {transform_indices = @transform_5, window_bounds = array<i64: 1, 1>}, {transform_indices = @transform_6, window_bounds = array<i64: 1, 16>}]} {
    %c0 = arith.constant 0 : index
    %c0_0 = arith.constant 0 : index
    %0 = vector.load %arg1[%c0, %c0_0] : memref<512x4xf32, #tpu.memory_space<vmem>>, vector<512x4xf32>
    %c0_1 = arith.constant 0 : index
    %c0_2 = arith.constant 0 : index
    %1 = vector.load %arg2[%c0_1, %c0_2] : memref<16x4xf32, #tpu.memory_space<vmem>>, vector<16x4xf32>
    %c0_3 = arith.constant 0 : index
    %c0_4 = arith.constant 0 : index
    %2 = vector.load %arg3[%c0_3, %c0_4] : memref<1x16xf32, #tpu.memory_space<vmem>>, vector<1x16xf32>
    "tpu.trace_start"() <{level = 10 : i32, message = "md,kd->mk"}> : () -> ()
    %cst = arith.constant dense<0.000000e+00> : vector<512x16xf32>
    %3 = tpu.matmul %0, %1, %cst {dimension_numbers = #tpu.dot_dimension_numbers<[1], [1], [0], [0], [0, 0, 1, 0], [], []>} : vector<512x4xf32>, vector<16x4xf32>, vector<512x16xf32> -> vector<512x16xf32>
    "tpu.trace_stop"() : () -> ()
    %cst_5 = arith.constant 2.000000e+00 : f32
    %4 = vector.broadcast %cst_5 : f32 to vector<512x16xf32>
    %5 = arith.mulf %4, %3 : vector<512x16xf32>
    %6 = vector.broadcast %2 : vector<1x16xf32> to vector<512x16xf32>
    %7 = arith.subf %6, %5 : vector<512x16xf32>
    %8 = tpu.iota {dimensions = array<i32: 1>} : vector<512x16xi32>
    %cst_6 = arith.constant dense<0x7F800000> : vector<512xf32>
    %9 = vector.multi_reduction <minimumf>, %7, %cst_6 [1] : vector<512x16xf32> to vector<512xf32>
    %10 = vector.shape_cast %9 : vector<512xf32> to vector<512x1xf32>
    %11 = vector.broadcast %10 : vector<512x1xf32> to vector<512x16xf32>
    %12 = arith.cmpf ole, %7, %11 : vector<512x16xf32>
    %c16_i32 = arith.constant 16 : i32
    %13 = vector.broadcast %c16_i32 : i32 to vector<512x16xi32>
    %14 = arith.select %12, %8, %13 : vector<512x16xi1>, vector<512x16xi32>
    %cst_7 = arith.constant dense<2147483647> : vector<512xi32>
    %15 = vector.multi_reduction <minsi>, %14, %cst_7 [1] : vector<512x16xi32> to vector<512xi32>
    %16 = vector.shape_cast %15 : vector<512xi32> to vector<512x1xi32>
    %17 = vector.broadcast %16 : vector<512x1xi32> to vector<512x16xi32>
    %18 = arith.cmpi eq, %8, %17 : vector<512x16xi32>
    %19 = arith.extui %18 : vector<512x16xi1> to vector<512x16xi32>
    %20 = arith.sitofp %19 : vector<512x16xi32> to vector<512x16xf32>
    %cst_8 = arith.constant dense<0.000000e+00> : vector<512x4xf32>
    %21 = tpu.matmul %20, %1, %cst_8 {dimension_numbers = #tpu.dot_dimension_numbers<[1], [0], [0], [1], [0, 0, 1, 1], [], []>} : vector<512x16xf32>, vector<16x4xf32>, vector<512x4xf32> -> vector<512x4xf32>
    %c0_9 = arith.constant 0 : index
    %c0_10 = arith.constant 0 : index
    %22 = vector.load %arg4[%c0_9, %c0_10] : memref<512x4xf32, #tpu.memory_space<vmem>>, vector<512x4xf32>
    tpu.vector_store %arg4[%c0_9, %c0_10], %21 {strides = array<i32>} : memref<512x4xf32, #tpu.memory_space<vmem>>, vector<512x4xf32>,
    %c0_11 = arith.constant 0 : index
    %c0_12 = arith.constant 0 : index
    %23 = vector.load %arg5[%c0_11, %c0_12] : memref<512x1xi32, #tpu.memory_space<vmem>>, vector<512x1xi32>
    tpu.vector_store %arg5[%c0_11, %c0_12], %16 {strides = array<i32>} : memref<512x1xi32, #tpu.memory_space<vmem>>, vector<512x1xi32>,
    %24 = arith.subf %21, %0 : vector<512x4xf32>
    %25 = arith.mulf %24, %24 : vector<512x4xf32>
    %26 = vector.shape_cast %25 : vector<512x4xf32> to vector<1x512x4xf32>
    %cst_13 = arith.constant dense<0.000000e+00> : vector<1xf32>
    %27 = vector.multi_reduction <add>, %26, %cst_13 [1, 2] : vector<1x512x4xf32> to vector<1xf32>
    %28 = vector.shape_cast %27 : vector<1xf32> to vector<1x1x1xf32>
    %29 = vector.extract %28[0, 0, 0] : f32 from vector<1x1x1xf32>
    %30 = vector.broadcast %29 : f32 to vector<1x1xf32>
    %c0_14 = arith.constant 0 : index
    %c0_15 = arith.constant 0 : index
    %31 = vector.load %arg6[%c0_14, %c0_15] : memref<1x1xf32, #tpu.memory_space<vmem>>, vector<1x1xf32>
    tpu.vector_store %arg6[%c0_14, %c0_15], %30 {strides = array<i32>} : memref<1x1xf32, #tpu.memory_space<vmem>>, vector<1x1xf32>,
    %cst_16 = arith.constant dense<0.000000e+00> : vector<16xf32>
    %32 = vector.multi_reduction <add>, %20, %cst_16 [0] : vector<512x16xf32> to vector<16xf32>
    %33 = vector.shape_cast %32 : vector<16xf32> to vector<1x16xf32>
    %c0_17 = arith.constant 0 : index
    %c0_18 = arith.constant 0 : index
    %34 = vector.load %arg7[%c0_17, %c0_18] : memref<1x16xf32, #tpu.memory_space<vmem>>, vector<1x16xf32>
    tpu.vector_store %arg7[%c0_17, %c0_18], %33 {strides = array<i32>} : memref<1x16xf32, #tpu.memory_space<vmem>>, vector<1x16xf32>,
    return
  }
  func.func @transform_0(%arg0: i32) -> (i32, i32) {
    %c0_i32 = arith.constant 0 : i32
    %c0_i32_0 = arith.constant 0 : i32
    return %arg0, %c0_i32 : i32, i32
  }
  func.func @transform_1(%arg0: i32) -> (i32, i32) {
    %c0_i32 = arith.constant 0 : i32
    %c0_i32_0 = arith.constant 0 : i32
    %c0_i32_1 = arith.constant 0 : i32
    return %c0_i32, %c0_i32_0 : i32, i32
  }
  func.func @transform_2(%arg0: i32) -> (i32, i32) {
    %c0_i32 = arith.constant 0 : i32
    %c0_i32_0 = arith.constant 0 : i32
    %c0_i32_1 = arith.constant 0 : i32
    return %c0_i32, %c0_i32_0 : i32, i32
  }
  func.func @transform_3(%arg0: i32) -> (i32, i32) {
    %c0_i32 = arith.constant 0 : i32
    %c0_i32_0 = arith.constant 0 : i32
    return %arg0, %c0_i32 : i32, i32
  }
  func.func @transform_4(%arg0: i32) -> (i32, i32) {
    %c0_i32 = arith.constant 0 : i32
    %c0_i32_0 = arith.constant 0 : i32
    return %arg0, %c0_i32 : i32, i32
  }
  func.func @transform_5(%arg0: i32) -> (i32, i32) {
    %c0_i32 = arith.constant 0 : i32
    %c0_i32_0 = arith.constant 0 : i32
    return %arg0, %c0_i32 : i32, i32
  }
  func.func @transform_6(%arg0: i32) -> (i32, i32) {
    %c0_i32 = arith.constant 0 : i32
    %c0_i32_0 = arith.constant 0 : i32
    return %arg0, %c0_i32 : i32, i32
  }
}

</mosaic_0001>

<bundles_post_ra>
// kernel: tpu_custom_call.1
= control target key start
LH: loop header
LB: loop body
LE: loop exit
PB: predicated region body
PF: predicated region fallthrough
CT: control target
= control target key end

     0   :  { %12 = vsyncpa [#allocation3], 0  ;;  %vm87_vm0 = vcmask 31744   ;;  %s6805_s0 = inlined_call_operand.vmem [shape: f32[512,4], index: 0, kind: input, shape index: {}]   ;;  %s6806_s1 = inlined_call_operand.vmem [shape: f32[16,4], index: 1, kind: input, shape index: {}]   ;;  %s6807_s2 = inlined_call_operand.vmem [shape: f32[1,16], index: 2, kind: input, shape index: {}]   ;;  %s6808_s3 = inlined_call_operand.vmem [shape: f32[512,4], index: 3, kind: output, shape index: {0}]   ;;  %s6809_s4 = inlined_call_operand.vmem [shape: s32[512,1], index: 4, kind: output, shape index: {1}]   ;;  %s6810_s5 = inlined_call_operand.hbm [shape: f32[1,1], index: 5, kind: output, shape index: {2}]   ;;  %s6811_s6 = inlined_call_operand.hbm [shape: f32[1,16], index: 6, kind: output, shape index: {3}]  }
   0x1   :  { %v84_v0 = vld [vmem:[%s6806_s1] sm:$0xff]  ;;  %v85_v1 = vld [vmem:[%s6806_s1 + $0x8] sm:$0xff]  ;;  %vm3952_vm1 = vmpackc.low %vm87_vm0, %vm87_vm0 }
   0x2   :  { %v20_v2 = vld [vmem:[%s6805_s0] sm:$0xff]  ;;  %v3951_v3 = vpack.c.bf16 %v85_v1, %v84_v0  ;;  %v21_v4 = vld [vmem:[%s6805_s0 + $0x8] sm:$0xff]  ;;  %v22_v5 = vld [vmem:[%s6805_s0 + $0x10] sm:$0xff] }
   0x3   :  { %3755 = vmatprep.mubr.msk.f32.mxu0 %vm87_vm0, %v20_v2  ;;  %v23_v6 = vld [vmem:[%s6805_s0 + $0x18] sm:$0xff]  ;;  %v24_v7 = vld [vmem:[%s6805_s0 + $0x20] sm:$0xff]  ;;  %v25_v8 = vld [vmem:[%s6805_s0 + $0x28] sm:$0xff] }
   0x4   :  { %3953 = vmatprep.subr.msk.bf16.mxu0 %vm3952_vm1, %v3951_v3  ;;  %3958 = vmatprep.subr.bf16.mxu1 %v3951_v3  ;;  %v26_v9 = vld [vmem:[%s6805_s0 + $0x30] sm:$0xff]  ;;  %v27_v10 = vld [vmem:[%s6805_s0 + $0x38] sm:$0xff]  ;;  %v28_v11 = vld [vmem:[%s6805_s0 + $0x40] sm:$0xff] }
   0x5   :  { %3956 = vmatpush3.bf16.xpose.msk.msra.mxu0 %vm3952_vm1, %v3951_v3  ;;  %3960 = vmatpush3.bf16.msra.mxu1 %v3951_v3 }
   0xc   :  { %3756 = vmatmul.mubr.msk.f32.vlgmr.msra.gmra.mrb[0].mxu0 %vm87_vm0, %v21_v4 }
   0xd   :  { %3758 = vmatprep.mubr.msk.f32.mxu0 %vm87_vm0, %v22_v5 }
  0x10   :  { %3759 = vmatmul.mubr.msk.f32.gmra.mrb[2].mxu0 %vm87_vm0, %v23_v6 }
  0x11   :  { %3761 = vmatprep.mubr.msk.f32.mxu0 %vm87_vm0, %v24_v7 }
  0x14   :  { %3762 = vmatmul.mubr.msk.f32.gmra.mrb[4].mxu0 %vm87_vm0, %v25_v8 }
  0x15   :  { %3764 = vmatprep.mubr.msk.f32.mxu0 %vm87_vm0, %v26_v9 }
  0x16   :  { %13 = vsyncpa [#allocation5], 0  ;;  %v29_v12 = vld [vmem:[%s6805_s0 + $0x48] sm:$0xff]  ;;  %v30_v13 = vld [vmem:[%s6805_s0 + $0x50] sm:$0xff]  ;;  %vm807_vm2 = vcmask 130048   ;;  %s4079_s14 = smov [#allocation4]  }
  0x17   :  { %v31_v14 = vld [vmem:[%s6805_s0 + $0x58] sm:$0xff]  ;;  %v32_v15 = vld [vmem:[%s6805_s0 + $0x60] sm:$0xff]  ;;  %v33_v16 = vld [vmem:[%s6805_s0 + $0x68] sm:$0xff]  ;;  %s3408_s15 = sshll.u32 %s4079_s14, 4  ;;  %s3409_s15 = int_to_ptr.vmem [resolvable:$true] %s3408_s15 }
  0x18   :  { %3765 = vmatmul.mubr.msk.f32.gmra.mrb[6].mxu0 %vm87_vm0, %v27_v10  ;;  %v34_v17 = vld [vmem:[%s6805_s0 + $0x70] sm:$0xff]  ;;  %v35_v18 = vld [vmem:[%s6805_s0 + $0x78] sm:$0xff]  ;;  %v36_v19 = vld [vmem:[%s6805_s0 + $0x80] sm:$0xff]  ;;  %s4030_s16 = scalar_lea.vmem %s3409_s15, 16  ;;  %p4035_p1 = scmp.lt.s32.totalorder %s3409_s15, %s3409_s15 }
  0x19   :  { %3767 = vmatprep.mubr.msk.f32.mxu0 %vm87_vm0, %v28_v11  ;;  %v37_v20 = vld [vmem:[%s6805_s0 + $0x88] sm:$0xff]  ;;  %v38_v21 = vld [vmem:[%s6805_s0 + $0x90] sm:$0xff]  ;;  %v39_v22 = vld [vmem:[%s6805_s0 + $0x98] sm:$0xff]  ;;  %p4031_p0 = scmp.ne.s32.totalorder %s3409_s15, %s4030_s16 }
  0x1a   :  { %v40_v23 = vld [vmem:[%s6805_s0 + $0xa0] sm:$0xff]  ;;  %v41_v24 = vld [vmem:[%s6805_s0 + $0xa8] sm:$0xff]  ;;  %v42_v25 = vld [vmem:[%s6805_s0 + $0xb0] sm:$0xff] }
  0x1b   :  { %v43_v26 = vld [vmem:[%s6805_s0 + $0xb8] sm:$0xff]  ;;  %v44_v27 = vld [vmem:[%s6805_s0 + $0xc0] sm:$0xff]  ;;  %v45_v28 = vld [vmem:[%s6805_s0 + $0xc8] sm:$0xff] }
  0x1c   :  { %3768 = vmatmul.mubr.msk.f32.gmra.mrb[8].mxu0 %vm87_vm0, %v29_v12  ;;  %v46_v29 = vld [vmem:[%s6805_s0 + $0xd0] sm:$0xff]  ;;  %v47_v30 = vld [vmem:[%s6805_s0 + $0xd8] sm:$0xff]  ;;  %v48_v31 = vld [vmem:[%s6805_s0 + $0xe0] sm:$0xff] }
  0x1d   :  { %3770 = vmatprep.mubr.msk.f32.mxu0 %vm87_vm0, %v30_v13  ;;  %v49_v32 = vld [vmem:[%s6805_s0 + $0xe8] sm:$0xff]  ;;  %v50_v33 = vld [vmem:[%s6805_s0 + $0xf0] sm:$0xff]  ;;  %v51_v34 = vld [vmem:[%s6805_s0 + $0xf8] sm:$0xff] }
  0x1e   :  { %v52_v35 = vld [vmem:[%s6805_s0 + $0x100] sm:$0xff]  ;;  %v53_v36 = vld [vmem:[%s6805_s0 + $0x108] sm:$0xff]  ;;  %v54_v37 = vld [vmem:[%s6805_s0 + $0x110] sm:$0xff] }
  0x1f   :  { %v55_v38 = vld [vmem:[%s6805_s0 + $0x118] sm:$0xff]  ;;  %v56_v39 = vld [vmem:[%s6805_s0 + $0x120] sm:$0xff]  ;;  %v57_v40 = vld [vmem:[%s6805_s0 + $0x128] sm:$0xff] }
  0x20   :  { %3771 = vmatmul.mubr.msk.f32.gmra.mrb[10].mxu0 %vm87_vm0, %v31_v14  ;;  %v58_v41 = vld [vmem:[%s6805_s0 + $0x130] sm:$0xff]  ;;  %v59_v42 = vld [vmem:[%s6805_s0 + $0x138] sm:$0xff]  ;;  %v60_v43 = vld [vmem:[%s6805_s0 + $0x140] sm:$0xff] }
  0x21   :  { %3773 = vmatprep.mubr.msk.f32.mxu0 %vm87_vm0, %v32_v15  ;;  %v61_v44 = vld [vmem:[%s6805_s0 + $0x148] sm:$0xff]  ;;  %v62_v45 = vld [vmem:[%s6805_s0 + $0x150] sm:$0xff]  ;;  %v63_v46 = vld [vmem:[%s6805_s0 + $0x158] sm:$0xff] }
  0x22   :  { %v64_v47 = vld [vmem:[%s6805_s0 + $0x160] sm:$0xff]  ;;  %v65_v48 = vld [vmem:[%s6805_s0 + $0x168] sm:$0xff]  ;;  %v66_v49 = vld [vmem:[%s6805_s0 + $0x170] sm:$0xff] }
  0x23   :  { %v67_v50 = vld [vmem:[%s6805_s0 + $0x178] sm:$0xff]  ;;  %v68_v51 = vld [vmem:[%s6805_s0 + $0x180] sm:$0xff]  ;;  %v69_v52 = vld [vmem:[%s6805_s0 + $0x188] sm:$0xff] }
  0x24   :  { %3774 = vmatmul.mubr.msk.f32.gmra.mrb[12].mxu0 %vm87_vm0, %v33_v16  ;;  %v70_v53 = vld [vmem:[%s6805_s0 + $0x190] sm:$0xff]  ;;  %v71_v54 = vld [vmem:[%s6805_s0 + $0x198] sm:$0xff]  ;;  %v72_v55 = vld [vmem:[%s6805_s0 + $0x1a0] sm:$0xff] }
  0x25   :  { %3776 = vmatprep.mubr.msk.f32.mxu0 %vm87_vm0, %v34_v17  ;;  %v73_v56 = vld [vmem:[%s6805_s0 + $0x1a8] sm:$0xff]  ;;  %v74_v57 = vld [vmem:[%s6805_s0 + $0x1b0] sm:$0xff]  ;;  %v75_v58 = vld [vmem:[%s6805_s0 + $0x1b8] sm:$0xff] }
  0x26   :  { %v76_v59 = vld [vmem:[%s6805_s0 + $0x1c0] sm:$0xff]  ;;  %v77_v60 = vld [vmem:[%s6805_s0 + $0x1c8] sm:$0xff]  ;;  %v78_v61 = vld [vmem:[%s6805_s0 + $0x1d0] sm:$0xff] }
  0x27   :  { %v79_v62 = vld [vmem:[%s6805_s0 + $0x1d8] sm:$0xff]  ;;  %v80_v63 = vld [vmem:[%s6805_s0 + $0x1e0] sm:$0xff]  ;;  %v81_v0 = vld [vmem:[%s6805_s0 + $0x1e8] sm:$0xff] }
  0x28   :  { %3777 = vmatmul.mubr.msk.f32.gmra.mrb[14].mxu0 %vm87_vm0, %v35_v18  ;;  %v82_v1 = vld [vmem:[%s6805_s0 + $0x1f0] sm:$0xff]  ;;  %v83_v2 = vld [vmem:[%s6805_s0 + $0x1f8] sm:$0xff]  ;;  %v4383_v4 = vld [vmem:[%s6807_s2] ss:$0 sm:$0xff] }
  0x29   :  { %3779 = vmatprep.mubr.msk.f32.mxu0 %vm87_vm0, %v36_v19 }
  0x2c   :  { %3780 = vmatmul.mubr.msk.f32.gmra.mrb[16].mxu0 %vm87_vm0, %v37_v20 }
  0x2d   :  { %3782 = vmatprep.mubr.msk.f32.mxu0 %vm87_vm0, %v38_v21 }
  0x30   :  { %3783 = vmatmul.mubr.msk.f32.gmra.mrb[18].mxu0 %vm87_vm0, %v39_v22 }
  0x31   :  { %3785 = vmatprep.mubr.msk.f32.mxu0 %vm87_vm0, %v40_v23 }
  0x34   :  { %3786 = vmatmul.mubr.msk.f32.gmra.mrb[20].mxu0 %vm87_vm0, %v41_v24 }
  0x35   :  { %3788 = vmatprep.mubr.msk.f32.mxu0 %vm87_vm0, %v42_v25 }
  0x38   :  { %3789 = vmatmul.mubr.msk.f32.gmra.mrb[22].mxu0 %vm87_vm0, %v43_v26 }
  0x39   :  { %3791 = vmatprep.mubr.msk.f32.mxu0 %vm87_vm0, %v44_v27 }
  0x3c   :  { %3792 = vmatmul.mubr.msk.f32.gmra.mrb[24].mxu0 %vm87_vm0, %v45_v28 }
  0x3d   :  { %3794 = vmatprep.mubr.msk.f32.mxu0 %vm87_vm0, %v46_v29 }
  0x40   :  { %3795 = vmatmul.mubr.msk.f32.gmra.mrb[26].mxu0 %vm87_vm0, %v47_v30 }
  0x41   :  { %3797 = vmatprep.mubr.msk.f32.mxu0 %vm87_vm0, %v48_v31 }
  0x44   :  { %3798 = vmatmul.mubr.msk.f32.gmra.mrb[28].mxu0 %vm87_vm0, %v49_v32 }
  0x45   :  { %3800 = vmatprep.mubr.msk.f32.mxu0 %vm87_vm0, %v50_v33 }
  0x48   :  { %3801 = vmatmul.mubr.msk.f32.gmra.mrb[30].mxu0 %vm87_vm0, %v51_v34 }
  0x49   :  { %3803 = vmatprep.mubr.msk.f32.mxu0 %vm87_vm0, %v52_v35 }
  0x4c   :  { %3804 = vmatmul.mubr.msk.f32.gmra.mrb[32].mxu0 %vm87_vm0, %v53_v36 }
  0x4d   :  { %3806 = vmatprep.mubr.msk.f32.mxu0 %vm87_vm0, %v54_v37 }
  0x50   :  { %3807 = vmatmul.mubr.msk.f32.gmra.mrb[34].mxu0 %vm87_vm0, %v55_v38 }
  0x51   :  { %3809 = vmatprep.mubr.msk.f32.mxu0 %vm87_vm0, %v56_v39 }
  0x54   :  { %3810 = vmatmul.mubr.msk.f32.gmra.mrb[36].mxu0 %vm87_vm0, %v57_v40 }
  0x55   :  { %3812 = vmatprep.mubr.msk.f32.mxu0 %vm87_vm0, %v58_v41 }
  0x58   :  { %3813 = vmatmul.mubr.msk.f32.gmra.mrb[38].mxu0 %vm87_vm0, %v59_v42 }
  0x59   :  { %3815 = vmatprep.mubr.msk.f32.mxu0 %vm87_vm0, %v60_v43 }
  0x5c   :  { %3816 = vmatmul.mubr.msk.f32.gmra.mrb[40].mxu0 %vm87_vm0, %v61_v44 }
  0x5d   :  { %3818 = vmatprep.mubr.msk.f32.mxu0 %vm87_vm0, %v62_v45 }
  0x60   :  { %3819 = vmatmul.mubr.msk.f32.gmra.mrb[42].mxu0 %vm87_vm0, %v63_v46 }
  0x61   :  { %3821 = vmatprep.mubr.msk.f32.mxu0 %vm87_vm0, %v64_v47 }
  0x64   :  { %3822 = vmatmul.mubr.msk.f32.gmra.mrb[44].mxu0 %vm87_vm0, %v65_v48 }
  0x65   :  { %3824 = vmatprep.mubr.msk.f32.mxu0 %vm87_vm0, %v66_v49 }
  0x68   :  { %3825 = vmatmul.mubr.msk.f32.gmra.mrb[46].mxu0 %vm87_vm0, %v67_v50 }
  0x69   :  { %3827 = vmatprep.mubr.msk.f32.mxu0 %vm87_vm0, %v68_v51 }
  0x6c   :  { %3828 = vmatmul.mubr.msk.f32.gmra.mrb[48].mxu0 %vm87_vm0, %v69_v52 }
  0x6d   :  { %3830 = vmatprep.mubr.msk.f32.mxu0 %vm87_vm0, %v70_v53 }
  0x70   :  { %3831 = vmatmul.mubr.msk.f32.gmra.mrb[50].mxu0 %vm87_vm0, %v71_v54 }
  0x71   :  { %3833 = vmatprep.mubr.msk.f32.mxu0 %vm87_vm0, %v72_v55 }
  0x74   :  { %3834 = vmatmul.mubr.msk.f32.gmra.mrb[52].mxu0 %vm87_vm0, %v73_v56 }
  0x75   :  { %3836 = vmatprep.mubr.msk.f32.mxu0 %vm87_vm0, %v74_v57 }
  0x78   :  { %3837 = vmatmul.mubr.msk.f32.gmra.mrb[54].mxu0 %vm87_vm0, %v75_v58 }
  0x79   :  { %3839 = vmatprep.mubr.msk.f32.mxu0 %vm87_vm0, %v76_v59 }
  0x7c   :  { %3840 = vmatmul.mubr.msk.f32.gmra.mrb[56].mxu0 %vm87_vm0, %v77_v60 }
  0x7d   :  { %3842 = vmatprep.mubr.msk.f32.mxu0 %vm87_vm0, %v78_v61 }
  0x80   :  { %3843 = vmatmul.mubr.msk.f32.gmra.mrb[58].mxu0 %vm87_vm0, %v79_v62 }
  0x81   :  { %3845 = vmatprep.mubr.msk.f32.mxu0 %vm87_vm0, %v80_v63 }
  0x84   :  { %3846 = vmatmul.mubr.msk.f32.gmra.mrb[60].mxu0 %vm87_vm0, %v81_v0 }
  0x85   :  { %3848 = vmatprep.mubr.msk.f32.mxu0 %vm87_vm0, %v82_v1 }
  0x88   :  { %3849 = vmatmul.mubr.msk.f32.gmra.mrb[62].mxu0 %vm87_vm0, %v83_v2 }
  0xdf   :  { %v3757_v3 = vpop.f32.mrb[0].mxu0 }
  0xe0   :  { %v672_v5 = vmul.f32 2.0, %v3757_v3  ;;  %v352_v6 = vpop.f32.mrb[1].mxu0 }
  0xe1   :  { %v671_v7 = vmul.f32 2.0, %v352_v6 }
  0xe2   :  { %v4386_v8 = vsub.f32 %v4383_v4, %v672_v5 }
  0xe3   :  { %v3760_v9 = vpop.f32.mrb[2].mxu0  ;;  %v4391_v13 = vsub.f32 %v4383_v4, %v671_v7 }
  0xe4   :  { %v674_v10 = vmul.f32 2.0, %v3760_v9  ;;  %v362_v11 = vpop.f32.mrb[3].mxu0  ;;  %v811_v12 = vsel %vm807_vm2, %v4386_v8, inf }
  0xe5   :  { %v673_v14 = vmul.f32 2.0, %v362_v11  ;;  %812 = vmin.xlane.f32.xlu0 %v811_v12  ;;  %v808_v19 = vsel %vm807_vm2, %v4391_v13, inf }
  0xe6   :  { %v4394_v15 = vsub.f32 %v4383_v4, %v674_v10 }
  0xe7   :  { %v3763_v16 = vpop.f32.mrb[4].mxu0  ;;  %v4401_v21 = vsub.f32 %v4383_v4, %v673_v14 }
  0xe8   :  { %v676_v17 = vmul.f32 2.0, %v3763_v16  ;;  %v372_v18 = vpop.f32.mrb[5].mxu0  ;;  %v817_v20 = vsel %vm807_vm2, %v4394_v15, inf }
  0xe9   :  { %v675_v22 = vmul.f32 2.0, %v372_v18  ;;  %809 = vmin.xlane.f32.xlu0 %v808_v19  ;;  %818 = vmin.xlane.f32.xlu1 %v817_v20  ;;  %v814_v28 = vsel %vm807_vm2, %v4401_v21, inf }
  0xea   :  { %v4404_v23 = vsub.f32 %v4383_v4, %v676_v17 }
  0xeb   :  { %v3766_v24 = vpop.f32.mrb[6].mxu0  ;;  %v4407_v25 = vsub.f32 %v4383_v4, %v675_v22 }
  0xec   :  { %v678_v26 = vmul.f32 2.0, %v3766_v24  ;;  %v382_v27 = vpop.f32.mrb[7].mxu0  ;;  %v823_v31 = vsel %vm807_vm2, %v4404_v23, inf }
  0xed   :  { %v677_v29 = vmul.f32 2.0, %v382_v27  ;;  %815 = vmin.xlane.f32.xlu1 %v814_v28  ;;  %v820_v30 = vsel %vm807_vm2, %v4407_v25, inf }
  0xee   :  { %821 = vmin.xlane.f32.xlu0 %v820_v30  ;;  %v4416_v32 = vsub.f32 %v4383_v4, %v678_v26 }
  0xef   :  { %v3769_v33 = vpop.f32.mrb[8].mxu0  ;;  %v4419_v34 = vsub.f32 %v4383_v4, %v677_v29 }
  0xf0   :  { %v680_v35 = vmul.f32 2.0, %v3769_v33  ;;  %v392_v36 = vpop.f32.mrb[9].mxu0  ;;  %v829_v39 = vsel %vm807_vm2, %v4416_v32, inf }
  0xf1   :  { %v679_v37 = vmul.f32 2.0, %v392_v36  ;;  %824 = vmin.xlane.f32.xlu1 %v823_v31  ;;  %v826_v38 = vsel %vm807_vm2, %v4419_v34, inf }
  0xf2   :  { %827 = vmin.xlane.f32.xlu0 %v826_v38  ;;  %v4426_v40 = vsub.f32 %v4383_v4, %v680_v35 }
  0xf3   :  { %v3772_v41 = vpop.f32.mrb[10].mxu0  ;;  %v4429_v42 = vsub.f32 %v4383_v4, %v679_v37 }
  0xf4   :  { %v682_v43 = vmul.f32 2.0, %v3772_v41  ;;  %v402_v44 = vpop.f32.mrb[11].mxu0  ;;  %v835_v47 = vsel %vm807_vm2, %v4426_v40, inf }
  0xf5   :  { %v681_v45 = vmul.f32 2.0, %v402_v44  ;;  %830 = vmin.xlane.f32.xlu1 %v829_v39  ;;  %v832_v46 = vsel %vm807_vm2, %v4429_v42, inf }
  0xf6   :  { %833 = vmin.xlane.f32.xlu0 %v832_v46  ;;  %v4436_v48 = vsub.f32 %v4383_v4, %v682_v43 }
  0xf7   :  { %v3775_v49 = vpop.f32.mrb[12].mxu0  ;;  %v4439_v50 = vsub.f32 %v4383_v4, %v681_v45 }
  0xf8   :  { %v684_v51 = vmul.f32 2.0, %v3775_v49  ;;  %v412_v52 = vpop.f32.mrb[13].mxu0  ;;  %v841_v55 = vsel %vm807_vm2, %v4436_v48, inf }
  0xf9   :  { %v683_v53 = vmul.f32 2.0, %v412_v52  ;;  %836 = vmin.xlane.f32.xlu1 %v835_v47  ;;  %v838_v54 = vsel %vm807_vm2, %v4439_v50, inf }
  0xfa   :  { %839 = vmin.xlane.f32.xlu0 %v838_v54  ;;  %v4446_v56 = vsub.f32 %v4383_v4, %v684_v51 }
  0xfb   :  { %v3778_v57 = vpop.f32.mrb[14].mxu0  ;;  %v4449_v58 = vsub.f32 %v4383_v4, %v683_v53 }
  0xfc   :  { %v686_v59 = vmul.f32 2.0, %v3778_v57  ;;  %v422_v60 = vpop.f32.mrb[15].mxu0  ;;  %v847_v63 = vsel %vm807_vm2, %v4446_v56, inf }
  0xfd   :  { %v685_v61 = vmul.f32 2.0, %v422_v60  ;;  %842 = vmin.xlane.f32.xlu1 %v841_v55  ;;  %v844_v62 = vsel %vm807_vm2, %v4449_v58, inf }
  0xfe   :  { %845 = vmin.xlane.f32.xlu0 %v844_v62  ;;  %v4456_v0 = vsub.f32 %v4383_v4, %v686_v59 }
  0xff   :  { %v3781_v1 = vpop.f32.mrb[16].mxu0  ;;  %v4459_v2 = vsub.f32 %v4383_v4, %v685_v61 }
 0x100   :  { %v688_v3 = vmul.f32 2.0, %v3781_v1  ;;  %v432_v5 = vpop.f32.mrb[17].mxu0  ;;  %v853_v9 = vsel %vm807_vm2, %v4456_v0, inf }
 0x101   :  { %v687_v6 = vmul.f32 2.0, %v432_v5  ;;  %848 = vmin.xlane.f32.xlu1 %v847_v63  ;;  %v850_v7 = vsel %vm807_vm2, %v4459_v2, inf }
 0x102   :  { %851 = vmin.xlane.f32.xlu0 %v850_v7  ;;  %v4466_v10 = vsub.f32 %v4383_v4, %v688_v3 }
 0x103   :  { %v3784_v11 = vpop.f32.mrb[18].mxu0  ;;  %v4469_v12 = vsub.f32 %v4383_v4, %v687_v6 }
 0x104   :  { %v690_v14 = vmul.f32 2.0, %v3784_v11  ;;  %v442_v16 = vpop.f32.mrb[19].mxu0  ;;  %v859_v19 = vsel %vm807_vm2, %v4466_v10, inf }
 0x105   :  { %v689_v17 = vmul.f32 2.0, %v442_v16  ;;  %854 = vmin.xlane.f32.xlu1 %v853_v9  ;;  %v856_v18 = vsel %vm807_vm2, %v4469_v12, inf }
 0x106   :  { %857 = vmin.xlane.f32.xlu0 %v856_v18  ;;  %v4476_v20 = vsub.f32 %v4383_v4, %v690_v14 }
 0x107   :  { %v3787_v22 = vpop.f32.mrb[20].mxu0  ;;  %v4479_v24 = vsub.f32 %v4383_v4, %v689_v17 }
 0x108   :  { %v692_v26 = vmul.f32 2.0, %v3787_v22  ;;  %v452_v27 = vpop.f32.mrb[21].mxu0  ;;  %v865_v30 = vsel %vm807_vm2, %v4476_v20, inf }
 0x109   :  { %v691_v28 = vmul.f32 2.0, %v452_v27  ;;  %860 = vmin.xlane.f32.xlu1 %v859_v19  ;;  %v862_v29 = vsel %vm807_vm2, %v4479_v24, inf }
 0x10a   :  { %863 = vmin.xlane.f32.xlu0 %v862_v29  ;;  %v4486_v31 = vsub.f32 %v4383_v4, %v692_v26 }
 0x10b   :  { %v3790_v33 = vpop.f32.mrb[22].mxu0  ;;  %v4489_v35 = vsub.f32 %v4383_v4, %v691_v28 }
 0x10c   :  { %v694_v36 = vmul.f32 2.0, %v3790_v33  ;;  %v462_v37 = vpop.f32.mrb[23].mxu0  ;;  %v871_v41 = vsel %vm807_vm2, %v4486_v31, inf }
 0x10d   :  { %v693_v38 = vmul.f32 2.0, %v462_v37  ;;  %866 = vmin.xlane.f32.xlu1 %v865_v30  ;;  %v868_v39 = vsel %vm807_vm2, %v4489_v35, inf }
 0x10e   :  { %869 = vmin.xlane.f32.xlu0 %v868_v39  ;;  %v4496_v43 = vsub.f32 %v4383_v4, %v694_v36 }
 0x10f   :  { %v3793_v44 = vpop.f32.mrb[24].mxu0  ;;  %v4499_v45 = vsub.f32 %v4383_v4, %v693_v38 }
 0x110   :  { %v696_v46 = vmul.f32 2.0, %v3793_v44  ;;  %v472_v47 = vpop.f32.mrb[25].mxu0  ;;  %v877_v52 = vsel %vm807_vm2, %v4496_v43, inf }
 0x111   :  { %v695_v49 = vmul.f32 2.0, %v472_v47  ;;  %872 = vmin.xlane.f32.xlu1 %v871_v41  ;;  %v874_v51 = vsel %vm807_vm2, %v4499_v45, inf }
 0x112   :  { %875 = vmin.xlane.f32.xlu0 %v874_v51  ;;  %v4506_v53 = vsub.f32 %v4383_v4, %v696_v46 }
 0x113   :  { %v3796_v54 = vpop.f32.mrb[26].mxu0  ;;  %v4509_v55 = vsub.f32 %v4383_v4, %v695_v49 }
 0x114   :  { %v698_v57 = vmul.f32 2.0, %v3796_v54  ;;  %v482_v59 = vpop.f32.mrb[27].mxu0  ;;  %v883_v62 = vsel %vm807_vm2, %v4506_v53, inf }
 0x115   :  { %v697_v60 = vmul.f32 2.0, %v482_v59  ;;  %878 = vmin.xlane.f32.xlu1 %v877_v52  ;;  %v880_v61 = vsel %vm807_vm2, %v4509_v55, inf }
 0x116   :  { %881 = vmin.xlane.f32.xlu0 %v880_v61  ;;  %v4516_v63 = vsub.f32 %v4383_v4, %v698_v57 }
 0x117   :  { %v3799_v1 = vpop.f32.mrb[28].mxu0  ;;  %v4519_v3 = vsub.f32 %v4383_v4, %v697_v60 }
 0x118   :  { %v700_v5 = vmul.f32 2.0, %v3799_v1  ;;  %v492_v6 = vpop.f32.mrb[29].mxu0  ;;  %v889_v11 = vsel %vm807_vm2, %v4516_v63, inf }
 0x119   :  { %v699_v7 = vmul.f32 2.0, %v492_v6  ;;  %884 = vmin.xlane.f32.xlu1 %v883_v62  ;;  %v886_v9 = vsel %vm807_vm2, %v4519_v3, inf }
 0x11a   :  { %887 = vmin.xlane.f32.xlu0 %v886_v9  ;;  %v4526_v14 = vsub.f32 %v4383_v4, %v700_v5 }
 0x11b   :  { %v3802_v16 = vpop.f32.mrb[30].mxu0  ;;  %v4529_v17 = vsub.f32 %v4383_v4, %v699_v7 }
 0x11c   :  { %v702_v18 = vmul.f32 2.0, %v3802_v16  ;;  %v502_v19 = vpop.f32.mrb[31].mxu0  ;;  %v895_v27 = vsel %vm807_vm2, %v4526_v14, inf }
 0x11d   :  { %v701_v22 = vmul.f32 2.0, %v502_v19  ;;  %890 = vmin.xlane.f32.xlu1 %v889_v11  ;;  %v892_v26 = vsel %vm807_vm2, %v4529_v17, inf }
 0x11e   :  { %893 = vmin.xlane.f32.xlu0 %v892_v26  ;;  %v4536_v28 = vsub.f32 %v4383_v4, %v702_v18 }
 0x11f   :  { %v3805_v29 = vpop.f32.mrb[32].mxu0  ;;  %v4539_v30 = vsub.f32 %v4383_v4, %v701_v22 }
 0x120   :  { %v704_v33 = vmul.f32 2.0, %v3805_v29  ;;  %v512_v36 = vpop.f32.mrb[33].mxu0  ;;  %v901_v39 = vsel %vm807_vm2, %v4536_v28, inf }
 0x121   :  { %v703_v37 = vmul.f32 2.0, %v512_v36  ;;  %896 = vmin.xlane.f32.xlu1 %v895_v27  ;;  %v898_v38 = vsel %vm807_vm2, %v4539_v30, inf }
 0x122   :  { %899 = vmin.xlane.f32.xlu0 %v898_v38  ;;  %v4546_v41 = vsub.f32 %v4383_v4, %v704_v33 }
 0x123   :  { %v3808_v44 = vpop.f32.mrb[34].mxu0  ;;  %v4549_v46 = vsub.f32 %v4383_v4, %v703_v37 }
 0x124   :  { %v706_v47 = vmul.f32 2.0, %v3808_v44  ;;  %v522_v49 = vpop.f32.mrb[35].mxu0  ;;  %v907_v54 = vsel %vm807_vm2, %v4546_v41, inf }
 0x125   :  { %v705_v51 = vmul.f32 2.0, %v522_v49  ;;  %902 = vmin.xlane.f32.xlu1 %v901_v39  ;;  %v904_v52 = vsel %vm807_vm2, %v4549_v46, inf }
 0x126   :  { %905 = vmin.xlane.f32.xlu0 %v904_v52  ;;  %v4556_v57 = vsub.f32 %v4383_v4, %v706_v47 }
 0x127   :  { %v3811_v59 = vpop.f32.mrb[36].mxu0  ;;  %v4559_v60 = vsub.f32 %v4383_v4, %v705_v51 }
 0x128   :  { %v708_v61 = vmul.f32 2.0, %v3811_v59  ;;  %v532_v62 = vpop.f32.mrb[37].mxu0  ;;  %v913_v6 = vsel %vm807_vm2, %v4556_v57, inf }
 0x129   :  { %6927 = vst [vmem:[#allocation8_spill] sm:$0xff] %v4559_v60  ;;  %v707_v1 = vmul.f32 2.0, %v532_v62  ;;  %908 = vmin.xlane.f32.xlu1 %v907_v54  ;;  %v910_v5 = vsel %vm807_vm2, %v4559_v60, inf }
 0x12a   :  { %911 = vmin.xlane.f32.xlu0 %v910_v5  ;;  %v4566_v7 = vsub.f32 %v4383_v4, %v708_v61 }
 0x12b   :  { %v3814_v9 = vpop.f32.mrb[38].mxu0  ;;  %v4569_v11 = vsub.f32 %v4383_v4, %v707_v1 }
 0x12c   :  { %v710_v16 = vmul.f32 2.0, %v3814_v9  ;;  %v542_v18 = vpop.f32.mrb[39].mxu0  ;;  %v919_v26 = vsel %vm807_vm2, %v4566_v7, inf }
 0x12d   :  { %6928 = vst [vmem:[#allocation9_spill] sm:$0xff] %v4569_v11  ;;  %v709_v19 = vmul.f32 2.0, %v542_v18  ;;  %914 = vmin.xlane.f32.xlu1 %v913_v6  ;;  %v916_v22 = vsel %vm807_vm2, %v4569_v11, inf }
 0x12e   :  { %917 = vmin.xlane.f32.xlu0 %v916_v22  ;;  %v4576_v27 = vsub.f32 %v4383_v4, %v710_v16 }
 0x12f   :  { %v4579_v29 = vsub.f32 %v4383_v4, %v709_v19  ;;  %v3817_v33 = vpop.f32.mrb[40].mxu0 }
 0x130   :  { %v712_v36 = vmul.f32 2.0, %v3817_v33  ;;  %v552_v37 = vpop.f32.mrb[41].mxu0  ;;  %v925_v39 = vsel %vm807_vm2, %v4576_v27, inf }
 0x131   :  { %6929 = vst [vmem:[#allocation10_spill] sm:$0xff] %v4579_v29  ;;  %920 = vmin.xlane.f32.xlu1 %v919_v26  ;;  %v922_v38 = vsel %vm807_vm2, %v4579_v29, inf  ;;  %v711_v49 = vmul.f32 2.0, %v552_v37 }
 0x132   :  { %923 = vmin.xlane.f32.xlu0 %v922_v38  ;;  %v4586_v44 = vsub.f32 %v4383_v4, %v712_v36 }
 0x133   :  { %v3820_v47 = vpop.f32.mrb[42].mxu0  ;;  %v4591_v61 = vsub.f32 %v4383_v4, %v711_v49 }
 0x134   :  { %v562_v51 = vpop.f32.mrb[43].mxu0  ;;  %v931_v52 = vsel %vm807_vm2, %v4586_v44, inf  ;;  %v714_v54 = vmul.f32 2.0, %v3820_v47 }
 0x135   :  { %926 = vmin.xlane.f32.xlu1 %v925_v39  ;;  %6930 = vst [vmem:[#allocation11_spill] sm:$0xff] %v4591_v61  ;;  %v713_v6 = vmul.f32 2.0, %v562_v51  ;;  %v928_v9 = vsel %vm807_vm2, %v4591_v61, inf }
 0x136   :  { %v4594_v1 = vsub.f32 %v4383_v4, %v714_v54 }
 0x137   :  { %v3823_v59 = vpop.f32.mrb[44].mxu0  ;;  %v4601_v26 = vsub.f32 %v4383_v4, %v713_v6 }
 0x138   :  { %v572_v62 = vpop.f32.mrb[45].mxu0  ;;  %v937_v18 = vsel %vm807_vm2, %v4594_v1, inf  ;;  %v716_v19 = vmul.f32 2.0, %v3823_v59 }
 0x139   :  { %932 = vmin.xlane.f32.xlu1 %v931_v52  ;;  %6931 = vst [vmem:[#allocation12_spill] sm:$0xff] %v4601_v26  ;;  %v715_v38 = vmul.f32 2.0, %v572_v62  ;;  %v934_v39 = vsel %vm807_vm2, %v4601_v26, inf }
 0x13a   :  { %v4604_v36 = vsub.f32 %v4383_v4, %v716_v19 }
 0x13b   :  { %v3826_v5 = vpop.f32.mrb[46].mxu0  ;;  %v4611_v54 = vsub.f32 %v4383_v4, %v715_v38 }
 0x13c   :  { %v582_v16 = vpop.f32.mrb[47].mxu0  ;;  %v943_v49 = vsel %vm807_vm2, %v4604_v36, inf  ;;  %v718_v51 = vmul.f32 2.0, %v3826_v5 }
 0x13d   :  { %929 = vmin.xlane.f32.xlu1 %v928_v9  ;;  %6932 = vst [vmem:[#allocation13_spill] sm:$0xff] %v4611_v54  ;;  %v717_v62 = vmul.f32 2.0, %v582_v16 }
 0x13e   :  { %v4614_v6 = vsub.f32 %v4383_v4, %v718_v51 }
 0x13f   :  { %v3829_v22 = vpop.f32.mrb[48].mxu0  ;;  %v4621_v38 = vsub.f32 %v4383_v4, %v717_v62 }
 0x140   :  { %v592_v33 = vpop.f32.mrb[49].mxu0  ;;  %6933 = vst [vmem:[#allocation14_spill] sm:$0xff] %v4614_v6  ;;  %v720_v5 = vmul.f32 2.0, %v3829_v22 }
 0x141   :  { %938 = vmin.xlane.f32.xlu1 %v937_v18  ;;  %v940_v18 = vsel %vm807_vm2, %v4611_v54, inf  ;;  %6934 = vst [vmem:[#allocation15_spill] sm:$0xff] %v4621_v38  ;;  %v719_v16 = vmul.f32 2.0, %v592_v33  ;;  %v946_v54 = vsel %vm807_vm2, %v4621_v38, inf }
 0x143   :  { %v3832_v37 = vpop.f32.mrb[50].mxu0  ;;  %v4635_v62 = vsub.f32 %v4383_v4, %v719_v16 }
 0x144   :  { %v602_v47 = vpop.f32.mrb[51].mxu0 }
 0x145   :  { %935 = vmin.xlane.f32.xlu1 %v934_v39  ;;  %v949_v39 = vsel %vm807_vm2, %v4614_v6, inf  ;;  %6936 = vst [vmem:[#allocation17_spill] sm:$0xff] %v4635_v62  ;;  %v721_v38 = vmul.f32 2.0, %v602_v47 }
 0x147   :  { %v3835_v52 = vpop.f32.mrb[52].mxu0 }
 0x148   :  { %v612_v59 = vpop.f32.mrb[53].mxu0  ;;  %v724_v16 = vmul.f32 2.0, %v3835_v52 }
 0x149   :  { %944 = vmin.xlane.f32.xlu1 %v943_v49  ;;  %v4624_v49 = vsub.f32 %v4383_v4, %v720_v5 }
 0x14b   :  { %v3838_v9 = vpop.f32.mrb[54].mxu0  ;;  %6935 = vst [vmem:[#allocation16_spill] sm:$0xff] %v4624_v49  ;;  %v955_v22 = vsel %vm807_vm2, %v4624_v49, inf  ;;  %v4651_v49 = vsub.f32 %v4383_v4, %v721_v38 }
 0x14c   :  { %v622_v19 = vpop.f32.mrb[55].mxu0 }
 0x14d   :  { %941 = vmin.xlane.f32.xlu1 %v940_v18  ;;  %v722_v18 = vmul.f32 2.0, %v3832_v37  ;;  %6937 = vst [vmem:[#allocation18_spill] sm:$0xff] %v4651_v49  ;;  %v958_v47 = vsel %vm807_vm2, %v4651_v49, inf  ;;  %v725_v38 = vmul.f32 2.0, %v622_v19 }
 0x14f   :  { %v3841_v26 = vpop.f32.mrb[56].mxu0  ;;  %v4640_v33 = vsub.f32 %v4383_v4, %v722_v18  ;;  %v723_v18 = vmul.f32 2.0, %v612_v59  ;;  %v805_v59 = vlaneseq }
 0x150   :  { %v632_v61 = vpop.f32.mrb[57].mxu0 }
 0x151   :  { %950 = vmin.xlane.f32.xlu1 %v949_v39  ;;  %v961_v37 = vsel %vm807_vm2, %v4640_v33, inf  ;;  %v4661_v60 = vsub.f32 %v4383_v4, %v723_v18  ;;  %v4670_v49 = vand.u32 127, %v805_v59 }
 0x153   :  { %v3844_v51 = vpop.f32.mrb[58].mxu0  ;;  %6938 = vst [vmem:[#allocation19_spill] sm:$0xff] %v4661_v60  ;;  %6939 = vst [vmem:[#allocation20_spill] sm:$0xff] %v4670_v49 }
 0x154   :  { %v4628_v29 = vpop.f32.mrb[59].mxu0 }
 0x155   :  { %947 = vmin.xlane.f32.xlu1 %v946_v54  ;;  %v952_v54 = vsel %vm807_vm2, %v4635_v62, inf }
 0x157   :  { %v4632_v11 = vpop.f32.mrb[60].mxu0 }
 0x158   :  { %v4637_v39 = vpop.f32.mrb[61].mxu0 }
 0x159   :  { %956 = vmin.xlane.f32.xlu1 %v955_v22  ;;  %v4654_v22 = vsub.f32 %v4383_v4, %v724_v16 }
 0x15b   :  { %v4642_v5 = vpop.f32.mrb[62].mxu0  ;;  %v967_v62 = vsel %vm807_vm2, %v4654_v22, inf }
 0x15c   :  { %v4646_v6 = vpop.f32.mrb[63].mxu0 }
 0x15d   :  { %953 = vmin.xlane.f32.xlu1 %v952_v54  ;;  %v726_v54 = vmul.f32 2.0, %v3838_v9  ;;  %v4673_v9 = vsub.f32 %v4383_v4, %v725_v38 }
 0x15f   :  { %v4664_v52 = vsub.f32 %v4383_v4, %v726_v54  ;;  %v727_v54 = vmul.f32 2.0, %v632_v61 }
 0x161   :  { %962 = vmin.xlane.f32.xlu1 %v961_v37  ;;  %v964_v37 = vsel %vm807_vm2, %v4661_v60, inf  ;;  %v973_v16 = vsel %vm807_vm2, %v4664_v52, inf  ;;  %v730_v60 = vmul.f32 2.0, %v3844_v51 }
 0x165   :  { %959 = vmin.xlane.f32.xlu1 %v958_v47  ;;  %v728_v47 = vmul.f32 2.0, %v3841_v26 }
 0x167   :  { %v4676_v18 = vsub.f32 %v4383_v4, %v728_v47 }
 0x169   :  { %968 = vmin.xlane.f32.xlu1 %v967_v62 }
 0x16d   :  { %965 = vmin.xlane.f32.xlu1 %v964_v37  ;;  %v970_v37 = vsel %vm807_vm2, %v4673_v9, inf }
 0x171   :  { %974 = vmin.xlane.f32.xlu1 %v973_v16  ;;  %v979_v16 = vsel %vm807_vm2, %v4676_v18, inf }
 0x172   :  { %v813_v62 = vpop.xlane.xlu0 %812 }
 0x173   :  { %vm1001_vm3 = vcmp.le.f32.partialorder %v4386_v8, %v813_v62 }
 0x174   :  { %v1065_v19 = vsel %vm1001_vm3, %v4670_v49, 16 }
 0x175   :  { %971 = vmin.xlane.f32.xlu1 %v970_v37  ;;  %v4683_v26 = vsel %vm807_vm2, %v1065_v19, 2147483647  ;;  %v4695_v19 = vsub.f32 %v4383_v4, %v727_v54  ;;  %v729_v54 = vmul.f32 2.0, %v4628_v29  ;;  %v732_v29 = vmul.f32 2.0, %v4632_v11 }
 0x176   :  { %6940 = vst [vmem:[#allocation21_spill] sm:$0xff] %v4683_v26  ;;  %v810_v59 = vpop.xlane.xlu0 %809  ;;  %v819_v38 = vpop.xlane.xlu1 %818  ;;  %v1145_v47 = vshra.s32 %v4683_v26, 16 }
 0x177   :  { %vm1000_vm4 = vcmp.le.f32.partialorder %v4391_v13, %v810_v59  ;;  %vm1003_vm5 = vcmp.le.f32.partialorder %v4394_v15, %v819_v38  ;;  %v4706_v15 = vsub.f32 %v4383_v4, %v730_v60 }
 0x178   :  { %v1064_v8 = vsel %vm1000_vm4, %v4670_v49, 16  ;;  %v1067_v61 = vsel %vm1003_vm5, %v4670_v49, 16  ;;  %v4692_v62 = vcvt.s32.f32 %v1145_v47 }
 0x179   :  { %980 = vmin.xlane.f32.xlu1 %v979_v16  ;;  %v4698_v37 = vsel %vm807_vm2, %v1064_v8, 2147483647  ;;  %v4701_v26 = vsel %vm807_vm2, %v1067_v61, 2147483647  ;;  %v976_v16 = vsel %vm807_vm2, %v4695_v19, inf }
 0x17a   :  { %6941 = vst [vmem:[#allocation22_spill] sm:$0xff] %v4701_v26  ;;  %v816_v51 = vpop.xlane.xlu1 %815  ;;  %1148 = vmin.xlane.f32.xlu0 %v4692_v62  ;;  %v1130_v13 = vshra.s32 %v4698_v37, 16  ;;  %v1175_v8 = vshra.s32 %v4701_v26, 16 }
 0x17b   :  { %vm1002_vm6 = vcmp.le.f32.partialorder %v4401_v21, %v816_v51  ;;  %v822_v38 = vpop.xlane.xlu0 %821  ;;  %v985_v21 = vsel %vm807_vm2, %v4706_v15, inf }
 0x17c   :  { %v1066_v59 = vsel %vm1002_vm6, %v4670_v49, 16  ;;  %v4713_v47 = vcvt.s32.f32 %v1130_v13  ;;  %vm1004_vm7 = vcmp.le.f32.partialorder %v4407_v25, %v822_v38  ;;  %v4726_v13 = vcvt.s32.f32 %v1175_v8 }
 0x17d   :  { %977 = vmin.xlane.f32.xlu1 %v976_v16  ;;  %v4717_v61 = vsel %vm807_vm2, %v1066_v59, 2147483647  ;;  %v4729_v16 = vsub.f32 %v4383_v4, %v729_v54  ;;  %v1068_v26 = vsel %vm1004_vm7, %v4670_v49, 16  ;;  %v731_v54 = vmul.f32 2.0, %v4637_v39 }
 0x17e   :  { %6942 = vst [vmem:[#allocation23_spill] sm:$0xff] %v4713_v47  ;;  %6943 = vst [vmem:[#allocation24_spill] sm:$0xff] %v4717_v61  ;;  %v825_v60 = vpop.xlane.xlu1 %824  ;;  %1133 = vmin.xlane.f32.xlu0 %v4713_v47  ;;  %v1160_v59 = vshra.s32 %v4717_v61, 16  ;;  %v734_v39 = vmul.f32 2.0, %v4642_v5 }
 0x17f   :  { %vm1005_vm8 = vcmp.le.f32.partialorder %v4404_v23, %v825_v60  ;;  %v4738_v23 = vsub.f32 %v4383_v4, %v732_v29  ;;  %v828_v25 = vpop.xlane.xlu0 %827  ;;  %v982_v38 = vsel %vm807_vm2, %v4729_v16, inf }
 0x180   :  { %v1069_v51 = vsel %vm1005_vm8, %v4670_v49, 16  ;;  %v4744_v8 = vcvt.s32.f32 %v1160_v59  ;;  %vm1006_vm10 = vcmp.le.f32.partialorder %v4419_v34, %v828_v25  ;;  %v4768_v5 = vsub.f32 %v4383_v4, %v734_v39 }
 0x181   :  { %986 = vmin.xlane.f32.xlu1 %v985_v21  ;;  %v4733_v47 = vsel %vm807_vm2, %v1069_v51, 2147483647  ;;  %v4748_v21 = vsel %vm807_vm2, %v1068_v26, 2147483647  ;;  %v733_v34 = vmul.f32 2.0, %v4646_v6 }
 0x182   :  { %6944 = vst [vmem:[#allocation25_spill] sm:$0xff] %v4733_v47  ;;  %v831_v11 = vpop.xlane.xlu1 %830  ;;  %1178 = vmin.xlane.f32.xlu0 %v4726_v13  ;;  %6945 = vst [vmem:[#allocation26_spill] sm:$0xff] %v4744_v8  ;;  %v1205_v60 = vshra.s32 %v4733_v47, 16  ;;  %v1190_v26 = vshra.s32 %v4748_v21, 16 }
 0x183   :  { %vm1007_vm9 = vcmp.le.f32.partialorder %v4416_v32, %v831_v11  ;;  %6946 = vst [vmem:[#allocation27_spill] sm:$0xff] %v4748_v21  ;;  %v991_v32 = vsel %vm807_vm2, %v4738_v23, inf  ;;  %v4759_v11 = vsub.f32 %v4383_v4, %v731_v54  ;;  %v834_v47 = vpop.xlane.xlu0 %833 }
 0x184   :  { %v1071_v51 = vsel %vm1007_vm9, %v4670_v49, 16  ;;  %v4756_v59 = vcvt.s32.f32 %v1205_v60  ;;  %v4774_v54 = vcvt.s32.f32 %v1190_v26  ;;  %vm1008_vm12 = vcmp.le.f32.partialorder %v4429_v42, %v834_v47 }
 0x185   :  { %983 = vmin.xlane.f32.xlu1 %v982_v38  ;;  %v4763_v38 = vsel %vm807_vm2, %v1071_v51, 2147483647  ;;  %v988_v25 = vsel %vm807_vm2, %v4759_v11, inf }
 0x186   :  { %v837_v29 = vpop.xlane.xlu1 %836  ;;  %1163 = vmin.xlane.f32.xlu0 %v4744_v8  ;;  %v1070_v8 = vsel %vm1006_vm10, %v4670_v49, 16  ;;  %6947 = vst [vmem:[#allocation28_spill] sm:$0xff] %v4774_v54  ;;  %v1235_v60 = vshra.s32 %v4763_v38, 16 }
 0x187   :  { %vm1009_vm11 = vcmp.le.f32.partialorder %v4426_v40, %v837_v29  ;;  %v4778_v51 = vsel %vm807_vm2, %v1070_v8, 2147483647  ;;  %v997_v40 = vsel %vm807_vm2, %v4768_v5, inf  ;;  %v840_v6 = vpop.xlane.xlu0 %839  ;;  %v4786_v29 = vsub.f32 %v4383_v4, %v733_v34 }
 0x188   :  { %6948 = vst [vmem:[#allocation29_spill] sm:$0xff] %v4778_v51  ;;  %v4788_v39 = vcvt.s32.f32 %v1235_v60  ;;  %v1220_v26 = vshra.s32 %v4778_v51, 16  ;;  %vm1010_vm14 = vcmp.le.f32.partialorder %v4439_v50, %v840_v6 }
 0x189   :  { %992 = vmin.xlane.f32.xlu1 %v991_v32  ;;  %v1073_v32 = vsel %vm1009_vm11, %v4670_v49, 16  ;;  %v994_v42 = vsel %vm807_vm2, %v4786_v29, inf }
 0x18a   :  { %v843_v61 = vpop.xlane.xlu1 %842  ;;  %1208 = vmin.xlane.f32.xlu0 %v4756_v59  ;;  %v4792_v8 = vsel %vm807_vm2, %v1073_v32, 2147483647  ;;  %v4799_v4 = vcvt.s32.f32 %v1220_v26 }
 0x18b   :  { %6949 = vst [vmem:[#allocation30_spill] sm:$0xff] %v4792_v8  ;;  %vm1011_vm13 = vcmp.le.f32.partialorder %v4436_v48, %v843_v61  ;;  %v1265_v47 = vshra.s32 %v4792_v8, 16  ;;  %v846_v32 = vpop.xlane.xlu0 %845 }
 0x18c   :  { %6950 = vst [vmem:[#allocation31_spill] sm:$0xff] %v4799_v4  ;;  %v1075_v60 = vsel %vm1011_vm13, %v4670_v49, 16  ;;  %vm1012_vm1 = vcmp.le.f32.partialorder %v4449_v58, %v846_v32 }
 0x18d   :  { %989 = vmin.xlane.f32.xlu1 %v988_v25  ;;  %v1072_v25 = vsel %vm1008_vm12, %v4670_v49, 16  ;;  %v4808_v48 = vcvt.s32.f32 %v1265_v47  ;;  %v4812_v26 = vsel %vm807_vm2, %v1075_v60, 2147483647 }
 0x18e   :  { %v849_v21 = vpop.xlane.xlu1 %848  ;;  %1193 = vmin.xlane.f32.xlu0 %v4774_v54  ;;  %v4803_v34 = vsel %vm807_vm2, %v1072_v25, 2147483647  ;;  %6952 = vst [vmem:[#allocation33_spill] sm:$0xff] %v4812_v26  ;;  %v1295_v50 = vshra.s32 %v4812_v26, 16 }
 0x18f   :  { %6951 = vst [vmem:[#allocation32_spill] sm:$0xff] %v4803_v34  ;;  %v1250_v61 = vshra.s32 %v4803_v34, 16  ;;  %vm1013_vm15 = vcmp.le.f32.partialorder %v4446_v56, %v849_v21  ;;  %v852_v25 = vpop.xlane.xlu0 %851 }
 0x190   :  { %v1077_v47 = vsel %vm1013_vm15, %v4670_v49, 16  ;;  %v4830_v34 = vcvt.s32.f32 %v1295_v50  ;;  %vm1014_vm4 = vcmp.le.f32.partialorder %v4459_v2, %v852_v25 }
 0x191   :  { %998 = vmin.xlane.f32.xlu1 %v997_v40  ;;  %v4819_v51 = vcvt.s32.f32 %v1250_v61  ;;  %v4834_v21 = vsel %vm807_vm2, %v1077_v47, 2147483647  ;;  %v1076_v61 = vsel %vm1012_vm1, %v4670_v49, 16 }
 0x192   :  { %v855_v54 = vpop.xlane.xlu1 %854  ;;  %1238 = vmin.xlane.f32.xlu0 %v4788_v39  ;;  %6955 = vst [vmem:[#allocation36_spill] sm:$0xff] %v4834_v21  ;;  %v1325_v58 = vshra.s32 %v4834_v21, 16  ;;  %v4845_v32 = vsel %vm807_vm2, %v1076_v61, 2147483647  ;;  %v1078_v21 = vsel %vm1014_vm4, %v4670_v49, 16 }
 0x193   :  { %6953 = vst [vmem:[#allocation34_spill] sm:$0xff] %v4819_v51  ;;  %v858_v26 = vpop.xlane.xlu0 %857  ;;  %vm1015_vm3 = vcmp.le.f32.partialorder %v4456_v0, %v855_v54  ;;  %6957 = vst [vmem:[#allocation38_spill] sm:$0xff] %v4845_v32  ;;  %v1310_v54 = vshra.s32 %v4845_v32, 16 }
 0x194   :  { %v1079_v50 = vsel %vm1015_vm3, %v4670_v49, 16  ;;  %v4852_v0 = vcvt.s32.f32 %v1325_v58  ;;  %vm1016_vm8 = vcmp.le.f32.partialorder %v4469_v12, %v858_v26 }
 0x195   :  { %995 = vmin.xlane.f32.xlu1 %v994_v42  ;;  %v1074_v42 = vsel %vm1010_vm14, %v4670_v49, 16  ;;  %v4859_v61 = vsel %vm807_vm2, %v1079_v50, 2147483647  ;;  %v4867_v25 = vcvt.s32.f32 %v1310_v54 }
 0x196   :  { %v861_v40 = vpop.xlane.xlu1 %860  ;;  %1223 = vmin.xlane.f32.xlu0 %v4799_v4  ;;  %v4823_v6 = vsel %vm807_vm2, %v1074_v42, 2147483647  ;;  %v1355_v58 = vshra.s32 %v4859_v61, 16 }
 0x197   :  { %6954 = vst [vmem:[#allocation35_spill] sm:$0xff] %v4823_v6  ;;  %v1280_v56 = vshra.s32 %v4823_v6, 16  ;;  %v864_v6 = vpop.xlane.xlu0 %863  ;;  %vm1017_vm6 = vcmp.le.f32.partialorder %v4466_v10, %v861_v40 }
 0x198   :  { %v4887_v40 = vcvt.s32.f32 %v1355_v58  ;;  %vm1018_vm12 = vcmp.le.f32.partialorder %v4479_v24, %v864_v6 }
 0x199   :  { %v4841_v4 = vcvt.s32.f32 %v1280_v56 }
 0x19a   :  { %v4815_v8 = vpop.xlane.xlu1 %866  ;;  %1268 = vmin.xlane.f32.xlu0 %v4808_v48 }
 0x19b   :  { %6956 = vst [vmem:[#allocation37_spill] sm:$0xff] %v4841_v4  ;;  %v4879_v32 = vpop.xlane.xlu0 %869  ;;  %vm1019_vm10 = vcmp.le.f32.partialorder %v4476_v20, %v4815_v8 }
 0x19c   :  { %v1083_v20 = vsel %vm1019_vm10, %v4670_v49, 16  ;;  %vm1020_vm1 = vcmp.le.f32.partialorder %v4489_v35, %v4879_v32 }
 0x19e   :  { %v4826_v60 = vpop.xlane.xlu1 %872  ;;  %1253 = vmin.xlane.f32.xlu0 %v4819_v51 }
 0x19f   :  { %vm1021_vm14 = vcmp.le.f32.partialorder %v4486_v31, %v4826_v60 }
 0x1a2   :  { %v4837_v42 = vpop.xlane.xlu1 %878  ;;  %1298 = vmin.xlane.f32.xlu0 %v4830_v34 }
 0x1a3   :  { %vm1023_vm4 = vcmp.le.f32.partialorder %v4496_v43, %v4837_v42 }
 0x1a6   :  { %v885_v47 = vpop.xlane.xlu1 %884  ;;  %1283 = vmin.xlane.f32.xlu0 %v4841_v4 }
 0x1a7   :  { %vm1025_vm5 = vcmp.le.f32.partialorder %v4506_v53, %v885_v47  ;;  %v4876_v47 = vsel %vm807_vm2, %v1078_v21, 2147483647 }
 0x1a8   :  { %v1089_v51 = vsel %vm1025_vm5, %v4670_v49, 16  ;;  %v1340_v54 = vshra.s32 %v4876_v47, 16 }
 0x1a9   :  { %v4856_v56 = vsel %vm807_vm2, %v1089_v51, 2147483647 }
 0x1aa   :  { %6958 = vst [vmem:[#allocation39_spill] sm:$0xff] %v4856_v56  ;;  %v891_v4 = vpop.xlane.xlu1 %890  ;;  %1328 = vmin.xlane.f32.xlu0 %v4852_v0  ;;  %v1505_v2 = vshra.s32 %v4856_v56, 16  ;;  %v1081_v56 = vsel %vm1017_vm6, %v4670_v49, 16 }
 0x1ab   :  { %vm1027_vm7 = vcmp.le.f32.partialorder %v4516_v63, %v891_v4 }
 0x1ac   :  { %v1091_v53 = vsel %vm1027_vm7, %v4670_v49, 16  ;;  %v4869_v51 = vcvt.s32.f32 %v1505_v2 }
 0x1ad   :  { %v4873_v50 = vsel %vm807_vm2, %v1091_v53, 2147483647  ;;  %v4896_v53 = vsel %vm807_vm2, %v1081_v56, 2147483647  ;;  %v4908_v56 = vcvt.s32.f32 %v1340_v54 }
 0x1ae   :  { %6959 = vst [vmem:[#allocation40_spill] sm:$0xff] %v4869_v51  ;;  %6960 = vst [vmem:[#allocation41_spill] sm:$0xff] %v4873_v50  ;;  %v897_v10 = vpop.xlane.xlu1 %896  ;;  %1313 = vmin.xlane.f32.xlu0 %v4867_v25  ;;  %1508 = vmin.xlane.f32.xlu1 %v4869_v51  ;;  %v1535_v63 = vshra.s32 %v4873_v50, 16  ;;  %v1080_v50 = vsel %vm1016_vm8, %v4670_v49, 16 }
 0x1af   :  { %vm1029_vm9 = vcmp.le.f32.partialorder %v4526_v14, %v897_v10  ;;  %v4905_v14 = vpop.xlane.xlu0 %875  ;;  %v1385_v10 = vshra.s32 %v4896_v53, 16 }
 0x1b0   :  { %v1093_v4 = vsel %vm1029_vm9, %v4670_v49, 16  ;;  %v4889_v21 = vcvt.s32.f32 %v1535_v63  ;;  %vm1022_vm6 = vcmp.le.f32.partialorder %v4499_v45, %v4905_v14 }
 0x1b1   :  { %v4893_v2 = vsel %vm807_vm2, %v1093_v4, 2147483647  ;;  %v4917_v4 = vsel %vm807_vm2, %v1080_v50, 2147483647  ;;  %v4926_v54 = vcvt.s32.f32 %v1385_v10 }
 0x1b2   :  { %6961 = vst [vmem:[#allocation42_spill] sm:$0xff] %v4893_v2  ;;  %v903_v51 = vpop.xlane.xlu1 %902  ;;  %1358 = vmin.xlane.f32.xlu0 %v4887_v40  ;;  %1538 = vmin.xlane.f32.xlu1 %v4889_v21  ;;  %v1565_v12 = vshra.s32 %v4893_v2, 16  ;;  %v1370_v50 = vshra.s32 %v4917_v4, 16  ;;  %v4935_v2 = vsel %vm807_vm2, %v1083_v20, 2147483647 }
 0x1b3   :  { %vm1031_vm11 = vcmp.le.f32.partialorder %v4536_v28, %v903_v51 }
 0x1b4   :  { %v1095_v26 = vsel %vm1031_vm11, %v4670_v49, 16  ;;  %v4910_v58 = vcvt.s32.f32 %v1565_v12  ;;  %v4947_v10 = vcvt.s32.f32 %v1370_v50 }
 0x1b5   :  { %v4914_v63 = vsel %vm807_vm2, %v1095_v26, 2147483647 }
 0x1b6   :  { %6962 = vst [vmem:[#allocation43_spill] sm:$0xff] %v4910_v58  ;;  %6963 = vst [vmem:[#allocation44_spill] sm:$0xff] %v4914_v63  ;;  %v909_v8 = vpop.xlane.xlu1 %908  ;;  %1343 = vmin.xlane.f32.xlu0 %v4908_v56  ;;  %1568 = vmin.xlane.f32.xlu1 %v4910_v58  ;;  %v1595_v28 = vshra.s32 %v4914_v63, 16  ;;  %v1082_v63 = vsel %vm1018_vm12, %v4670_v49, 16  ;;  %v4938_v58 = vpop.xlane.xlu0 %881 }
 0x1b7   :  { %vm1033_vm13 = vcmp.le.f32.partialorder %v4546_v41, %v909_v8  ;;  %v1415_v8 = vshra.s32 %v4935_v2, 16  ;;  %vm1024_vm8 = vcmp.le.f32.partialorder %v4509_v55, %v4938_v58 }
 0x1b8   :  { %v1097_v51 = vsel %vm1033_vm13, %v4670_v49, 16  ;;  %v4928_v12 = vcvt.s32.f32 %v1595_v28 }
 0x1b9   :  { %v4932_v26 = vsel %vm807_vm2, %v1097_v51, 2147483647  ;;  %v4956_v51 = vsel %vm807_vm2, %v1082_v63, 2147483647  ;;  %v4966_v50 = vcvt.s32.f32 %v1415_v8 }
 0x1ba   :  { %6964 = vst [vmem:[#allocation45_spill] sm:$0xff] %v4928_v12  ;;  %6965 = vst [vmem:[#allocation46_spill] sm:$0xff] %v4932_v26  ;;  %v915_v24 = vpop.xlane.xlu1 %914  ;;  %1388 = vmin.xlane.f32.xlu0 %v4926_v54  ;;  %1598 = vmin.xlane.f32.xlu1 %v4928_v12  ;;  %v1625_v41 = vshra.s32 %v4932_v26, 16  ;;  %v1085_v26 = vsel %vm1021_vm14, %v4670_v49, 16 }
 0x1bb   :  { %vm1035_vm15 = vcmp.le.f32.partialorder %v4556_v57, %v915_v24  ;;  %v888_v57 = vpop.xlane.xlu0 %887  ;;  %v1400_v24 = vshra.s32 %v4956_v51, 16 }
 0x1bc   :  { %v1099_v6 = vsel %vm1035_vm15, %v4670_v49, 16  ;;  %v4949_v20 = vcvt.s32.f32 %v1625_v41  ;;  %vm1026_vm9 = vcmp.le.f32.partialorder %v4519_v3, %v888_v57 }
 0x1bd   :  { %v4953_v28 = vsel %vm807_vm2, %v1099_v6, 2147483647  ;;  %v4975_v6 = vsel %vm807_vm2, %v1085_v26, 2147483647 }
 0x1be   :  { %6966 = vst [vmem:[#allocation47_spill] sm:$0xff] %v4949_v20  ;;  %6967 = vst [vmem:[#allocation48_spill] sm:$0xff] %v4953_v28  ;;  %v921_v12 = vpop.xlane.xlu1 %920  ;;  %1373 = vmin.xlane.f32.xlu0 %v4947_v10  ;;  %1628 = vmin.xlane.f32.xlu1 %v4949_v20  ;;  %v1655_v31 = vshra.s32 %v4953_v28, 16  ;;  %v1084_v28 = vsel %vm1020_vm1, %v4670_v49, 16  ;;  %v1445_v8 = vshra.s32 %v4975_v6, 16 }
 0x1bf   :  { %vm1037_vm3 = vcmp.le.f32.partialorder %v4566_v7, %v921_v12  ;;  %v4985_v12 = vcvt.s32.f32 %v1400_v24 }
 0x1c0   :  { %v1101_v60 = vsel %vm1037_vm3, %v4670_v49, 16  ;;  %v4968_v63 = vcvt.s32.f32 %v1655_v31  ;;  %v5004_v24 = vcvt.s32.f32 %v1445_v8 }
 0x1c1   :  { %v4972_v41 = vsel %vm807_vm2, %v1101_v60, 2147483647  ;;  %v4994_v60 = vsel %vm807_vm2, %v1084_v28, 2147483647 }
 0x1c2   :  { %6968 = vst [vmem:[#allocation49_spill] sm:$0xff] %v4968_v63  ;;  %6969 = vst [vmem:[#allocation50_spill] sm:$0xff] %v4972_v41  ;;  %v927_v35 = vpop.xlane.xlu1 %926  ;;  %1418 = vmin.xlane.f32.xlu0 %v4966_v50  ;;  %1658 = vmin.xlane.f32.xlu1 %v4968_v63  ;;  %v1685_v7 = vshra.s32 %v4972_v41, 16  ;;  %v1087_v41 = vsel %vm1023_vm4, %v4670_v49, 16  ;;  %v894_v63 = vpop.xlane.xlu0 %893 }
 0x1c3   :  { %vm1039_vm5 = vcmp.le.f32.partialorder %v4576_v27, %v927_v35  ;;  %v1430_v35 = vshra.s32 %v4994_v60, 16  ;;  %vm1028_vm11 = vcmp.le.f32.partialorder %v4529_v17, %v894_v63 }
 0x1c4   :  { %v1103_v32 = vsel %vm1039_vm5, %v4670_v49, 16  ;;  %v4987_v26 = vcvt.s32.f32 %v1685_v7 }
 0x1c5   :  { %v4991_v31 = vsel %vm807_vm2, %v1103_v32, 2147483647  ;;  %v5013_v32 = vsel %vm807_vm2, %v1087_v41, 2147483647  ;;  %v5023_v8 = vcvt.s32.f32 %v1430_v35 }
 0x1c6   :  { %6970 = vst [vmem:[#allocation51_spill] sm:$0xff] %v4987_v26  ;;  %6971 = vst [vmem:[#allocation52_spill] sm:$0xff] %v4991_v31  ;;  %1403 = vmin.xlane.f32.xlu0 %v4985_v12  ;;  %v933_v43 = vpop.xlane.xlu1 %932  ;;  %1688 = vmin.xlane.f32.xlu1 %v4987_v26  ;;  %v1715_v27 = vshra.s32 %v4991_v31, 16  ;;  %v1086_v31 = vsel %vm1022_vm6, %v4670_v49, 16  ;;  %v900_v14 = vpop.xlane.xlu0 %899  ;;  %v1475_v41 = vshra.s32 %v5013_v32, 16 }
 0x1c7   :  { %vm1041_vm7 = vcmp.le.f32.partialorder %v4586_v44, %v933_v43  ;;  %vm1030_vm12 = vcmp.le.f32.partialorder %v4539_v30, %v900_v14 }
 0x1c8   :  { %v1105_v42 = vsel %vm1041_vm7, %v4670_v49, 16  ;;  %v5006_v28 = vcvt.s32.f32 %v1715_v27  ;;  %v5029_v27 = vsel %vm807_vm2, %v1086_v31, 2147483647  ;;  %v5037_v58 = vcvt.s32.f32 %v1475_v41 }
 0x1c9   :  { %v5010_v7 = vsel %vm807_vm2, %v1105_v42, 2147483647  ;;  %v1088_v42 = vsel %vm1024_vm8, %v4670_v49, 16  ;;  %v1460_v35 = vshra.s32 %v5029_v27, 16  ;;  %v1094_v20 = vsel %vm1030_vm12, %v4670_v49, 16 }
 0x1ca   :  { %6972 = vst [vmem:[#allocation53_spill] sm:$0xff] %v5006_v28  ;;  %6973 = vst [vmem:[#allocation54_spill] sm:$0xff] %v5010_v7  ;;  %1448 = vmin.xlane.f32.xlu0 %v5004_v24  ;;  %v5017_v45 = vpop.xlane.xlu1 %929  ;;  %1718 = vmin.xlane.f32.xlu1 %v5006_v28  ;;  %v1745_v44 = vshra.s32 %v5010_v7, 16  ;;  %v1090_v7 = vsel %vm1026_vm9, %v4670_v49, 16  ;;  %v906_v26 = vpop.xlane.xlu0 %905 }
 0x1cb   :  { %v5052_v57 = vcvt.s32.f32 %v1460_v35  ;;  %vm1032_vm14 = vcmp.le.f32.partialorder %v4549_v46, %v906_v26  ;;  %v6984_v46 = vld [vmem:[#allocation14_spill] sm:$0xff] }
 0x1cc   :  { %v5025_v43 = vcvt.s32.f32 %v1745_v44  ;;  %v5044_v44 = vsel %vm807_vm2, %v1088_v42, 2147483647  ;;  %v5058_v42 = vsel %vm807_vm2, %v1090_v7, 2147483647 }
 0x1cd   :  { %v1490_v41 = vshra.s32 %v5044_v44, 16 }
 0x1ce   :  { %6974 = vst [vmem:[#allocation55_spill] sm:$0xff] %v5025_v43  ;;  %1433 = vmin.xlane.f32.xlu0 %v5023_v8  ;;  %v939_v28 = vpop.xlane.xlu1 %938  ;;  %1748 = vmin.xlane.f32.xlu1 %v5025_v43  ;;  %v912_v17 = vpop.xlane.xlu0 %911 }
 0x1cf   :  { %vm1043_vm10 = vcmp.le.f32.partialorder %v4594_v1, %v939_v28  ;;  %v5066_v35 = vcvt.s32.f32 %v1490_v41 }
 0x1d0   :  { %v1107_v55 = vsel %vm1043_vm10, %v4670_v49, 16 }
 0x1d1   :  { %v5041_v31 = vsel %vm807_vm2, %v1107_v55, 2147483647  ;;  %v1092_v55 = vsel %vm1028_vm11, %v4670_v49, 16  ;;  %6977 = vst [vmem:[#allocation58_spill] sm:$0xff] %v5066_v35 }
 0x1d2   :  { %6975 = vst [vmem:[#allocation56_spill] sm:$0xff] %v5041_v31  ;;  %1478 = vmin.xlane.f32.xlu0 %v5037_v58  ;;  %v5048_v3 = vpop.xlane.xlu1 %935  ;;  %v1775_v1 = vshra.s32 %v5041_v31, 16  ;;  %v5073_v31 = vsel %vm807_vm2, %v1092_v55, 2147483647  ;;  %v1096_v55 = vsel %vm1032_vm14, %v4670_v49, 16 }
 0x1d3   :  { %6979 = vst [vmem:[#allocation60_spill] sm:$0xff] %v5073_v31  ;;  %v1550_v41 = vshra.s32 %v5073_v31, 16  ;;  %v5102_v31 = vsel %vm807_vm2, %v1096_v55, 2147483647 }
 0x1d4   :  { %v5054_v28 = vcvt.s32.f32 %v1775_v1  ;;  %v1520_v1 = vshra.s32 %v5058_v42, 16  ;;  %6987 = vst [vmem:[#allocation64_spill] sm:$0xff] %v5102_v31 }
 0x1d6   :  { %6976 = vst [vmem:[#allocation57_spill] sm:$0xff] %v5054_v28  ;;  %1463 = vmin.xlane.f32.xlu0 %v5052_v57  ;;  %v945_v43 = vpop.xlane.xlu1 %944  ;;  %1778 = vmin.xlane.f32.xlu1 %v5054_v28  ;;  %v5081_v14 = vcvt.s32.f32 %v1520_v1  ;;  %v918_v28 = vpop.xlane.xlu0 %917  ;;  %v5095_v1 = vcvt.s32.f32 %v1550_v41 }
 0x1d7   :  { %vm1045_vm13 = vcmp.le.f32.partialorder %v4604_v36, %v945_v43 }
 0x1d8   :  { %v1109_v63 = vsel %vm1045_vm13, %v4670_v49, 16  ;;  %6980 = vst [vmem:[#allocation61_spill] sm:$0xff] %v5081_v14 }
 0x1d9   :  { %v5070_v7 = vsel %vm807_vm2, %v1109_v63, 2147483647  ;;  %v5087_v63 = vsel %vm807_vm2, %v1094_v20, 2147483647 }
 0x1da   :  { %6978 = vst [vmem:[#allocation59_spill] sm:$0xff] %v5070_v7  ;;  %1493 = vmin.xlane.f32.xlu0 %v5066_v35  ;;  %v5077_v30 = vpop.xlane.xlu1 %941  ;;  %v1805_v36 = vshra.s32 %v5070_v7, 16  ;;  %6982 = vst [vmem:[#allocation63_spill] sm:$0xff] %v5087_v63  ;;  %v6983_v7 = vld [vmem:[#allocation8_spill] sm:$0xff] }
 0x1db   :  { %vm1034_vm15 = vcmp.le.f32.partialorder %v6983_v7, %v912_v17  ;;  %6985 = vst [vmem:[#allocation8_spill] sm:$0xff] %v5095_v1  ;;  %v924_v7 = vpop.xlane.xlu0 %923 }
 0x1dc   :  { %v5083_v43 = vcvt.s32.f32 %v1805_v36  ;;  %v1580_v36 = vshra.s32 %v5087_v63, 16 }
 0x1de   :  { %6981 = vst [vmem:[#allocation62_spill] sm:$0xff] %v5083_v43  ;;  %1523 = vmin.xlane.f32.xlu0 %v5081_v14  ;;  %v951_v35 = vpop.xlane.xlu1 %950  ;;  %1808 = vmin.xlane.f32.xlu1 %v5083_v43  ;;  %v1098_v14 = vsel %vm1034_vm15, %v4670_v49, 16  ;;  %v5108_v41 = vcvt.s32.f32 %v1580_v36 }
 0x1df   :  { %vm1047_vm1 = vcmp.le.f32.partialorder %v6984_v46, %v951_v35  ;;  %v6988_v35 = vld [vmem:[#allocation9_spill] sm:$0xff]  ;;  %v5114_v63 = vsel %vm807_vm2, %v1098_v14, 2147483647 }
 0x1e0   :  { %v1111_v26 = vsel %vm1047_vm1, %v4670_v49, 16  ;;  %vm1036_vm3 = vcmp.le.f32.partialorder %v6988_v35, %v918_v28  ;;  %6989 = vst [vmem:[#allocation9_spill] sm:$0xff] %v5108_v41  ;;  %v6992_v28 = vld [vmem:[#allocation16_spill] sm:$0xff]  ;;  %v1640_v35 = vshra.s32 %v5114_v63, 16 }
 0x1e1   :  { %v5099_v20 = vsel %vm807_vm2, %v1111_v26, 2147483647  ;;  %v1610_v26 = vshra.s32 %v5102_v31, 16  ;;  %v1100_v55 = vsel %vm1036_vm3, %v4670_v49, 16 }
 0x1e2   :  { %6986 = vst [vmem:[#allocation14_spill] sm:$0xff] %v5099_v20  ;;  %1553 = vmin.xlane.f32.xlu0 %v5095_v1  ;;  %v948_v43 = vpop.xlane.xlu1 %947  ;;  %v1835_v17 = vshra.s32 %v5099_v20, 16  ;;  %v6991_v20 = vld [vmem:[#allocation10_spill] sm:$0xff]  ;;  %v5126_v14 = vsel %vm807_vm2, %v1100_v55, 2147483647 }
 0x1e3   :  { %vm1038_vm4 = vcmp.le.f32.partialorder %v6991_v20, %v924_v7  ;;  %v5136_v7 = vcvt.s32.f32 %v1640_v35  ;;  %v1670_v55 = vshra.s32 %v5126_v14, 16 }
 0x1e4   :  { %v5110_v46 = vcvt.s32.f32 %v1835_v17  ;;  %v5122_v17 = vcvt.s32.f32 %v1610_v26 }
 0x1e5   :  { %v5151_v35 = vcvt.s32.f32 %v1670_v55 }
 0x1e6   :  { %6990 = vst [vmem:[#allocation65_spill] sm:$0xff] %v5110_v46  ;;  %1583 = vmin.xlane.f32.xlu0 %v5108_v41  ;;  %v957_v1 = vpop.xlane.xlu1 %956  ;;  %1838 = vmin.xlane.f32.xlu1 %v5110_v46  ;;  %6993 = vst [vmem:[#allocation10_spill] sm:$0xff] %v5122_v17  ;;  %v1102_v41 = vsel %vm1038_vm4, %v4670_v49, 16 }
 0x1e7   :  { %vm1049_vm5 = vcmp.le.f32.partialorder %v6992_v28, %v957_v1  ;;  %v6995_v1 = vld [vmem:[#allocation11_spill] sm:$0xff]  ;;  %v5142_v28 = vsel %vm807_vm2, %v1102_v41, 2147483647 }
 0x1e8   :  { %v1113_v36 = vsel %vm1049_vm5, %v4670_v49, 16  ;;  %vm1040_vm6 = vcmp.le.f32.partialorder %v6995_v1, %v5017_v45  ;;  %6996 = vst [vmem:[#allocation11_spill] sm:$0xff] %v5136_v7 }
 0x1e9   :  { %v5129_v31 = vsel %vm807_vm2, %v1113_v36, 2147483647  ;;  %v1104_v36 = vsel %vm1040_vm6, %v4670_v49, 16 }
 0x1ea   :  { %6994 = vst [vmem:[#allocation16_spill] sm:$0xff] %v5129_v31  ;;  %1613 = vmin.xlane.f32.xlu0 %v5122_v17  ;;  %v954_v46 = vpop.xlane.xlu1 %953  ;;  %v1865_v20 = vshra.s32 %v5129_v31, 16  ;;  %v6998_v31 = vld [vmem:[#allocation12_spill] sm:$0xff]  ;;  %v5155_v41 = vsel %vm807_vm2, %v1104_v36, 2147483647 }
 0x1eb   :  { %vm1042_vm7 = vcmp.le.f32.partialorder %v6998_v31, %v5048_v3  ;;  %6999 = vst [vmem:[#allocation12_spill] sm:$0xff] %v5151_v35  ;;  %v1730_v55 = vshra.s32 %v5155_v41, 16 }
 0x1ec   :  { %v5138_v26 = vcvt.s32.f32 %v1865_v20  ;;  %v1700_v20 = vshra.s32 %v5142_v28, 16 }
 0x1ee   :  { %6997 = vst [vmem:[#allocation66_spill] sm:$0xff] %v5138_v26  ;;  %1643 = vmin.xlane.f32.xlu0 %v5136_v7  ;;  %v963_v17 = vpop.xlane.xlu1 %962  ;;  %1868 = vmin.xlane.f32.xlu1 %v5138_v26  ;;  %v1106_v7 = vsel %vm1042_vm7, %v4670_v49, 16  ;;  %v5165_v3 = vcvt.s32.f32 %v1700_v20  ;;  %v5179_v20 = vcvt.s32.f32 %v1730_v55 }
 0x1ef   :  { %vm1051_vm8 = vcmp.le.f32.partialorder %v4640_v33, %v963_v17  ;;  %v7001_v33 = vld [vmem:[#allocation13_spill] sm:$0xff]  ;;  %v5171_v36 = vsel %vm807_vm2, %v1106_v7, 2147483647 }
 0x1f0   :  { %v1115_v45 = vsel %vm1051_vm8, %v4670_v49, 16  ;;  %vm1044_vm9 = vcmp.le.f32.partialorder %v7001_v33, %v5077_v30  ;;  %7002 = vst [vmem:[#allocation13_spill] sm:$0xff] %v5165_v3  ;;  %7004 = vst [vmem:[#allocation69_spill] sm:$0xff] %v5171_v36 }
 0x1f1   :  { %v5158_v1 = vsel %vm807_vm2, %v1115_v45, 2147483647  ;;  %v1108_v45 = vsel %vm1044_vm9, %v4670_v49, 16 }
 0x1f2   :  { %7000 = vst [vmem:[#allocation67_spill] sm:$0xff] %v5158_v1  ;;  %1673 = vmin.xlane.f32.xlu0 %v5151_v35  ;;  %v960_v26 = vpop.xlane.xlu1 %959  ;;  %v1895_v31 = vshra.s32 %v5158_v1, 16  ;;  %v7005_v1 = vld [vmem:[#allocation15_spill] sm:$0xff]  ;;  %v5183_v7 = vsel %vm807_vm2, %v1108_v45, 2147483647 }
 0x1f3   :  { %vm1046_vm10 = vcmp.le.f32.partialorder %v7005_v1, %v948_v43  ;;  %7006 = vst [vmem:[#allocation15_spill] sm:$0xff] %v5179_v20  ;;  %v1790_v55 = vshra.s32 %v5183_v7, 16 }
 0x1f4   :  { %v5167_v17 = vcvt.s32.f32 %v1895_v31  ;;  %v1760_v31 = vshra.s32 %v5171_v36, 16 }
 0x1f6   :  { %7003 = vst [vmem:[#allocation68_spill] sm:$0xff] %v5167_v17  ;;  %1703 = vmin.xlane.f32.xlu0 %v5165_v3  ;;  %v969_v35 = vpop.xlane.xlu1 %968  ;;  %1898 = vmin.xlane.f32.xlu1 %v5167_v17  ;;  %v1110_v3 = vsel %vm1046_vm10, %v4670_v49, 16 }
 0x1f7   :  { %vm1053_vm11 = vcmp.le.f32.partialorder %v4654_v22, %v969_v35  ;;  %v7008_v22 = vld [vmem:[#allocation17_spill] sm:$0xff]  ;;  %v5192_v35 = vcvt.s32.f32 %v1760_v31  ;;  %v5198_v45 = vsel %vm807_vm2, %v1110_v3, 2147483647  ;;  %v5206_v31 = vcvt.s32.f32 %v1790_v55 }
 0x1f8   :  { %v1117_v30 = vsel %vm1053_vm11, %v4670_v49, 16  ;;  %vm1048_vm12 = vcmp.le.f32.partialorder %v7008_v22, %v954_v46  ;;  %7010 = vst [vmem:[#allocation71_spill] sm:$0xff] %v5198_v45 }
 0x1f9   :  { %v5186_v33 = vsel %vm807_vm2, %v1117_v30, 2147483647  ;;  %v1112_v30 = vsel %vm1048_vm12, %v4670_v49, 16 }
 0x1fa   :  { %7007 = vst [vmem:[#allocation70_spill] sm:$0xff] %v5186_v33  ;;  %1733 = vmin.xlane.f32.xlu0 %v5179_v20  ;;  %v966_v17 = vpop.xlane.xlu1 %965  ;;  %v1925_v43 = vshra.s32 %v5186_v33, 16  ;;  %v7011_v20 = vld [vmem:[#allocation18_spill] sm:$0xff]  ;;  %v5210_v3 = vsel %vm807_vm2, %v1112_v30, 2147483647 }
 0x1fb   :  { %vm1050_vm13 = vcmp.le.f32.partialorder %v7011_v20, %v960_v26  ;;  %v1850_v55 = vshra.s32 %v5210_v3, 16 }
 0x1fc   :  { %v5194_v1 = vcvt.s32.f32 %v1925_v43  ;;  %v1820_v43 = vshra.s32 %v5198_v45, 16  ;;  %v1114_v33 = vsel %vm1050_vm13, %v4670_v49, 16 }
 0x1fd   :  { %v5225_v30 = vsel %vm807_vm2, %v1114_v33, 2147483647 }
 0x1fe   :  { %7009 = vst [vmem:[#allocation17_spill] sm:$0xff] %v5194_v1  ;;  %1763 = vmin.xlane.f32.xlu0 %v5192_v35  ;;  %v975_v36 = vpop.xlane.xlu1 %974  ;;  %1928 = vmin.xlane.f32.xlu1 %v5194_v1  ;;  %7015 = vst [vmem:[#allocation72_spill] sm:$0xff] %v5225_v30  ;;  %v1880_v33 = vshra.s32 %v5225_v30, 16 }
 0x1ff   :  { %vm1055_vm14 = vcmp.le.f32.partialorder %v4664_v52, %v975_v36  ;;  %v7013_v52 = vld [vmem:[#allocation19_spill] sm:$0xff]  ;;  %v5219_v36 = vcvt.s32.f32 %v1820_v43 }
 0x200   :  { %v1119_v46 = vsel %vm1055_vm14, %v4670_v49, 16  ;;  %vm1052_vm15 = vcmp.le.f32.partialorder %v7013_v52, %v966_v17 }
 0x201   :  { %v5213_v22 = vsel %vm807_vm2, %v1119_v46, 2147483647  ;;  %v1116_v46 = vsel %vm1052_vm15, %v4670_v49, 16 }
 0x202   :  { %7012 = vst [vmem:[#allocation18_spill] sm:$0xff] %v5213_v22  ;;  %1793 = vmin.xlane.f32.xlu0 %v5206_v31  ;;  %v972_v1 = vpop.xlane.xlu1 %971  ;;  %v1955_v26 = vshra.s32 %v5213_v22, 16  ;;  %v5239_v52 = vsel %vm807_vm2, %v1116_v46, 2147483647 }
 0x203   :  { %vm1054_vm1 = vcmp.le.f32.partialorder %v4673_v9, %v972_v1  ;;  %v1910_v46 = vshra.s32 %v5239_v52, 16 }
 0x204   :  { %v5221_v20 = vcvt.s32.f32 %v1955_v26  ;;  %v5235_v26 = vcvt.s32.f32 %v1850_v55 }
 0x206   :  { %7014 = vst [vmem:[#allocation19_spill] sm:$0xff] %v5221_v20  ;;  %1823 = vmin.xlane.f32.xlu0 %v5219_v36  ;;  %v981_v45 = vpop.xlane.xlu1 %980  ;;  %1958 = vmin.xlane.f32.xlu1 %v5221_v20  ;;  %7017 = vst [vmem:[#allocation74_spill] sm:$0xff] %v5235_v26  ;;  %v1118_v20 = vsel %vm1054_vm1, %v4670_v49, 16 }
 0x207   :  { %vm1057_vm3 = vcmp.le.f32.partialorder %v4676_v18, %v981_v45  ;;  %v5232_v17 = vpop.xlane.xlu0 %1148  ;;  %v5250_v45 = vcvt.s32.f32 %v1880_v33 }
 0x208   :  { %7016 = vst [vmem:[#allocation73_spill] sm:$0xff] %v5232_v17  ;;  %v1121_v43 = vsel %vm1057_vm3, %v4670_v49, 16  ;;  %vm1150_vm11 = vcmp.eq.f32.partialorder %v4692_v62, %v5232_v17  ;;  %v7040_v62 = vld [vmem:[#allocation23_spill] sm:$0xff] }
 0x209   :  { %v5242_v22 = vsel %vm807_vm2, %v1121_v43, 2147483647  ;;  %7019 = vst [vmem:[#allocation76_spill] sm:$0xff] %v5250_v45  ;;  %v5256_v43 = vsel %vm807_vm2, %v1118_v20, 2147483647 }
 0x20a   :  { %7018 = vst [vmem:[#allocation75_spill] sm:$0xff] %v5242_v22  ;;  %1853 = vmin.xlane.f32.xlu0 %v5235_v26  ;;  %v978_v9 = vpop.xlane.xlu1 %977  ;;  %v1985_v18 = vshra.s32 %v5242_v22, 16  ;;  %7021 = vst [vmem:[#allocation78_spill] sm:$0xff] %v5256_v43 }
 0x20b   :  { %vm1056_vm4 = vcmp.le.f32.partialorder %v4695_v19, %v978_v9  ;;  %v5248_v1 = vpop.xlane.xlu0 %1133  ;;  %v5265_v9 = vcvt.s32.f32 %v1910_v46 }
 0x20c   :  { %v5252_v55 = vcvt.s32.f32 %v1985_v18  ;;  %v1120_v30 = vsel %vm1056_vm4, %v4670_v49, 16  ;;  %v1940_v18 = vshra.s32 %v5256_v43, 16  ;;  %vm1135_vm13 = vcmp.eq.f32.partialorder %v7040_v62, %v5248_v1 }
 0x20d   :  { %7022 = vst [vmem:[#allocation79_spill] sm:$0xff] %v5265_v9  ;;  %v5269_v20 = vsel %vm807_vm2, %v1120_v30, 2147483647  ;;  %v1234_v62 = vand.u32 65535, %v4763_v38 }
 0x20e   :  { %7020 = vst [vmem:[#allocation77_spill] sm:$0xff] %v5252_v55  ;;  %1883 = vmin.xlane.f32.xlu0 %v5250_v45  ;;  %v987_v26 = vpop.xlane.xlu1 %986  ;;  %1988 = vmin.xlane.f32.xlu1 %v5252_v55  ;;  %7023 = vst [vmem:[#allocation80_spill] sm:$0xff] %v5269_v20  ;;  %v5280_v46 = vcvt.s32.f32 %v1940_v18  ;;  %v1970_v30 = vshra.s32 %v5269_v20, 16 }
 0x20f   :  { %vm1059_vm5 = vcmp.le.f32.partialorder %v4706_v15, %v987_v26  ;;  %v5262_v19 = vpop.xlane.xlu0 %1178  ;;  %v1236_v38 = vcvt.s32.f32 %v1234_v62 }
 0x210   :  { %v1123_v33 = vsel %vm1059_vm5, %v4670_v49, 16  ;;  %7025 = vst [vmem:[#allocation82_spill] sm:$0xff] %v5280_v46  ;;  %v5294_v18 = vcvt.s32.f32 %v1970_v30  ;;  %vm1180_vm12 = vcmp.eq.f32.partialorder %v4726_v13, %v5262_v19  ;;  %v7043_v13 = vld [vmem:[#allocation26_spill] sm:$0xff] }
 0x211   :  { %v5272_v22 = vsel %vm807_vm2, %v1123_v33, 2147483647 }
 0x212   :  { %7024 = vst [vmem:[#allocation81_spill] sm:$0xff] %v5272_v22  ;;  %1913 = vmin.xlane.f32.xlu0 %v5265_v9  ;;  %v984_v45 = vpop.xlane.xlu1 %983  ;;  %v2015_v55 = vshra.s32 %v5272_v22, 16  ;;  %7028 = vst [vmem:[#allocation85_spill] sm:$0xff] %v5294_v18 }
 0x213   :  { %vm1058_vm6 = vcmp.le.f32.partialorder %v4729_v16, %v984_v45  ;;  %v5277_v15 = vpop.xlane.xlu0 %1163 }
 0x214   :  { %v1122_v26 = vsel %vm1058_vm6, %v4670_v49, 16  ;;  %v5282_v43 = vcvt.s32.f32 %v2015_v55  ;;  %vm1165_vm15 = vcmp.eq.f32.partialorder %v7043_v13, %v5277_v15 }
 0x215   :  { %v5286_v33 = vsel %vm807_vm2, %v1122_v26, 2147483647 }
 0x216   :  { %7026 = vst [vmem:[#allocation83_spill] sm:$0xff] %v5282_v43  ;;  %7027 = vst [vmem:[#allocation84_spill] sm:$0xff] %v5286_v33  ;;  %1943 = vmin.xlane.f32.xlu0 %v5280_v46  ;;  %v993_v9 = vpop.xlane.xlu1 %992  ;;  %2018 = vmin.xlane.f32.xlu1 %v5282_v43  ;;  %v2000_v55 = vshra.s32 %v5286_v33, 16 }
 0x217   :  { %vm1061_vm7 = vcmp.le.f32.partialorder %v4738_v23, %v993_v9  ;;  %v5291_v16 = vpop.xlane.xlu0 %1208 }
 0x218   :  { %v1125_v45 = vsel %vm1061_vm7, %v4670_v49, 16  ;;  %v5306_v9 = vcvt.s32.f32 %v2000_v55  ;;  %vm1210_vm14 = vcmp.eq.f32.partialorder %v4756_v59, %v5291_v16  ;;  %v7045_v59 = vld [vmem:[#allocation28_spill] sm:$0xff] }
 0x219   :  { %v5298_v22 = vsel %vm807_vm2, %v1125_v45, 2147483647 }
 0x21a   :  { %7029 = vst [vmem:[#allocation86_spill] sm:$0xff] %v5298_v22  ;;  %1973 = vmin.xlane.f32.xlu0 %v5294_v18  ;;  %v990_v26 = vpop.xlane.xlu1 %989  ;;  %v2045_v46 = vshra.s32 %v5298_v22, 16  ;;  %7030 = vst [vmem:[#allocation87_spill] sm:$0xff] %v5306_v9  ;;  %v7035_v22 = vld [vmem:[#allocation21_spill] sm:$0xff] }
 0x21b   :  { %vm1060_vm8 = vcmp.le.f32.partialorder %v4759_v11, %v990_v26  ;;  %v5303_v43 = vpop.xlane.xlu0 %1193 }
 0x21c   :  { %v1124_v23 = vsel %vm1060_vm8, %v4670_v49, 16  ;;  %v5308_v30 = vcvt.s32.f32 %v2045_v46  ;;  %vm1195_vm3 = vcmp.eq.f32.partialorder %v7045_v59, %v5303_v43 }
 0x21d   :  { %v5311_v33 = vsel %vm807_vm2, %v1124_v23, 2147483647 }
 0x21e   :  { %7031 = vst [vmem:[#allocation88_spill] sm:$0xff] %v5308_v30  ;;  %7032 = vst [vmem:[#allocation89_spill] sm:$0xff] %v5311_v33  ;;  %2003 = vmin.xlane.f32.xlu0 %v5306_v9  ;;  %v999_v45 = vpop.xlane.xlu1 %998  ;;  %2048 = vmin.xlane.f32.xlu1 %v5308_v30  ;;  %v2030_v18 = vshra.s32 %v5311_v33, 16  ;;  %v1144_v30 = vand.u32 65535, %v7035_v22  ;;  %v1129_v22 = vand.u32 65535, %v4698_v37  ;;  %v7042_v37 = vld [vmem:[#allocation25_spill] sm:$0xff] }
 0x21f   :  { %vm1063_vm9 = vcmp.le.f32.partialorder %v4768_v5, %v999_v45  ;;  %v5317_v11 = vpop.xlane.xlu0 %1238  ;;  %v1204_v17 = vand.u32 65535, %v7042_v37 }
 0x220   :  { %v1127_v26 = vsel %vm1063_vm9, %v4670_v49, 16  ;;  %v5320_v55 = vcvt.s32.f32 %v2030_v18  ;;  %vm1240_vm1 = vcmp.eq.f32.partialorder %v4788_v39, %v5317_v11  ;;  %v7049_v39 = vld [vmem:[#allocation32_spill] sm:$0xff] }
 0x221   :  { %v5323_v46 = vsel %vm807_vm2, %v1127_v26, 2147483647  ;;  %v1206_v37 = vcvt.s32.f32 %v1204_v17  ;;  %v1241_v17 = vsel %vm1240_vm1, %v1236_v38, inf  ;;  %v7052_v38 = vld [vmem:[#allocation35_spill] sm:$0xff] }
 0x222   :  { %7033 = vst [vmem:[#allocation90_spill] sm:$0xff] %v5320_v55  ;;  %7034 = vst [vmem:[#allocation91_spill] sm:$0xff] %v5323_v46  ;;  %2033 = vmin.xlane.f32.xlu0 %v5320_v55  ;;  %v996_v23 = vpop.xlane.xlu1 %995  ;;  %v2075_v9 = vshra.s32 %v5323_v46, 16  ;;  %v7038_v55 = vld [vmem:[#allocation22_spill] sm:$0xff]  ;;  %v1146_v46 = vcvt.s32.f32 %v1144_v30  ;;  %v1131_v30 = vcvt.s32.f32 %v1129_v22 }
 0x223   :  { %vm1062_vm10 = vcmp.le.f32.partialorder %v4786_v29, %v996_v23  ;;  %v5329_v33 = vpop.xlane.xlu0 %1223  ;;  %v1174_v29 = vand.u32 65535, %v7038_v55 }
 0x224   :  { %v1126_v5 = vsel %vm1062_vm10, %v4670_v49, 16  ;;  %v5332_v45 = vcvt.s32.f32 %v2075_v9  ;;  %v1151_v9 = vsel %vm1150_vm11, %v1146_v46, inf  ;;  %v1136_v20 = vsel %vm1135_vm13, %v1131_v30, inf  ;;  %v7044_v46 = vld [vmem:[#allocation27_spill] sm:$0xff]  ;;  %v7047_v30 = vld [vmem:[#allocation30_spill] sm:$0xff] }
 0x225   :  { %v5335_v18 = vsel %vm807_vm2, %v1126_v5, 2147483647  ;;  %v7041_v5 = vld [vmem:[#allocation24_spill] sm:$0xff] }
 0x226   :  { %7036 = vst [vmem:[#allocation21_spill] sm:$0xff] %v5332_v45  ;;  %7037 = vst [vmem:[#allocation92_spill] sm:$0xff] %v5335_v18  ;;  %2078 = vmin.xlane.f32.xlu1 %v5332_v45  ;;  %v2060_v26 = vshra.s32 %v5335_v18, 16  ;;  %v1159_v45 = vand.u32 65535, %v7041_v5  ;;  %v1176_v18 = vcvt.s32.f32 %v1174_v29  ;;  %v1211_v29 = vsel %vm1210_vm14, %v1206_v37, inf }
 0x227   :  { %v5343_v23 = vpop.xlane.xlu0 %1268  ;;  %v1249_v37 = vand.u32 65535, %v7049_v39 }
 0x228   :  { %v5345_v49 = vcvt.s32.f32 %v2060_v26  ;;  %v1181_v26 = vsel %vm1180_vm12, %v1176_v18, inf  ;;  %vm1270_vm4 = vcmp.eq.f32.partialorder %v4808_v48, %v5343_v23  ;;  %v7051_v48 = vld [vmem:[#allocation34_spill] sm:$0xff] }
 0x22a   :  { %7039 = vst [vmem:[#allocation22_spill] sm:$0xff] %v5345_v49  ;;  %1152 = vmin.xlane.f32.xlu1 %v1151_v9  ;;  %2063 = vmin.xlane.f32.xlu0 %v5345_v49  ;;  %v1189_v9 = vand.u32 65535, %v7044_v46  ;;  %v1161_v49 = vcvt.s32.f32 %v1159_v45 }
 0x22b   :  { %v5354_v55 = vpop.xlane.xlu0 %1253 }
 0x22c   :  { %v1166_v22 = vsel %vm1165_vm15, %v1161_v49, inf  ;;  %v1191_v46 = vcvt.s32.f32 %v1189_v9  ;;  %v7048_v49 = vld [vmem:[#allocation31_spill] sm:$0xff]  ;;  %vm1255_vm7 = vcmp.eq.f32.partialorder %v7051_v48, %v5354_v55 }
 0x22d   :  { %vm1225_vm5 = vcmp.eq.f32.partialorder %v7048_v49, %v5329_v33 }
 0x22e   :  { %1182 = vmin.xlane.f32.xlu1 %v1181_v26  ;;  %1137 = vmin.xlane.f32.xlu0 %v1136_v20  ;;  %v7046_v20 = vld [vmem:[#allocation29_spill] sm:$0xff]  ;;  %v1264_v26 = vand.u32 65535, %v7047_v30  ;;  %v1196_v45 = vsel %vm1195_vm3, %v1191_v46, inf  ;;  %v1279_v46 = vand.u32 65535, %v7052_v38 }
 0x22f   :  { %v5362_v5 = vpop.xlane.xlu0 %1298  ;;  %v1219_v18 = vand.u32 65535, %v7046_v20 }
 0x230   :  { %v1266_v20 = vcvt.s32.f32 %v1264_v26  ;;  %vm1300_vm6 = vcmp.eq.f32.partialorder %v4830_v34, %v5362_v5  ;;  %v7054_v34 = vld [vmem:[#allocation37_spill] sm:$0xff]  ;;  %v1281_v38 = vcvt.s32.f32 %v1279_v46 }
 0x231   :  { %v1221_v30 = vcvt.s32.f32 %v1219_v18 }
 0x232   :  { %1212 = vmin.xlane.f32.xlu1 %v1211_v29  ;;  %1167 = vmin.xlane.f32.xlu0 %v1166_v22  ;;  %v7050_v29 = vld [vmem:[#allocation33_spill] sm:$0xff]  ;;  %v1271_v62 = vsel %vm1270_vm4, %v1266_v20, inf  ;;  %v7055_v20 = vld [vmem:[#allocation38_spill] sm:$0xff] }
 0x233   :  { %v5370_v13 = vpop.xlane.xlu0 %1283  ;;  %v1294_v22 = vand.u32 65535, %v7050_v29  ;;  %v1226_v9 = vsel %vm1225_vm5, %v1221_v30, inf  ;;  %v1251_v29 = vcvt.s32.f32 %v1249_v37  ;;  %v1309_v30 = vand.u32 65535, %v7055_v20 }
 0x234   :  { %vm1285_vm9 = vcmp.eq.f32.partialorder %v7054_v34, %v5370_v13  ;;  %v1414_v34 = vand.u32 65535, %v4935_v2  ;;  %v1444_v2 = vand.u32 65535, %v4975_v6  ;;  %v1474_v6 = vand.u32 65535, %v5013_v32 }
 0x235   :  { %v1296_v39 = vcvt.s32.f32 %v1294_v22  ;;  %v1256_v18 = vsel %vm1255_vm7, %v1251_v29, inf  ;;  %v1286_v37 = vsel %vm1285_vm9, %v1281_v38, inf  ;;  %v1311_v29 = vcvt.s32.f32 %v1309_v30 }
 0x236   :  { %1242 = vmin.xlane.f32.xlu1 %v1241_v17  ;;  %1197 = vmin.xlane.f32.xlu0 %v1196_v45  ;;  %v7053_v17 = vld [vmem:[#allocation36_spill] sm:$0xff] }
 0x237   :  { %v5378_v59 = vpop.xlane.xlu0 %1328  ;;  %v1324_v45 = vand.u32 65535, %v7053_v17  ;;  %v1301_v26 = vsel %vm1300_vm6, %v1296_v39, inf  ;;  %v1384_v17 = vand.u32 65535, %v4896_v53 }
 0x238   :  { %vm1330_vm8 = vcmp.eq.f32.partialorder %v4852_v0, %v5378_v59  ;;  %v1339_v0 = vand.u32 65535, %v4876_v47 }
 0x239   :  { %v1326_v48 = vcvt.s32.f32 %v1324_v45 }
 0x23a   :  { %1272 = vmin.xlane.f32.xlu1 %v1271_v62  ;;  %1227 = vmin.xlane.f32.xlu0 %v1226_v9  ;;  %v1354_v62 = vand.u32 65535, %v4859_v61 }
 0x23b   :  { %v5386_v49 = vpop.xlane.xlu0 %1313  ;;  %v1331_v22 = vsel %vm1330_vm8, %v1326_v48, inf }
 0x23c   :  { %vm1315_vm11 = vcmp.eq.f32.partialorder %v4867_v25, %v5386_v49  ;;  %v1356_v61 = vcvt.s32.f32 %v1354_v62  ;;  %v1386_v25 = vcvt.s32.f32 %v1384_v17  ;;  %v5417_v62 = vpop.xlane.xlu1 %1508 }
 0x23d   :  { %v1316_v46 = vsel %vm1315_vm11, %v1311_v29, inf }
 0x23e   :  { %1302 = vmin.xlane.f32.xlu1 %v1301_v26  ;;  %1257 = vmin.xlane.f32.xlu0 %v1256_v18  ;;  %v1341_v18 = vcvt.s32.f32 %v1339_v0  ;;  %v1429_v0 = vand.u32 65535, %v4994_v60  ;;  %v7056_v60 = vld [vmem:[#allocation39_spill] sm:$0xff] }
 0x23f   :  { %v5394_v9 = vpop.xlane.xlu0 %1358 }
 0x240   :  { %vm1360_vm10 = vcmp.eq.f32.partialorder %v4887_v40, %v5394_v9  ;;  %v1369_v40 = vand.u32 65535, %v4917_v4  ;;  %v1399_v4 = vand.u32 65535, %v4956_v51 }
 0x241   :  { %v1361_v45 = vsel %vm1360_vm10, %v1356_v61, inf  ;;  %v1446_v61 = vcvt.s32.f32 %v1444_v2 }
 0x242   :  { %1332 = vmin.xlane.f32.xlu1 %v1331_v22  ;;  %1287 = vmin.xlane.f32.xlu0 %v1286_v37  ;;  %v1371_v30 = vcvt.s32.f32 %v1369_v40  ;;  %v1401_v37 = vcvt.s32.f32 %v1399_v4  ;;  %v1504_v40 = vand.u32 65535, %v7056_v60  ;;  %v7063_v60 = vld [vmem:[#allocation60_spill] sm:$0xff] }
 0x243   :  { %v5402_v39 = vpop.xlane.xlu0 %1343 }
 0x244   :  { %vm1345_vm12 = vcmp.eq.f32.partialorder %v4908_v56, %v5402_v39  ;;  %v1506_v4 = vcvt.s32.f32 %v1504_v40 }
 0x245   :  { %v1346_v53 = vsel %vm1345_vm12, %v1341_v18, inf }
 0x246   :  { %1362 = vmin.xlane.f32.xlu1 %v1361_v45  ;;  %1317 = vmin.xlane.f32.xlu0 %v1316_v46 }
 0x247   :  { %v5407_v26 = vpop.xlane.xlu0 %1388 }
 0x248   :  { %vm1390_vm13 = vcmp.eq.f32.partialorder %v4926_v54, %v5407_v26  ;;  %v1416_v54 = vcvt.s32.f32 %v1414_v34 }
 0x249   :  { %v1391_v47 = vsel %vm1390_vm13, %v1386_v25, inf  ;;  %v1459_v25 = vand.u32 65535, %v5029_v27 }
 0x24a   :  { %1392 = vmin.xlane.f32.xlu1 %v1391_v47  ;;  %1347 = vmin.xlane.f32.xlu0 %v1346_v53  ;;  %v7057_v53 = vld [vmem:[#allocation40_spill] sm:$0xff] }
 0x24b   :  { %v5412_v20 = vpop.xlane.xlu0 %1373  ;;  %vm1510_vm6 = vcmp.eq.f32.partialorder %v7057_v53, %v5417_v62  ;;  %v1461_v27 = vcvt.s32.f32 %v1459_v25 }
 0x24c   :  { %vm1375_vm14 = vcmp.eq.f32.partialorder %v4947_v10, %v5412_v20  ;;  %v5428_v10 = vpop.xlane.xlu1 %1538 }
 0x24d   :  { %v1376_v56 = vsel %vm1375_vm14, %v1371_v30, inf  ;;  %v1489_v30 = vand.u32 65535, %v5044_v44  ;;  %vm1540_vm8 = vcmp.eq.f32.partialorder %v4889_v21, %v5428_v10  ;;  %v7062_v21 = vld [vmem:[#allocation44_spill] sm:$0xff] }
 0x24e   :  { %1377 = vmin.xlane.f32.xlu0 %v1376_v56 }
 0x24f   :  { %v5419_v48 = vpop.xlane.xlu0 %1418 }
 0x250   :  { %vm1420_vm15 = vcmp.eq.f32.partialorder %v4966_v50, %v5419_v48  ;;  %v5436_v29 = vpop.xlane.xlu1 %1568 }
 0x251   :  { %v1421_v38 = vsel %vm1420_vm15, %v1416_v54, inf }
 0x252   :  { %1422 = vmin.xlane.f32.xlu1 %v1421_v38  ;;  %v7059_v38 = vld [vmem:[#allocation42_spill] sm:$0xff] }
 0x253   :  { %v5424_v22 = vpop.xlane.xlu0 %1403  ;;  %v1564_v2 = vand.u32 65535, %v7059_v38 }
 0x254   :  { %vm1405_vm1 = vcmp.eq.f32.partialorder %v4985_v12, %v5424_v22  ;;  %v1431_v12 = vcvt.s32.f32 %v1429_v0  ;;  %v5448_v32 = vpop.xlane.xlu1 %1598  ;;  %v1491_v0 = vcvt.s32.f32 %v1489_v30  ;;  %v7065_v30 = vld [vmem:[#allocation45_spill] sm:$0xff] }
 0x255   :  { %v1406_v51 = vsel %vm1405_vm1, %v1401_v37, inf  ;;  %v1519_v37 = vand.u32 65535, %v5058_v42  ;;  %v1549_v42 = vand.u32 65535, %v7063_v60  ;;  %vm1600_vm12 = vcmp.eq.f32.partialorder %v7065_v30, %v5448_v32  ;;  %v7073_v30 = vld [vmem:[#allocation49_spill] sm:$0xff] }
 0x256   :  { %1407 = vmin.xlane.f32.xlu0 %v1406_v51 }
 0x257   :  { %v5431_v17 = vpop.xlane.xlu0 %1448  ;;  %v1521_v25 = vcvt.s32.f32 %v1519_v37  ;;  %v1551_v37 = vcvt.s32.f32 %v1549_v42  ;;  %v7071_v42 = vld [vmem:[#allocation48_spill] sm:$0xff] }
 0x258   :  { %vm1450_vm3 = vcmp.eq.f32.partialorder %v5004_v24, %v5431_v17  ;;  %v1476_v24 = vcvt.s32.f32 %v1474_v6  ;;  %v5462_v51 = vpop.xlane.xlu1 %1628 }
 0x259   :  { %v1451_v50 = vsel %vm1450_vm3, %v1446_v61, inf }
 0x25a   :  { %1452 = vmin.xlane.f32.xlu1 %v1451_v50  ;;  %v7060_v50 = vld [vmem:[#allocation58_spill] sm:$0xff] }
 0x25b   :  { %v5438_v45 = vpop.xlane.xlu0 %1433 }
 0x25c   :  { %vm1435_vm4 = vcmp.eq.f32.partialorder %v5023_v8, %v5438_v45  ;;  %v7058_v8 = vld [vmem:[#allocation41_spill] sm:$0xff]  ;;  %v5476_v53 = vpop.xlane.xlu1 %1658 }
 0x25d   :  { %v1436_v46 = vsel %vm1435_vm4, %v1431_v12, inf  ;;  %v1534_v34 = vand.u32 65535, %v7058_v8  ;;  %v7061_v12 = vld [vmem:[#allocation43_spill] sm:$0xff]  ;;  %vm1660_vm1 = vcmp.eq.f32.partialorder %v7073_v30, %v5476_v53  ;;  %v7079_v30 = vld [vmem:[#allocation53_spill] sm:$0xff] }
 0x25e   :  { %1437 = vmin.xlane.f32.xlu0 %v1436_v46  ;;  %vm1570_vm10 = vcmp.eq.f32.partialorder %v7061_v12, %v5436_v29  ;;  %v1594_v46 = vand.u32 65535, %v7062_v21 }
 0x25f   :  { %v5444_v18 = vpop.xlane.xlu0 %1478  ;;  %v1536_v61 = vcvt.s32.f32 %v1534_v34 }
 0x260   :  { %vm1480_vm5 = vcmp.eq.f32.partialorder %v5037_v58, %v5444_v18  ;;  %v1511_v58 = vsel %vm1510_vm6, %v1506_v4, inf  ;;  %v5489_v21 = vpop.xlane.xlu1 %1688 }
 0x261   :  { %v1481_v47 = vsel %vm1480_vm5, %v1476_v24, inf  ;;  %v1541_v6 = vsel %vm1540_vm8, %v1536_v61, inf  ;;  %v1566_v24 = vcvt.s32.f32 %v1564_v2  ;;  %v1596_v2 = vcvt.s32.f32 %v1594_v46 }
 0x262   :  { %1482 = vmin.xlane.f32.xlu1 %v1481_v47  ;;  %v7064_v47 = vld [vmem:[#allocation61_spill] sm:$0xff]  ;;  %v1654_v46 = vand.u32 65535, %v7071_v42  ;;  %v7077_v42 = vld [vmem:[#allocation52_spill] sm:$0xff] }
 0x263   :  { %v5454_v56 = vpop.xlane.xlu0 %1463  ;;  %v1571_v34 = vsel %vm1570_vm10, %v1566_v24, inf }
 0x264   :  { %vm1465_vm7 = vcmp.eq.f32.partialorder %v5052_v57, %v5454_v56 }
 0x265   :  { %v1466_v54 = vsel %vm1465_vm7, %v1461_v27, inf  ;;  %v7066_v27 = vld [vmem:[#allocation46_spill] sm:$0xff] }
 0x266   :  { %1467 = vmin.xlane.f32.xlu0 %v1466_v54  ;;  %1512 = vmin.xlane.f32.xlu1 %v1511_v58  ;;  %v1624_v4 = vand.u32 65535, %v7066_v27  ;;  %v7067_v54 = vld [vmem:[#allocation63_spill] sm:$0xff] }
 0x267   :  { %v5464_v44 = vpop.xlane.xlu0 %1493  ;;  %v1579_v58 = vand.u32 65535, %v7067_v54 }
 0x268   :  { %vm1495_vm9 = vcmp.eq.f32.partialorder %v7060_v50, %v5464_v44  ;;  %v1601_v50 = vsel %vm1600_vm12, %v1596_v2, inf  ;;  %v1626_v24 = vcvt.s32.f32 %v1624_v4  ;;  %v1639_v2 = vand.u32 65535, %v5114_v63 }
 0x269   :  { %v1496_v57 = vsel %vm1495_vm9, %v1491_v0, inf  ;;  %v7068_v0 = vld [vmem:[#allocation8_spill] sm:$0xff]  ;;  %v1669_v63 = vand.u32 65535, %v5126_v14  ;;  %v1699_v14 = vand.u32 65535, %v5142_v28  ;;  %v1729_v28 = vand.u32 65535, %v5155_v41 }
 0x26a   :  { %1497 = vmin.xlane.f32.xlu0 %v1496_v57  ;;  %1542 = vmin.xlane.f32.xlu1 %v1541_v6  ;;  %v7069_v57 = vld [vmem:[#allocation47_spill] sm:$0xff]  ;;  %v7070_v6 = vld [vmem:[#allocation64_spill] sm:$0xff] }
 0x26b   :  { %v5472_v40 = vpop.xlane.xlu0 %1523  ;;  %vm1630_vm14 = vcmp.eq.f32.partialorder %v7069_v57, %v5462_v51  ;;  %v1609_v12 = vand.u32 65535, %v7070_v6  ;;  %v7076_v6 = vld [vmem:[#allocation51_spill] sm:$0xff] }
 0x26c   :  { %vm1525_vm11 = vcmp.eq.f32.partialorder %v7064_v47, %v5472_v40  ;;  %v7072_v47 = vld [vmem:[#allocation9_spill] sm:$0xff]  ;;  %vm1690_vm4 = vcmp.eq.f32.partialorder %v7076_v6, %v5489_v21 }
 0x26d   :  { %v1526_v8 = vsel %vm1525_vm11, %v1521_v25, inf  ;;  %v1581_v25 = vcvt.s32.f32 %v1579_v58  ;;  %v1611_v54 = vcvt.s32.f32 %v1609_v12  ;;  %v7074_v58 = vld [vmem:[#allocation50_spill] sm:$0xff]  ;;  %v1641_v12 = vcvt.s32.f32 %v1639_v2 }
 0x26e   :  { %1527 = vmin.xlane.f32.xlu0 %v1526_v8  ;;  %1572 = vmin.xlane.f32.xlu1 %v1571_v34  ;;  %v1631_v34 = vsel %vm1630_vm14, %v1626_v24, inf  ;;  %v1684_v4 = vand.u32 65535, %v7074_v58  ;;  %v1671_v2 = vcvt.s32.f32 %v1669_v63  ;;  %v1701_v63 = vcvt.s32.f32 %v1699_v14 }
 0x26f   :  { %v5482_v38 = vpop.xlane.xlu0 %1553  ;;  %v1731_v14 = vcvt.s32.f32 %v1729_v28 }
 0x270   :  { %vm1555_vm13 = vcmp.eq.f32.partialorder %v7068_v0, %v5482_v38  ;;  %v7075_v0 = vld [vmem:[#allocation10_spill] sm:$0xff]  ;;  %v1686_v24 = vcvt.s32.f32 %v1684_v4 }
 0x271   :  { %v1556_v61 = vsel %vm1555_vm13, %v1551_v37, inf  ;;  %v1656_v37 = vcvt.s32.f32 %v1654_v46  ;;  %v1714_v46 = vand.u32 65535, %v7077_v42  ;;  %v7080_v4 = vld [vmem:[#allocation54_spill] sm:$0xff] }
 0x272   :  { %1557 = vmin.xlane.f32.xlu0 %v1556_v61  ;;  %1602 = vmin.xlane.f32.xlu1 %v1601_v50  ;;  %v5504_v61 = vpop.xlane.xlu1 %1718 }
 0x273   :  { %v5491_v60 = vpop.xlane.xlu0 %1583  ;;  %v1661_v57 = vsel %vm1660_vm1, %v1656_v37, inf  ;;  %vm1720_vm6 = vcmp.eq.f32.partialorder %v7079_v30, %v5504_v61  ;;  %v1716_v58 = vcvt.s32.f32 %v1714_v46 }
 0x274   :  { %vm1585_vm15 = vcmp.eq.f32.partialorder %v7072_v47, %v5491_v60  ;;  %v7078_v47 = vld [vmem:[#allocation11_spill] sm:$0xff] }
 0x275   :  { %v1586_v8 = vsel %vm1585_vm15, %v1581_v25, inf  ;;  %v1721_v6 = vsel %vm1720_vm6, %v1716_v58, inf  ;;  %v7085_v58 = vld [vmem:[#allocation57_spill] sm:$0xff] }
 0x276   :  { %1587 = vmin.xlane.f32.xlu0 %v1586_v8  ;;  %1632 = vmin.xlane.f32.xlu1 %v1631_v34  ;;  %v1691_v34 = vsel %vm1690_vm4, %v1686_v24, inf }
 0x277   :  { %v5498_v27 = vpop.xlane.xlu0 %1613 }
 0x278   :  { %vm1615_vm3 = vcmp.eq.f32.partialorder %v7075_v0, %v5498_v27  ;;  %v1744_v0 = vand.u32 65535, %v7080_v4 }
 0x279   :  { %v1616_v50 = vsel %vm1615_vm3, %v1611_v54, inf  ;;  %v5516_v54 = vpop.xlane.xlu1 %1748 }
 0x27a   :  { %1617 = vmin.xlane.f32.xlu0 %v1616_v50  ;;  %1662 = vmin.xlane.f32.xlu1 %v1661_v57  ;;  %v7081_v50 = vld [vmem:[#allocation12_spill] sm:$0xff]  ;;  %v1746_v46 = vcvt.s32.f32 %v1744_v0 }
 0x27b   :  { %v5508_v25 = vpop.xlane.xlu0 %1643 }
 0x27c   :  { %vm1645_vm5 = vcmp.eq.f32.partialorder %v7078_v47, %v5508_v25  ;;  %v7083_v47 = vld [vmem:[#allocation56_spill] sm:$0xff] }
 0x27d   :  { %v1646_v8 = vsel %vm1645_vm5, %v1641_v12, inf  ;;  %v7082_v12 = vld [vmem:[#allocation55_spill] sm:$0xff]  ;;  %v5526_v24 = vpop.xlane.xlu1 %1778 }
 0x27e   :  { %1647 = vmin.xlane.f32.xlu0 %v1646_v8  ;;  %1692 = vmin.xlane.f32.xlu1 %v1691_v34  ;;  %vm1750_vm8 = vcmp.eq.f32.partialorder %v7082_v12, %v5516_v54  ;;  %v1774_v8 = vand.u32 65535, %v7083_v47  ;;  %v7084_v34 = vld [vmem:[#allocation13_spill] sm:$0xff]  ;;  %vm1780_vm10 = vcmp.eq.f32.partialorder %v7085_v58, %v5526_v24  ;;  %v7089_v47 = vld [vmem:[#allocation15_spill] sm:$0xff]  ;;  %v1789_v58 = vand.u32 65535, %v5183_v7 }
 0x27f   :  { %v5518_v37 = vpop.xlane.xlu0 %1673 }
 0x280   :  { %vm1675_vm7 = vcmp.eq.f32.partialorder %v7081_v50, %v5518_v37  ;;  %v1776_v0 = vcvt.s32.f32 %v1774_v8 }
 0x281   :  { %v1676_v57 = vsel %vm1675_vm7, %v1671_v2, inf  ;;  %v1751_v2 = vsel %vm1750_vm8, %v1746_v46, inf  ;;  %v5536_v4 = vpop.xlane.xlu1 %1808 }
 0x282   :  { %1677 = vmin.xlane.f32.xlu0 %v1676_v57  ;;  %1722 = vmin.xlane.f32.xlu1 %v1721_v6  ;;  %7086 = vst [vmem:[#allocation23_spill] sm:$0xff] %v5536_v4  ;;  %v7087_v57 = vld [vmem:[#allocation69_spill] sm:$0xff]  ;;  %v7088_v6 = vld [vmem:[#allocation59_spill] sm:$0xff]  ;;  %v1781_v46 = vsel %vm1780_vm10, %v1776_v0, inf }
 0x283   :  { %v5528_v42 = vpop.xlane.xlu0 %1703  ;;  %v1759_v41 = vand.u32 65535, %v7087_v57  ;;  %v1804_v12 = vand.u32 65535, %v7088_v6  ;;  %v7091_v57 = vld [vmem:[#allocation14_spill] sm:$0xff] }
 0x284   :  { %vm1705_vm9 = vcmp.eq.f32.partialorder %v7084_v34, %v5528_v42  ;;  %v7090_v34 = vld [vmem:[#allocation62_spill] sm:$0xff]  ;;  %v1834_v6 = vand.u32 65535, %v7091_v57 }
 0x285   :  { %v1706_v30 = vsel %vm1705_vm9, %v1701_v63, inf  ;;  %vm1810_vm12 = vcmp.eq.f32.partialorder %v7090_v34, %v5536_v4  ;;  %v1761_v28 = vcvt.s32.f32 %v1759_v41  ;;  %v1806_v8 = vcvt.s32.f32 %v1804_v12  ;;  %v7095_v34 = vld [vmem:[#allocation71_spill] sm:$0xff]  ;;  %v7096_v4 = vld [vmem:[#allocation16_spill] sm:$0xff] }
 0x286   :  { %1707 = vmin.xlane.f32.xlu0 %v1706_v30  ;;  %1752 = vmin.xlane.f32.xlu1 %v1751_v2  ;;  %v5546_v30 = vpop.xlane.xlu1 %1838  ;;  %v1791_v41 = vcvt.s32.f32 %v1789_v58  ;;  %v1836_v12 = vcvt.s32.f32 %v1834_v6  ;;  %v1819_v7 = vand.u32 65535, %v7095_v34  ;;  %v1864_v57 = vand.u32 65535, %v7096_v4  ;;  %v7099_v34 = vld [vmem:[#allocation67_spill] sm:$0xff] }
 0x287   :  { %v5538_v50 = vpop.xlane.xlu0 %1733  ;;  %v1811_v0 = vsel %vm1810_vm12, %v1806_v8, inf  ;;  %v7097_v8 = vld [vmem:[#allocation66_spill] sm:$0xff]  ;;  %v1894_v4 = vand.u32 65535, %v7099_v34 }
 0x288   :  { %vm1735_vm11 = vcmp.eq.f32.partialorder %v7089_v47, %v5538_v50  ;;  %v7092_v47 = vld [vmem:[#allocation65_spill] sm:$0xff]  ;;  %v1821_v58 = vcvt.s32.f32 %v1819_v7  ;;  %v1866_v6 = vcvt.s32.f32 %v1864_v57 }
 0x289   :  { %v1736_v63 = vsel %vm1735_vm11, %v1731_v14, inf  ;;  %vm1840_vm14 = vcmp.eq.f32.partialorder %v7092_v47, %v5546_v30  ;;  %v1849_v47 = vand.u32 65535, %v5210_v3  ;;  %v1896_v57 = vcvt.s32.f32 %v1894_v4 }
 0x28a   :  { %1737 = vmin.xlane.f32.xlu0 %v1736_v63  ;;  %1782 = vmin.xlane.f32.xlu1 %v1781_v46  ;;  %v5556_v63 = vpop.xlane.xlu1 %1868 }
 0x28b   :  { %v5548_v2 = vpop.xlane.xlu0 %1763  ;;  %7093 = vst [vmem:[#allocation24_spill] sm:$0xff] %v5556_v63  ;;  %vm1870_vm1 = vcmp.eq.f32.partialorder %v7097_v8, %v5556_v63  ;;  %v1851_v7 = vcvt.s32.f32 %v1849_v47  ;;  %v7103_v8 = vld [vmem:[#allocation72_spill] sm:$0xff]  ;;  %v7104_v63 = vld [vmem:[#allocation70_spill] sm:$0xff] }
 0x28c   :  { %vm1765_vm13 = vcmp.eq.f32.partialorder %v5192_v35, %v5548_v2  ;;  %v1879_v3 = vand.u32 65535, %v7103_v8  ;;  %v1924_v34 = vand.u32 65535, %v7104_v63  ;;  %v7109_v8 = vld [vmem:[#allocation18_spill] sm:$0xff] }
 0x28d   :  { %v1766_v14 = vsel %vm1765_vm13, %v1761_v28, inf  ;;  %v1841_v28 = vsel %vm1840_vm14, %v1836_v12, inf  ;;  %v7100_v12 = vld [vmem:[#allocation68_spill] sm:$0xff]  ;;  %v1954_v63 = vand.u32 65535, %v7109_v8 }
 0x28e   :  { %1767 = vmin.xlane.f32.xlu0 %v1766_v14  ;;  %1812 = vmin.xlane.f32.xlu1 %v1811_v0  ;;  %v5566_v14 = vpop.xlane.xlu1 %1898  ;;  %v1881_v47 = vcvt.s32.f32 %v1879_v3  ;;  %v1926_v4 = vcvt.s32.f32 %v1924_v34 }
 0x28f   :  { %v5558_v46 = vpop.xlane.xlu0 %1793  ;;  %7098 = vst [vmem:[#allocation26_spill] sm:$0xff] %v5566_v14  ;;  %vm1900_vm4 = vcmp.eq.f32.partialorder %v7100_v12, %v5566_v14  ;;  %v1909_v12 = vand.u32 65535, %v5239_v52  ;;  %v7110_v14 = vld [vmem:[#allocation76_spill] sm:$0xff]  ;;  %v1956_v34 = vcvt.s32.f32 %v1954_v63 }
 0x290   :  { %7094 = vst [vmem:[#allocation25_spill] sm:$0xff] %v5558_v46  ;;  %vm1795_vm15 = vcmp.eq.f32.partialorder %v5206_v31, %v5558_v46  ;;  %v7105_v46 = vld [vmem:[#allocation74_spill] sm:$0xff] }
 0x291   :  { %v1796_v35 = vsel %vm1795_vm15, %v1791_v41, inf  ;;  %v1871_v41 = vsel %vm1870_vm1, %v1866_v6, inf  ;;  %v7106_v6 = vld [vmem:[#allocation17_spill] sm:$0xff]  ;;  %v1911_v3 = vcvt.s32.f32 %v1909_v12 }
 0x292   :  { %1797 = vmin.xlane.f32.xlu0 %v1796_v35  ;;  %1842 = vmin.xlane.f32.xlu1 %v1841_v28  ;;  %v5576_v35 = vpop.xlane.xlu1 %1928 }
 0x293   :  { %v5568_v0 = vpop.xlane.xlu0 %1823  ;;  %7101 = vst [vmem:[#allocation27_spill] sm:$0xff] %v5576_v35  ;;  %vm1930_vm6 = vcmp.eq.f32.partialorder %v7106_v6, %v5576_v35  ;;  %v7114_v6 = vld [vmem:[#allocation78_spill] sm:$0xff]  ;;  %v7115_v35 = vld [vmem:[#allocation75_spill] sm:$0xff] }
 0x294   :  { %vm1825_vm3 = vcmp.eq.f32.partialorder %v5219_v36, %v5568_v0  ;;  %v1939_v52 = vand.u32 65535, %v7114_v6  ;;  %v1984_v8 = vand.u32 65535, %v7115_v35 }
 0x295   :  { %v1826_v31 = vsel %vm1825_vm3, %v1821_v58, inf  ;;  %v1901_v58 = vsel %vm1900_vm4, %v1896_v57, inf  ;;  %v7111_v57 = vld [vmem:[#allocation19_spill] sm:$0xff] }
 0x296   :  { %1827 = vmin.xlane.f32.xlu0 %v1826_v31  ;;  %1872 = vmin.xlane.f32.xlu1 %v1871_v41  ;;  %v5586_v31 = vpop.xlane.xlu1 %1958  ;;  %v1941_v12 = vcvt.s32.f32 %v1939_v52  ;;  %v1986_v63 = vcvt.s32.f32 %v1984_v8  ;;  %v7123_v52 = vld [vmem:[#allocation84_spill] sm:$0xff] }
 0x297   :  { %v5578_v28 = vpop.xlane.xlu0 %1853  ;;  %7107 = vst [vmem:[#allocation29_spill] sm:$0xff] %v5586_v31  ;;  %vm1960_vm8 = vcmp.eq.f32.partialorder %v7111_v57, %v5586_v31  ;;  %v7118_v57 = vld [vmem:[#allocation80_spill] sm:$0xff]  ;;  %v7119_v31 = vld [vmem:[#allocation81_spill] sm:$0xff]  ;;  %v1999_v8 = vand.u32 65535, %v7123_v52 }
 0x298   :  { %7102 = vst [vmem:[#allocation28_spill] sm:$0xff] %v5578_v28  ;;  %vm1855_vm5 = vcmp.eq.f32.partialorder %v7105_v46, %v5578_v28  ;;  %v7116_v28 = vld [vmem:[#allocation79_spill] sm:$0xff]  ;;  %v1969_v6 = vand.u32 65535, %v7118_v57  ;;  %v2014_v35 = vand.u32 65535, %v7119_v31  ;;  %v7125_v31 = vld [vmem:[#allocation85_spill] sm:$0xff] }
 0x299   :  { %v1856_v36 = vsel %vm1855_vm5, %v1851_v7, inf  ;;  %v1931_v7 = vsel %vm1930_vm6, %v1926_v4, inf  ;;  %v7117_v4 = vld [vmem:[#allocation77_spill] sm:$0xff]  ;;  %vm2921_vm5 = vcmask 7168  }
 0x29a   :  { %1857 = vmin.xlane.f32.xlu0 %v1856_v36  ;;  %1902 = vmin.xlane.f32.xlu1 %v1901_v58 }
 0x29b   :  { %v5588_v41 = vpop.xlane.xlu0 %1883  ;;  %v5596_v36 = vpop.xlane.xlu1 %1988 }
 0x29c   :  { %7108 = vst [vmem:[#allocation30_spill] sm:$0xff] %v5588_v41  ;;  %vm1885_vm7 = vcmp.eq.f32.partialorder %v7110_v14, %v5588_v41  ;;  %7112 = vst [vmem:[#allocation31_spill] sm:$0xff] %v5596_v36  ;;  %vm1990_vm10 = vcmp.eq.f32.partialorder %v7117_v4, %v5596_v36  ;;  %v7120_v41 = vld [vmem:[#allocation82_spill] sm:$0xff]  ;;  %v2016_v4 = vcvt.s32.f32 %v2014_v35  ;;  %v7129_v35 = vld [vmem:[#allocation87_spill] sm:$0xff] }
 0x29d   :  { %v1886_v46 = vsel %vm1885_vm7, %v1881_v47, inf  ;;  %v1961_v47 = vsel %vm1960_vm8, %v1956_v34, inf  ;;  %v7121_v34 = vld [vmem:[#allocation83_spill] sm:$0xff]  ;;  %v7124_v36 = vld [vmem:[#allocation86_spill] sm:$0xff] }
 0x29e   :  { %1887 = vmin.xlane.f32.xlu0 %v1886_v46  ;;  %1932 = vmin.xlane.f32.xlu1 %v1931_v7  ;;  %v2044_v57 = vand.u32 65535, %v7124_v36  ;;  %v7130_v36 = vld [vmem:[#allocation88_spill] sm:$0xff] }
 0x29f   :  { %v5598_v58 = vpop.xlane.xlu0 %1913 }
 0x2a0   :  { %7113 = vst [vmem:[#allocation32_spill] sm:$0xff] %v5598_v58  ;;  %vm1915_vm9 = vcmp.eq.f32.partialorder %v7116_v28, %v5598_v58 }
 0x2a1   :  { %v1916_v14 = vsel %vm1915_vm9, %v1911_v3, inf  ;;  %v1991_v3 = vsel %vm1990_vm10, %v1986_v63, inf }
 0x2a2   :  { %1917 = vmin.xlane.f32.xlu0 %v1916_v14  ;;  %1962 = vmin.xlane.f32.xlu1 %v1961_v47  ;;  %v1971_v47 = vcvt.s32.f32 %v1969_v6 }
 0x2a3   :  { %v5606_v46 = vpop.xlane.xlu0 %1943  ;;  %v5608_v7 = vpop.xlane.xlu1 %2018 }
 0x2a4   :  { %vm1945_vm11 = vcmp.eq.f32.partialorder %v7120_v41, %v5606_v46  ;;  %vm2020_vm12 = vcmp.eq.f32.partialorder %v7121_v34, %v5608_v7  ;;  %v7128_v34 = vld [vmem:[#allocation89_spill] sm:$0xff] }
 0x2a5   :  { %v1946_v28 = vsel %vm1945_vm11, %v1941_v12, inf  ;;  %v2021_v41 = vsel %vm2020_vm12, %v2016_v4, inf  ;;  %v2029_v6 = vand.u32 65535, %v7128_v34  ;;  %v7132_v4 = vld [vmem:[#allocation91_spill] sm:$0xff] }
 0x2a6   :  { %1947 = vmin.xlane.f32.xlu0 %v1946_v28  ;;  %1992 = vmin.xlane.f32.xlu1 %v1991_v3  ;;  %v2001_v28 = vcvt.s32.f32 %v1999_v8  ;;  %v2046_v3 = vcvt.s32.f32 %v2044_v57  ;;  %v7133_v8 = vld [vmem:[#allocation90_spill] sm:$0xff] }
 0x2a7   :  { %v5616_v14 = vpop.xlane.xlu0 %1973 }
 0x2a8   :  { %7122 = vst [vmem:[#allocation33_spill] sm:$0xff] %v5616_v14  ;;  %vm1975_vm13 = vcmp.eq.f32.partialorder %v7125_v31, %v5616_v14 }
 0x2a9   :  { %v1976_v58 = vsel %vm1975_vm13, %v1971_v47, inf  ;;  %v2031_v47 = vcvt.s32.f32 %v2029_v6  ;;  %v1140_v6 = vcvt.f32.s32 %v5248_v1  ;;  %v1215_v1 = vcvt.f32.s32 %v5291_v16 }
 0x2aa   :  { %1977 = vmin.xlane.f32.xlu0 %v1976_v58  ;;  %2022 = vmin.xlane.f32.xlu1 %v2021_v41  ;;  %v2074_v41 = vand.u32 65535, %v7132_v4  ;;  %v1200_v16 = vcvt.f32.s32 %v5303_v43 }
 0x2ab   :  { %v5622_v12 = vpop.xlane.xlu0 %2003  ;;  %v5624_v63 = vpop.xlane.xlu1 %2048 }
 0x2ac   :  { %7126 = vst [vmem:[#allocation34_spill] sm:$0xff] %v5622_v12  ;;  %7127 = vst [vmem:[#allocation35_spill] sm:$0xff] %v5624_v63  ;;  %vm2005_vm14 = vcmp.eq.f32.partialorder %v7129_v35, %v5622_v12  ;;  %vm2050_vm15 = vcmp.eq.f32.partialorder %v7130_v36, %v5624_v63  ;;  %v2076_v35 = vcvt.s32.f32 %v2074_v41  ;;  %v7135_v12 = vld [vmem:[#allocation92_spill] sm:$0xff]  ;;  %v7136_v36 = vld [vmem:[#allocation73_spill] sm:$0xff] }
 0x2ad   :  { %v2006_v52 = vsel %vm2005_vm14, %v2001_v28, inf  ;;  %v2051_v31 = vsel %vm2050_vm15, %v2046_v3, inf  ;;  %v2059_v14 = vand.u32 65535, %v7135_v12  ;;  %v1155_v28 = vcvt.f32.s32 %v7136_v36  ;;  %v7137_v3 = vld [vmem:[#allocation21_spill] sm:$0xff]  ;;  %v7138_v41 = vld [vmem:[#allocation22_spill] sm:$0xff] }
 0x2ae   :  { %2007 = vmin.xlane.f32.xlu0 %v2006_v52  ;;  %2052 = vmin.xlane.f32.xlu1 %v2051_v31 }
 0x2af   :  { %v5631_v58 = vpop.xlane.xlu0 %2033 }
 0x2b0   :  { %7131 = vst [vmem:[#allocation36_spill] sm:$0xff] %v5631_v58  ;;  %vm2035_vm1 = vcmp.eq.f32.partialorder %v7133_v8, %v5631_v58  ;;  %v2061_v8 = vcvt.s32.f32 %v2059_v14  ;;  %v7139_v14 = vld [vmem:[#allocation20_spill] sm:$0xff] }
 0x2b1   :  { %v2036_v57 = vsel %vm2035_vm1, %v2031_v47, inf  ;;  %v1156_v47 = vshll.u32 %v1155_v28, 16 }
 0x2b2   :  { %2037 = vmin.xlane.f32.xlu0 %v2036_v57  ;;  %v1185_v57 = vcvt.f32.s32 %v5262_v19 }
 0x2b3   :  { %v5636_v34 = vpop.xlane.xlu1 %2078 }
 0x2b4   :  { %7134 = vst [vmem:[#allocation37_spill] sm:$0xff] %v5636_v34  ;;  %vm2080_vm3 = vcmp.eq.f32.partialorder %v7137_v3, %v5636_v34  ;;  %v1141_v3 = vshll.u32 %v1140_v6, 16  ;;  %v1186_v63 = vshll.u32 %v1185_v57, 16 }
 0x2b5   :  { %v2081_v52 = vsel %vm2080_vm3, %v2076_v35, inf  ;;  %v1170_v35 = vcvt.f32.s32 %v5277_v15 }
 0x2b6   :  { %2082 = vmin.xlane.f32.xlu1 %v2081_v52 }
 0x2b7   :  { %v5643_v31 = vpop.xlane.xlu0 %2063  ;;  %v1153_v4 = vpop.xlane.xlu1 %1152  ;;  %v1171_v15 = vshll.u32 %v1170_v35, 16 }
 0x2b8   :  { %vm2065_vm4 = vcmp.eq.f32.partialorder %v7138_v41, %v5643_v31  ;;  %v1154_v12 = vcvt.f32.s32 %v1153_v4  ;;  %v1216_v41 = vshll.u32 %v1215_v1, 16  ;;  %v1201_v1 = vshll.u32 %v1200_v16, 16 }
 0x2b9   :  { %v2066_v36 = vsel %vm2065_vm4, %v2061_v8, inf }
 0x2ba   :  { %v1157_v58 = vadd.s32 %v1156_v47, %v1154_v12  ;;  %2067 = vmin.xlane.f32.xlu0 %v2066_v36  ;;  %v4078_v47 = vmov 0.0   ;;  %v1245_v36 = vcvt.f32.s32 %v5317_v11 }
 0x2bb   :  { %v1138_v52 = vpop.xlane.xlu0 %1137  ;;  %v1183_v34 = vpop.xlane.xlu1 %1182 }
 0x2bc   :  { %vm2089_vm6 = vcmp.eq.s32.totalorder %v7139_v14, %v1157_v58  ;;  %2923 = vst.msk [vmem:[%s6809_s4 + $0x8] sm:$0xff] %vm2921_vm5, %v1157_v58  ;;  %v1139_v19 = vcvt.f32.s32 %v1138_v52  ;;  %v1184_v28 = vcvt.f32.s32 %v1183_v34  ;;  %v1230_v52 = vcvt.f32.s32 %v5329_v33 }
 0x2bd   :  { %v3492_v6 = vsel %vm2089_vm6, 1.0, %v4078_v47 }
 0x2be   :  { %v1142_v4 = vadd.s32 %v1141_v3, %v1139_v19  ;;  %v1187_v8 = vadd.s32 %v1186_v63, %v1184_v28  ;;  %v3254_v34 = vsel %vm807_vm2, %v3492_v6, 0.0  ;;  %v1275_v19 = vcvt.f32.s32 %v5343_v23 }
 0x2bf   :  { %v1168_v12 = vpop.xlane.xlu0 %1167  ;;  %v1213_v57 = vpop.xlane.xlu1 %1212  ;;  %v1260_v23 = vcvt.f32.s32 %v5354_v55 }
 0x2c0   :  { %2922 = vst.msk [vmem:[%s6809_s4] sm:$0xff] %vm2921_vm5, %v1142_v4  ;;  %2925 = vst.msk [vmem:[%s6809_s4 + $0x18] sm:$0xff] %vm2921_vm5, %v1187_v8  ;;  %v1169_v63 = vcvt.f32.s32 %v1168_v12  ;;  %v1214_v58 = vcvt.f32.s32 %v1213_v57  ;;  %vm2088_vm7 = vcmp.eq.s32.totalorder %v7139_v14, %v1142_v4  ;;  %vm2091_vm8 = vcmp.eq.s32.totalorder %v7139_v14, %v1187_v8 }
 0x2c1   :  { %v3491_v43 = vsel %vm2088_vm7, 1.0, %v4078_v47  ;;  %v1246_v57 = vshll.u32 %v1245_v36, 16 }
 0x2c2   :  { %v1172_v3 = vadd.s32 %v1171_v15, %v1169_v63  ;;  %v1217_v11 = vadd.s32 %v1216_v41, %v1214_v58  ;;  %3855 = vmatprep.mubr.msk.f32.mxu1 %vm807_vm2, %v3491_v43  ;;  %v3253_v35 = vsel %vm807_vm2, %v3491_v43, 0.0  ;;  %v3494_v41 = vsel %vm2091_vm8, 1.0, %v4078_v47 }
 0x2c3   :  { %v3255_v28 = vadd.f32 %v3254_v34, %v3253_v35  ;;  %v1198_v12 = vpop.xlane.xlu0 %1197  ;;  %3856 = vmatmul.mubr.msk.f32.vlgmr.msra.gmra.mrb[0].mxu1 %vm807_vm2, %v3492_v6  ;;  %v1243_v4 = vpop.xlane.xlu1 %1242  ;;  %v1231_v58 = vshll.u32 %v1230_v52, 16  ;;  %v1276_v43 = vshll.u32 %v1275_v19, 16  ;;  %v1305_v34 = vcvt.f32.s32 %v5362_v5 }
 0x2c4   :  { %2924 = vst.msk [vmem:[%s6809_s4 + $0x10] sm:$0xff] %vm2921_vm5, %v1172_v3  ;;  %2927 = vst.msk [vmem:[%s6809_s4 + $0x28] sm:$0xff] %vm2921_vm5, %v1217_v11  ;;  %v1199_v15 = vcvt.f32.s32 %v1198_v12  ;;  %v1244_v33 = vcvt.f32.s32 %v1243_v4  ;;  %vm2090_vm9 = vcmp.eq.s32.totalorder %v7139_v14, %v1172_v3  ;;  %vm2093_vm10 = vcmp.eq.s32.totalorder %v7139_v14, %v1217_v11 }
 0x2c5   :  { %v3493_v6 = vsel %vm2090_vm9, 1.0, %v4078_v47  ;;  %v1261_v5 = vshll.u32 %v1260_v23, 16  ;;  %v3496_v12 = vsel %vm2093_vm10, 1.0, %v4078_v47  ;;  %v1335_v23 = vcvt.f32.s32 %v5378_v59 }
 0x2c6   :  { %v1202_v16 = vadd.s32 %v1201_v1, %v1199_v15  ;;  %v1247_v36 = vadd.s32 %v1246_v57, %v1244_v33  ;;  %3858 = vmatprep.mubr.msk.f32.mxu1 %vm807_vm2, %v3493_v6  ;;  %v3256_v63 = vsel %vm807_vm2, %v3493_v6, 0.0  ;;  %v3258_v1 = vsel %vm807_vm2, %v3494_v41, 0.0 }
 0x2c7   :  { %v3257_v3 = vadd.f32 %v3256_v63, %v3255_v28  ;;  %v1228_v55 = vpop.xlane.xlu0 %1227  ;;  %3859 = vmatmul.mubr.msk.f32.gmra.mrb[2].mxu1 %vm807_vm2, %v3494_v41  ;;  %v1273_v35 = vpop.xlane.xlu1 %1272  ;;  %v1306_v33 = vshll.u32 %v1305_v34, 16  ;;  %v1290_v6 = vcvt.f32.s32 %v5370_v13  ;;  %v3262_v13 = vsel %vm807_vm2, %v3496_v12, 0.0 }
 0x2c8   :  { %2926 = vst.msk [vmem:[%s6809_s4 + $0x20] sm:$0xff] %vm2921_vm5, %v1202_v16  ;;  %2929 = vst.msk [vmem:[%s6809_s4 + $0x38] sm:$0xff] %vm2921_vm5, %v1247_v36  ;;  %v1229_v8 = vcvt.f32.s32 %v1228_v55  ;;  %v1274_v52 = vcvt.f32.s32 %v1273_v35  ;;  %vm2092_vm11 = vcmp.eq.s32.totalorder %v7139_v14, %v1202_v16  ;;  %vm2095_vm12 = vcmp.eq.s32.totalorder %v7139_v14, %v1247_v36 }
 0x2c9   :  { %v3259_v19 = vadd.f32 %v3258_v1, %v3257_v3  ;;  %v3495_v28 = vsel %vm2092_vm11, 1.0, %v4078_v47  ;;  %v1320_v59 = vcvt.f32.s32 %v5386_v49  ;;  %v3498_v3 = vsel %vm2095_vm12, 1.0, %v4078_v47 }
 0x2ca   :  { %v1232_v4 = vadd.s32 %v1231_v58, %v1229_v8  ;;  %v1277_v57 = vadd.s32 %v1276_v43, %v1274_v52  ;;  %3861 = vmatprep.mubr.msk.f32.mxu1 %vm807_vm2, %v3495_v28  ;;  %v3260_v15 = vsel %vm807_vm2, %v3495_v28, 0.0  ;;  %v1291_v1 = vshll.u32 %v1290_v6, 16 }
 0x2cb   :  { %v3261_v41 = vadd.f32 %v3260_v15, %v3259_v19  ;;  %v1258_v16 = vpop.xlane.xlu0 %1257  ;;  %3862 = vmatmul.mubr.msk.f32.gmra.mrb[4].mxu1 %vm807_vm2, %v3496_v12  ;;  %v1303_v63 = vpop.xlane.xlu1 %1302  ;;  %v1336_v52 = vshll.u32 %v1335_v23, 16  ;;  %v1365_v19 = vcvt.f32.s32 %v5394_v9  ;;  %v1321_v9 = vshll.u32 %v1320_v59, 16 }
 0x2cc   :  { %2928 = vst.msk [vmem:[%s6809_s4 + $0x30] sm:$0xff] %vm2921_vm5, %v1232_v4  ;;  %2931 = vst.msk [vmem:[%s6809_s4 + $0x48] sm:$0xff] %vm2921_vm5, %v1277_v57  ;;  %v1259_v11 = vcvt.f32.s32 %v1258_v16  ;;  %v1304_v58 = vcvt.f32.s32 %v1303_v63  ;;  %vm2094_vm13 = vcmp.eq.s32.totalorder %v7139_v14, %v1232_v4  ;;  %vm2097_vm14 = vcmp.eq.s32.totalorder %v7139_v14, %v1277_v57 }
 0x2cd   :  { %v3263_v43 = vadd.f32 %v3262_v13, %v3261_v41  ;;  %v3497_v34 = vsel %vm2094_vm13, 1.0, %v4078_v47  ;;  %v3500_v6 = vsel %vm2097_vm14, 1.0, %v4078_v47  ;;  %v1366_v63 = vshll.u32 %v1365_v19, 16 }
 0x2ce   :  { %v1262_v55 = vadd.s32 %v1261_v5, %v1259_v11  ;;  %v1307_v35 = vadd.s32 %v1306_v33, %v1304_v58  ;;  %3864 = vmatprep.mubr.msk.f32.mxu1 %vm807_vm2, %v3497_v34  ;;  %v3264_v8 = vsel %vm807_vm2, %v3497_v34, 0.0  ;;  %v3266_v5 = vsel %vm807_vm2, %v3498_v3, 0.0 }
 0x2cf   :  { %v3265_v49 = vadd.f32 %v3264_v8, %v3263_v43  ;;  %v1288_v28 = vpop.xlane.xlu0 %1287  ;;  %3865 = vmatmul.mubr.msk.f32.gmra.mrb[6].mxu1 %vm807_vm2, %v3498_v3  ;;  %v1333_v12 = vpop.xlane.xlu1 %1332  ;;  %v1350_v11 = vcvt.f32.s32 %v5402_v39  ;;  %v1395_v13 = vcvt.f32.s32 %v5407_v26  ;;  %v3270_v39 = vsel %vm807_vm2, %v3500_v6, 0.0 }
 0x2d0   :  { %2930 = vst.msk [vmem:[%s6809_s4 + $0x40] sm:$0xff] %vm2921_vm5, %v1262_v55  ;;  %2933 = vst.msk [vmem:[%s6809_s4 + $0x58] sm:$0xff] %vm2921_vm5, %v1307_v35  ;;  %v1289_v36 = vcvt.f32.s32 %v1288_v28  ;;  %v1334_v4 = vcvt.f32.s32 %v1333_v12  ;;  %vm2096_vm15 = vcmp.eq.s32.totalorder %v7139_v14, %v1262_v55  ;;  %vm2099_vm1 = vcmp.eq.s32.totalorder %v7139_v14, %v1307_v35 }
 0x2d1   :  { %v3267_v15 = vadd.f32 %v3266_v5, %v3265_v49  ;;  %v3499_v33 = vsel %vm2096_vm15, 1.0, %v4078_v47  ;;  %v3502_v55 = vsel %vm2099_vm1, 1.0, %v4078_v47  ;;  %v1351_v19 = vshll.u32 %v1350_v11, 16 }
 0x2d2   :  { %v1292_v23 = vadd.s32 %v1291_v1, %v1289_v36  ;;  %v1337_v41 = vadd.s32 %v1336_v52, %v1334_v4  ;;  %3867 = vmatprep.mubr.msk.f32.mxu1 %vm807_vm2, %v3499_v33  ;;  %v3268_v16 = vsel %vm807_vm2, %v3499_v33, 0.0  ;;  %v1396_v49 = vshll.u32 %v1395_v13, 16 }
 0x2d3   :  { %v3269_v58 = vadd.f32 %v3268_v16, %v3267_v15  ;;  %v1318_v59 = vpop.xlane.xlu0 %1317  ;;  %3868 = vmatmul.mubr.msk.f32.gmra.mrb[8].mxu1 %vm807_vm2, %v3500_v6  ;;  %v1363_v43 = vpop.xlane.xlu1 %1362  ;;  %v1380_v28 = vcvt.f32.s32 %v5412_v20  ;;  %v3274_v4 = vsel %vm807_vm2, %v3502_v55, 0.0 }
 0x2d4   :  { %2932 = vst.msk [vmem:[%s6809_s4 + $0x50] sm:$0xff] %vm2921_vm5, %v1292_v23  ;;  %2935 = vst.msk [vmem:[%s6809_s4 + $0x68] sm:$0xff] %vm2921_vm5, %v1337_v41  ;;  %v1319_v57 = vcvt.f32.s32 %v1318_v59  ;;  %v1364_v34 = vcvt.f32.s32 %v1363_v43  ;;  %vm2098_vm3 = vcmp.eq.s32.totalorder %v7139_v14, %v1292_v23  ;;  %vm2101_vm4 = vcmp.eq.s32.totalorder %v7139_v14, %v1337_v41 }
 0x2d5   :  { %v3271_v26 = vadd.f32 %v3270_v39, %v3269_v58  ;;  %v3501_v3 = vsel %vm2098_vm3, 1.0, %v4078_v47  ;;  %v3504_v33 = vsel %vm2101_vm4, 1.0, %v4078_v47  ;;  %v1425_v58 = vcvt.f32.s32 %v5419_v48 }
 0x2d6   :  { %v1322_v8 = vadd.s32 %v1321_v9, %v1319_v57  ;;  %v1367_v1 = vadd.s32 %v1366_v63, %v1364_v34  ;;  %3870 = vmatprep.mubr.msk.f32.mxu1 %vm807_vm2, %v3501_v3  ;;  %v3272_v52 = vsel %vm807_vm2, %v3501_v3, 0.0  ;;  %v1381_v63 = vshll.u32 %v1380_v28, 16 }
 0x2d7   :  { %v3273_v12 = vadd.f32 %v3272_v52, %v3271_v26  ;;  %v1348_v36 = vpop.xlane.xlu0 %1347  ;;  %3871 = vmatmul.mubr.msk.f32.gmra.mrb[10].mxu1 %vm807_vm2, %v3502_v55  ;;  %v1393_v5 = vpop.xlane.xlu1 %1392  ;;  %v3278_v59 = vsel %vm807_vm2, %v3504_v33, 0.0  ;;  %v1426_v3 = vshll.u32 %v1425_v58, 16  ;;  %v1410_v55 = vcvt.f32.s32 %v5424_v22 }
 0x2d8   :  { %2934 = vst.msk [vmem:[%s6809_s4 + $0x60] sm:$0xff] %vm2921_vm5, %v1322_v8  ;;  %2937 = vst.msk [vmem:[%s6809_s4 + $0x78] sm:$0xff] %vm2921_vm5, %v1367_v1  ;;  %v1349_v35 = vcvt.f32.s32 %v1348_v36  ;;  %v1394_v9 = vcvt.f32.s32 %v1393_v5  ;;  %vm2100_vm6 = vcmp.eq.s32.totalorder %v7139_v14, %v1322_v8  ;;  %vm2103_vm7 = vcmp.eq.s32.totalorder %v7139_v14, %v1367_v1 }
 0x2d9   :  { %v3275_v20 = vadd.f32 %v3274_v4, %v3273_v12  ;;  %v3503_v15 = vsel %vm2100_vm6, 1.0, %v4078_v47  ;;  %v3506_v34 = vsel %vm2103_vm7, 1.0, %v4078_v47  ;;  %v1411_v22 = vshll.u32 %v1410_v55, 16 }
 0x2da   :  { %v1352_v6 = vadd.s32 %v1351_v19, %v1349_v35  ;;  %v1397_v23 = vadd.s32 %v1396_v49, %v1394_v9  ;;  %3873 = vmatprep.mubr.msk.f32.mxu1 %vm807_vm2, %v3503_v15  ;;  %v3276_v16 = vsel %vm807_vm2, %v3503_v15, 0.0  ;;  %v1455_v12 = vcvt.f32.s32 %v5431_v17 }
 0x2db   :  { %v3277_v11 = vadd.f32 %v3276_v16, %v3275_v20  ;;  %v1378_v13 = vpop.xlane.xlu0 %1377  ;;  %3874 = vmatmul.mubr.msk.f32.gmra.mrb[12].mxu1 %vm807_vm2, %v3504_v33  ;;  %v3282_v36 = vsel %vm807_vm2, %v3506_v34, 0.0  ;;  %v1440_v20 = vcvt.f32.s32 %v5438_v45 }
 0x2dc   :  { %2936 = vst.msk [vmem:[%s6809_s4 + $0x70] sm:$0xff] %vm2921_vm5, %v1352_v6  ;;  %2939 = vst.msk [vmem:[%s6809_s4 + $0x88] sm:$0xff] %vm2921_vm5, %v1397_v23  ;;  %v1379_v41 = vcvt.f32.s32 %v1378_v13  ;;  %vm2102_vm8 = vcmp.eq.s32.totalorder %v7139_v14, %v1352_v6  ;;  %vm2105_vm9 = vcmp.eq.s32.totalorder %v7139_v14, %v1397_v23  ;;  %v1456_v33 = vshll.u32 %v1455_v12, 16 }
 0x2dd   :  { %v3279_v43 = vadd.f32 %v3278_v59, %v3277_v11  ;;  %v3505_v57 = vsel %vm2102_vm8, 1.0, %v4078_v47  ;;  %v3508_v49 = vsel %vm2105_vm9, 1.0, %v4078_v47  ;;  %v1485_v13 = vcvt.f32.s32 %v5444_v18 }
 0x2de   :  { %v1382_v39 = vadd.s32 %v1381_v63, %v1379_v41  ;;  %3876 = vmatprep.mubr.msk.f32.mxu1 %vm807_vm2, %v3505_v57  ;;  %v3280_v48 = vsel %vm807_vm2, %v3505_v57, 0.0  ;;  %v1441_v63 = vshll.u32 %v1440_v20, 16  ;;  %v3286_v58 = vsel %vm807_vm2, %v3508_v49, 0.0 }
 0x2df   :  { %3877 = vmatmul.mubr.msk.f32.gmra.mrb[14].mxu1 %vm807_vm2, %v3506_v34  ;;  %v1423_v26 = vpop.xlane.xlu1 %1422  ;;  %v3281_v1 = vadd.f32 %v3280_v48, %v3279_v43  ;;  %v1470_v18 = vcvt.f32.s32 %v5454_v56  ;;  %v1545_v56 = vcvt.f32.s32 %v5428_v10 }
 0x2e0   :  { %2938 = vst.msk [vmem:[%s6809_s4 + $0x80] sm:$0xff] %vm2921_vm5, %v1382_v39  ;;  %v1424_v8 = vcvt.f32.s32 %v1423_v26  ;;  %vm2104_vm10 = vcmp.eq.s32.totalorder %v7139_v14, %v1382_v39  ;;  %v1515_v39 = vcvt.f32.s32 %v5417_v62  ;;  %v1486_v26 = vshll.u32 %v1485_v13, 16 }
 0x2e1   :  { %v3507_v52 = vsel %vm2104_vm10, 1.0, %v4078_v47  ;;  %v3283_v35 = vadd.f32 %v3282_v36, %v3281_v1  ;;  %v1471_v36 = vshll.u32 %v1470_v18, 16  ;;  %v1546_v10 = vshll.u32 %v1545_v56, 16 }
 0x2e2   :  { %v1427_v19 = vadd.s32 %v1426_v3, %v1424_v8  ;;  %3879 = vmatprep.mubr.msk.f32.mxu1 %vm807_vm2, %v3507_v52  ;;  %v3284_v4 = vsel %vm807_vm2, %v3507_v52, 0.0  ;;  %v1516_v12 = vshll.u32 %v1515_v39, 16  ;;  %v1635_v56 = vcvt.f32.s32 %v5462_v51 }
 0x2e3   :  { %v1408_v28 = vpop.xlane.xlu0 %1407  ;;  %3880 = vmatmul.mubr.msk.f32.gmra.mrb[16].mxu1 %vm807_vm2, %v3508_v49  ;;  %v3285_v6 = vadd.f32 %v3284_v4, %v3283_v35 }
 0x2e4   :  { %2941 = vst.msk [vmem:[%s6809_s4 + $0x98] sm:$0xff] %vm2921_vm5, %v1427_v19  ;;  %v1409_v5 = vcvt.f32.s32 %v1408_v28  ;;  %vm2107_vm11 = vcmp.eq.s32.totalorder %v7139_v14, %v1427_v19  ;;  %v1500_v19 = vcvt.f32.s32 %v5464_v44  ;;  %v1575_v44 = vcvt.f32.s32 %v5436_v29 }
 0x2e5   :  { %v3510_v45 = vsel %vm2107_vm11, 1.0, %v4078_v47  ;;  %v3287_v43 = vadd.f32 %v3286_v58, %v3285_v6  ;;  %v1605_v29 = vcvt.f32.s32 %v5448_v32 }
 0x2e6   :  { %v1412_v9 = vadd.s32 %v1411_v22, %v1409_v5  ;;  %v3290_v8 = vsel %vm807_vm2, %v3510_v45, 0.0 }
 0x2e7   :  { %v1453_v15 = vpop.xlane.xlu1 %1452 }
 0x2e8   :  { %2940 = vst.msk [vmem:[%s6809_s4 + $0x90] sm:$0xff] %vm2921_vm5, %v1412_v9  ;;  %v1454_v17 = vcvt.f32.s32 %v1453_v15  ;;  %vm2106_vm12 = vcmp.eq.s32.totalorder %v7139_v14, %v1412_v9  ;;  %v1501_v15 = vshll.u32 %v1500_v19, 16 }
 0x2e9   :  { %v3509_v23 = vsel %vm2106_vm12, 1.0, %v4078_v47 }
 0x2ea   :  { %v1457_v16 = vadd.s32 %v1456_v33, %v1454_v17  ;;  %3882 = vmatprep.mubr.msk.f32.mxu1 %vm807_vm2, %v3509_v23  ;;  %v3288_v41 = vsel %vm807_vm2, %v3509_v23, 0.0  ;;  %v1530_v33 = vcvt.f32.s32 %v5472_v40 }
 0x2eb   :  { %v1438_v11 = vpop.xlane.xlu0 %1437  ;;  %3883 = vmatmul.mubr.msk.f32.gmra.mrb[18].mxu1 %vm807_vm2, %v3510_v45  ;;  %v3289_v48 = vadd.f32 %v3288_v41, %v3287_v43 }
 0x2ec   :  { %2943 = vst.msk [vmem:[%s6809_s4 + $0xa8] sm:$0xff] %vm2921_vm5, %v1457_v16  ;;  %v1439_v59 = vcvt.f32.s32 %v1438_v11  ;;  %vm2109_vm13 = vcmp.eq.s32.totalorder %v7139_v14, %v1457_v16  ;;  %v1531_v43 = vshll.u32 %v1530_v33, 16 }
 0x2ed   :  { %v3512_v52 = vsel %vm2109_vm13, 1.0, %v4078_v47  ;;  %v3291_v49 = vadd.f32 %v3290_v8, %v3289_v48 }
 0x2ee   :  { %v1442_v57 = vadd.s32 %v1441_v63, %v1439_v59  ;;  %v3294_v23 = vsel %vm807_vm2, %v3512_v52, 0.0  ;;  %v1576_v59 = vshll.u32 %v1575_v44, 16 }
 0x2ef   :  { %v1483_v34 = vpop.xlane.xlu1 %1482 }
 0x2f0   :  { %2942 = vst.msk [vmem:[%s6809_s4 + $0xa0] sm:$0xff] %vm2921_vm5, %v1442_v57  ;;  %v1484_v3 = vcvt.f32.s32 %v1483_v34  ;;  %vm2108_vm14 = vcmp.eq.s32.totalorder %v7139_v14, %v1442_v57  ;;  %v1560_v57 = vcvt.f32.s32 %v5482_v38  ;;  %v1606_v38 = vshll.u32 %v1605_v29, 16 }
 0x2f1   :  { %v3511_v55 = vsel %vm2108_vm14, 1.0, %v4078_v47 }
 0x2f2   :  { %v1487_v62 = vadd.s32 %v1486_v26, %v1484_v3  ;;  %3885 = vmatprep.mubr.msk.f32.mxu1 %vm807_vm2, %v3511_v55  ;;  %v3292_v1 = vsel %vm807_vm2, %v3511_v55, 0.0  ;;  %v1561_v19 = vshll.u32 %v1560_v57, 16  ;;  %v1650_v57 = vcvt.f32.s32 %v5508_v25 }
 0x2f3   :  { %v1468_v28 = vpop.xlane.xlu0 %1467  ;;  %3886 = vmatmul.mubr.msk.f32.gmra.mrb[20].mxu1 %vm807_vm2, %v3512_v52  ;;  %v1513_v22 = vpop.xlane.xlu1 %1512  ;;  %v3293_v4 = vadd.f32 %v3292_v1, %v3291_v49  ;;  %v1590_v49 = vcvt.f32.s32 %v5491_v60  ;;  %v1665_v60 = vcvt.f32.s32 %v5476_v53  ;;  %v1725_v25 = vcvt.f32.s32 %v5504_v61 }
 0x2f4   :  { %2945 = vst.msk [vmem:[%s6809_s4 + $0xb8] sm:$0xff] %vm2921_vm5, %v1487_v62  ;;  %v1469_v5 = vcvt.f32.s32 %v1468_v28  ;;  %v1514_v35 = vcvt.f32.s32 %v1513_v22  ;;  %vm2111_vm15 = vcmp.eq.s32.totalorder %v7139_v14, %v1487_v62 }
 0x2f5   :  { %v3295_v40 = vadd.f32 %v3294_v23, %v3293_v4  ;;  %v3514_v11 = vsel %vm2111_vm15, 1.0, %v4078_v47  ;;  %v1591_v33 = vshll.u32 %v1590_v49, 16 }
 0x2f6   :  { %v1472_v9 = vadd.s32 %v1471_v36, %v1469_v5  ;;  %v1517_v20 = vadd.s32 %v1516_v12, %v1514_v35  ;;  %v3298_v26 = vsel %vm807_vm2, %v3514_v11, 0.0 }
 0x2f7   :  { %v1498_v17 = vpop.xlane.xlu0 %1497  ;;  %v1543_v6 = vpop.xlane.xlu1 %1542 }
 0x2f8   :  { %2944 = vst.msk [vmem:[%s6809_s4 + $0xb0] sm:$0xff] %vm2921_vm5, %v1472_v9  ;;  %2947 = vst.msk [vmem:[%s6809_s4 + $0xc8] sm:$0xff] %vm2921_vm5, %v1517_v20  ;;  %v1499_v16 = vcvt.f32.s32 %v1498_v17  ;;  %v1544_v45 = vcvt.f32.s32 %v1543_v6  ;;  %vm2110_vm1 = vcmp.eq.s32.totalorder %v7139_v14, %v1472_v9  ;;  %vm2113_vm3 = vcmp.eq.s32.totalorder %v7139_v14, %v1517_v20 }
 0x2f9   :  { %v3513_v63 = vsel %vm2110_vm1, 1.0, %v4078_v47  ;;  %v3516_v8 = vsel %vm2113_vm3, 1.0, %v4078_v47  ;;  %v1620_v17 = vcvt.f32.s32 %v5498_v27  ;;  %v1666_v27 = vshll.u32 %v1665_v60, 16 }
 0x2fa   :  { %v1502_v13 = vadd.s32 %v1501_v15, %v1499_v16  ;;  %v1547_v58 = vadd.s32 %v1546_v10, %v1544_v45  ;;  %3888 = vmatprep.mubr.msk.f32.mxu1 %vm807_vm2, %v3513_v63  ;;  %v3296_v41 = vsel %vm807_vm2, %v3513_v63, 0.0  ;;  %v3302_v51 = vsel %vm807_vm2, %v3516_v8, 0.0 }
 0x2fb   :  { %v3297_v32 = vadd.f32 %v3296_v41, %v3295_v40  ;;  %v1528_v39 = vpop.xlane.xlu0 %1527  ;;  %3889 = vmatmul.mubr.msk.f32.gmra.mrb[22].mxu1 %vm807_vm2, %v3514_v11  ;;  %v1573_v48 = vpop.xlane.xlu1 %1572  ;;  %v1636_v15 = vshll.u32 %v1635_v56, 16  ;;  %v1680_v56 = vcvt.f32.s32 %v5518_v37  ;;  %v1726_v37 = vshll.u32 %v1725_v25, 16 }
 0x2fc   :  { %2946 = vst.msk [vmem:[%s6809_s4 + $0xc0] sm:$0xff] %vm2921_vm5, %v1502_v13  ;;  %2949 = vst.msk [vmem:[%s6809_s4 + $0xd8] sm:$0xff] %vm2921_vm5, %v1547_v58  ;;  %v1529_v34 = vcvt.f32.s32 %v1528_v39  ;;  %v1574_v18 = vcvt.f32.s32 %v1573_v48  ;;  %vm2112_vm4 = vcmp.eq.s32.totalorder %v7139_v14, %v1502_v13  ;;  %vm2115_vm6 = vcmp.eq.s32.totalorder %v7139_v14, %v1547_v58 }
 0x2fd   :  { %v3299_v3 = vadd.f32 %v3298_v26, %v3297_v32  ;;  %v3515_v55 = vsel %vm2112_vm4, 1.0, %v4078_v47  ;;  %v3518_v9 = vsel %vm2115_vm6, 1.0, %v4078_v47 }
 0x2fe   :  { %v1532_v62 = vadd.s32 %v1531_v43, %v1529_v34  ;;  %v1577_v1 = vadd.s32 %v1576_v59, %v1574_v18  ;;  %3891 = vmatprep.mubr.msk.f32.mxu1 %vm807_vm2, %v3515_v55  ;;  %v3300_v52 = vsel %vm807_vm2, %v3515_v55, 0.0  ;;  %v3306_v45 = vsel %vm807_vm2, %v3518_v9, 0.0 }
 0x2ff   :  { %v3301_v28 = vadd.f32 %v3300_v52, %v3299_v3  ;;  %v1558_v22 = vpop.xlane.xlu0 %1557  ;;  %3892 = vmatmul.mubr.msk.f32.gmra.mrb[24].mxu1 %vm807_vm2, %v3516_v8  ;;  %v1603_v12 = vpop.xlane.xlu1 %1602  ;;  %v1695_v59 = vcvt.f32.s32 %v5489_v21  ;;  %v1621_v43 = vshll.u32 %v1620_v17, 16  ;;  %v1651_v52 = vshll.u32 %v1650_v57, 16 }
 0x300   :  { %2948 = vst.msk [vmem:[%s6809_s4 + $0xd0] sm:$0xff] %vm2921_vm5, %v1532_v62  ;;  %2951 = vst.msk [vmem:[%s6809_s4 + $0xe8] sm:$0xff] %vm2921_vm5, %v1577_v1  ;;  %v1559_v36 = vcvt.f32.s32 %v1558_v22  ;;  %v1604_v5 = vcvt.f32.s32 %v1603_v12  ;;  %vm2114_vm7 = vcmp.eq.s32.totalorder %v7139_v14, %v1532_v62  ;;  %vm2117_vm8 = vcmp.eq.s32.totalorder %v7139_v14, %v1577_v1 }
 0x301   :  { %v3303_v35 = vadd.f32 %v3302_v51, %v3301_v28  ;;  %v3517_v4 = vsel %vm2114_vm7, 1.0, %v4078_v47  ;;  %v3520_v11 = vsel %vm2117_vm8, 1.0, %v4078_v47  ;;  %v1696_v1 = vshll.u32 %v1695_v59, 16 }
 0x302   :  { %v1562_v20 = vadd.s32 %v1561_v19, %v1559_v36  ;;  %v1607_v10 = vadd.s32 %v1606_v38, %v1604_v5  ;;  %3894 = vmatprep.mubr.msk.f32.mxu1 %vm807_vm2, %v3517_v4  ;;  %v3304_v44 = vsel %vm807_vm2, %v3517_v4, 0.0  ;;  %v3310_v21 = vsel %vm807_vm2, %v3520_v11, 0.0 }
 0x303   :  { %v3305_v53 = vadd.f32 %v3304_v44, %v3303_v35  ;;  %v1588_v6 = vpop.xlane.xlu0 %1587  ;;  %3895 = vmatmul.mubr.msk.f32.gmra.mrb[26].mxu1 %vm807_vm2, %v3518_v9  ;;  %v1633_v23 = vpop.xlane.xlu1 %1632  ;;  %v1755_v9 = vcvt.f32.s32 %v5516_v54 }
 0x304   :  { %2950 = vst.msk [vmem:[%s6809_s4 + $0xe0] sm:$0xff] %vm2921_vm5, %v1562_v20  ;;  %2953 = vst.msk [vmem:[%s6809_s4 + $0xf8] sm:$0xff] %vm2921_vm5, %v1607_v10  ;;  %v1589_v16 = vcvt.f32.s32 %v1588_v6  ;;  %v1634_v29 = vcvt.f32.s32 %v1633_v23  ;;  %vm2116_vm9 = vcmp.eq.s32.totalorder %v7139_v14, %v1562_v20  ;;  %vm2119_vm10 = vcmp.eq.s32.totalorder %v7139_v14, %v1607_v10 }
 0x305   :  { %v3307_v40 = vadd.f32 %v3306_v45, %v3305_v53  ;;  %v3519_v63 = vsel %vm2116_vm9, 1.0, %v4078_v47  ;;  %v3522_v3 = vsel %vm2119_vm10, 1.0, %v4078_v47  ;;  %v1681_v20 = vshll.u32 %v1680_v56, 16 }
 0x306   :  { %v1592_v13 = vadd.s32 %v1591_v33, %v1589_v16  ;;  %v1637_v58 = vadd.s32 %v1636_v15, %v1634_v29  ;;  %3897 = vmatprep.mubr.msk.f32.mxu1 %vm807_vm2, %v3519_v63  ;;  %v3308_v41 = vsel %vm807_vm2, %v3519_v63, 0.0  ;;  %v3314_v22 = vsel %vm807_vm2, %v3522_v3, 0.0 }
 0x307   :  { %v3309_v32 = vadd.f32 %v3308_v41, %v3307_v40  ;;  %v1618_v39 = vpop.xlane.xlu0 %1617  ;;  %3898 = vmatmul.mubr.msk.f32.gmra.mrb[28].mxu1 %vm807_vm2, %v3520_v11  ;;  %v1663_v48 = vpop.xlane.xlu1 %1662  ;;  %v1710_v10 = vcvt.f32.s32 %v5528_v42  ;;  %v1785_v42 = vcvt.f32.s32 %v5526_v24  ;;  %v1756_v40 = vshll.u32 %v1755_v9, 16 }
 0x308   :  { %2952 = vst.msk [vmem:[%s6809_s4 + $0xf0] sm:$0xff] %vm2921_vm5, %v1592_v13  ;;  %2955 = vst.msk [vmem:[%s6809_s4 + $0x108] sm:$0xff] %vm2921_vm5, %v1637_v58  ;;  %v1619_v34 = vcvt.f32.s32 %v1618_v39  ;;  %v1664_v26 = vcvt.f32.s32 %v1663_v48  ;;  %vm2118_vm11 = vcmp.eq.s32.totalorder %v7139_v14, %v1592_v13  ;;  %vm2121_vm12 = vcmp.eq.s32.totalorder %v7139_v14, %v1637_v58 }
 0x309   :  { %v3311_v18 = vadd.f32 %v3310_v21, %v3309_v32  ;;  %v3521_v38 = vsel %vm2118_vm11, 1.0, %v4078_v47  ;;  %v3524_v5 = vsel %vm2121_vm12, 1.0, %v4078_v47  ;;  %v1711_v63 = vshll.u32 %v1710_v10, 16 }
 0x30a   :  { %v1622_v55 = vadd.s32 %v1621_v43, %v1619_v34  ;;  %v1667_v8 = vadd.s32 %v1666_v27, %v1664_v26  ;;  %3900 = vmatprep.mubr.msk.f32.mxu1 %vm807_vm2, %v3521_v38  ;;  %v3312_v62 = vsel %vm807_vm2, %v3521_v38, 0.0  ;;  %v3318_v54 = vsel %vm807_vm2, %v3524_v5, 0.0  ;;  %v7140_v26 = vld [vmem:[#allocation23_spill] sm:$0xff] }
 0x30b   :  { %v3313_v61 = vadd.f32 %v3312_v62, %v3311_v18  ;;  %v1648_v19 = vpop.xlane.xlu0 %1647  ;;  %3901 = vmatmul.mubr.msk.f32.gmra.mrb[30].mxu1 %vm807_vm2, %v3522_v3  ;;  %v1693_v49 = vpop.xlane.xlu1 %1692  ;;  %v1740_v11 = vcvt.f32.s32 %v5538_v50  ;;  %v1786_v50 = vshll.u32 %v1785_v42, 16  ;;  %v1815_v25 = vcvt.f32.s32 %v7140_v26 }
 0x30c   :  { %2954 = vst.msk [vmem:[%s6809_s4 + $0x100] sm:$0xff] %vm2921_vm5, %v1622_v55  ;;  %2957 = vst.msk [vmem:[%s6809_s4 + $0x118] sm:$0xff] %vm2921_vm5, %v1667_v8  ;;  %v1649_v28 = vcvt.f32.s32 %v1648_v19  ;;  %v1694_v12 = vcvt.f32.s32 %v1693_v49  ;;  %vm2120_vm13 = vcmp.eq.s32.totalorder %v7139_v14, %v1622_v55  ;;  %vm2123_vm14 = vcmp.eq.s32.totalorder %v7139_v14, %v1667_v8 }
 0x30d   :  { %v3315_v36 = vadd.f32 %v3314_v22, %v3313_v61  ;;  %v3523_v51 = vsel %vm2120_vm13, 1.0, %v4078_v47  ;;  %v3526_v16 = vsel %vm2123_vm14, 1.0, %v4078_v47  ;;  %v1741_v18 = vshll.u32 %v1740_v11, 16 }
 0x30e   :  { %v1652_v60 = vadd.s32 %v1651_v52, %v1649_v28  ;;  %v1697_v35 = vadd.s32 %v1696_v1, %v1694_v12  ;;  %3903 = vmatprep.mubr.msk.f32.mxu1 %vm807_vm2, %v3523_v51  ;;  %v3316_v4 = vsel %vm807_vm2, %v3523_v51, 0.0  ;;  %v3322_v59 = vsel %vm807_vm2, %v3526_v16, 0.0 }
 0x30f   :  { %v3317_v44 = vadd.f32 %v3316_v4, %v3315_v36  ;;  %v1678_v15 = vpop.xlane.xlu0 %1677  ;;  %3904 = vmatmul.mubr.msk.f32.gmra.mrb[32].mxu1 %vm807_vm2, %v3524_v5  ;;  %v1723_v33 = vpop.xlane.xlu1 %1722  ;;  %v1770_v38 = vcvt.f32.s32 %v5548_v2  ;;  %v1845_v2 = vcvt.f32.s32 %v5546_v30  ;;  %v1816_v12 = vshll.u32 %v1815_v25, 16  ;;  %v7141_v36 = vld [vmem:[#allocation25_spill] sm:$0xff] }
 0x310   :  { %2956 = vst.msk [vmem:[%s6809_s4 + $0x110] sm:$0xff] %vm2921_vm5, %v1652_v60  ;;  %2959 = vst.msk [vmem:[%s6809_s4 + $0x128] sm:$0xff] %vm2921_vm5, %v1697_v35  ;;  %v1679_v17 = vcvt.f32.s32 %v1678_v15  ;;  %v1724_v53 = vcvt.f32.s32 %v1723_v33  ;;  %vm2122_vm15 = vcmp.eq.s32.totalorder %v7139_v14, %v1652_v60  ;;  %vm2125_vm1 = vcmp.eq.s32.totalorder %v7139_v14, %v1697_v35 }
 0x311   :  { %v3319_v6 = vadd.f32 %v3318_v54, %v3317_v44  ;;  %v3525_v23 = vsel %vm2122_vm15, 1.0, %v4078_v47  ;;  %v3528_v39 = vsel %vm2125_vm1, 1.0, %v4078_v47  ;;  %v1800_v51 = vcvt.f32.s32 %v7141_v36 }
 0x312   :  { %v1682_v45 = vadd.s32 %v1681_v20, %v1679_v17  ;;  %v1727_v29 = vadd.s32 %v1726_v37, %v1724_v53  ;;  %3906 = vmatprep.mubr.msk.f32.mxu1 %vm807_vm2, %v3525_v23  ;;  %v3320_v27 = vsel %vm807_vm2, %v3525_v23, 0.0  ;;  %v3326_v1 = vsel %vm807_vm2, %v3528_v39, 0.0  ;;  %v7142_v53 = vld [vmem:[#allocation24_spill] sm:$0xff] }
 0x313   :  { %v3321_v24 = vadd.f32 %v3320_v27, %v3319_v6  ;;  %v1708_v13 = vpop.xlane.xlu0 %1707  ;;  %3907 = vmatmul.mubr.msk.f32.gmra.mrb[34].mxu1 %vm807_vm2, %v3526_v16  ;;  %v1753_v58 = vpop.xlane.xlu1 %1752  ;;  %v1771_v37 = vshll.u32 %v1770_v38, 16  ;;  %v1846_v20 = vshll.u32 %v1845_v2, 16  ;;  %v1875_v42 = vcvt.f32.s32 %v7142_v53  ;;  %v7145_v2 = vld [vmem:[#allocation27_spill] sm:$0xff] }
 0x314   :  { %2958 = vst.msk [vmem:[%s6809_s4 + $0x120] sm:$0xff] %vm2921_vm5, %v1682_v45  ;;  %2961 = vst.msk [vmem:[%s6809_s4 + $0x138] sm:$0xff] %vm2921_vm5, %v1727_v29  ;;  %v1709_v41 = vcvt.f32.s32 %v1708_v13  ;;  %v1754_v43 = vcvt.f32.s32 %v1753_v58  ;;  %vm2124_vm3 = vcmp.eq.s32.totalorder %v7139_v14, %v1682_v45  ;;  %vm2127_vm4 = vcmp.eq.s32.totalorder %v7139_v14, %v1727_v29 }
 0x315   :  { %v3323_v57 = vadd.f32 %v3322_v59, %v3321_v24  ;;  %v3527_v32 = vsel %vm2124_vm3, 1.0, %v4078_v47  ;;  %v3530_v19 = vsel %vm2127_vm4, 1.0, %v4078_v47  ;;  %v1801_v6 = vshll.u32 %v1800_v51, 16 }
 0x316   :  { %v1712_v48 = vadd.s32 %v1711_v63, %v1709_v41  ;;  %v1757_v34 = vadd.s32 %v1756_v40, %v1754_v43  ;;  %3909 = vmatprep.mubr.msk.f32.mxu1 %vm807_vm2, %v3527_v32  ;;  %v3324_v21 = vsel %vm807_vm2, %v3527_v32, 0.0  ;;  %v3330_v4 = vsel %vm807_vm2, %v3530_v19, 0.0  ;;  %v7144_v32 = vld [vmem:[#allocation28_spill] sm:$0xff] }
 0x317   :  { %v3325_v3 = vadd.f32 %v3324_v21, %v3323_v57  ;;  %v1738_v55 = vpop.xlane.xlu0 %1737  ;;  %3910 = vmatmul.mubr.msk.f32.gmra.mrb[36].mxu1 %vm807_vm2, %v3528_v39  ;;  %v1783_v8 = vpop.xlane.xlu1 %1782  ;;  %v1830_v23 = vcvt.f32.s32 %v5568_v0  ;;  %v7143_v0 = vld [vmem:[#allocation26_spill] sm:$0xff]  ;;  %v1860_v39 = vcvt.f32.s32 %v7144_v32 }
 0x318   :  { %2960 = vst.msk [vmem:[%s6809_s4 + $0x130] sm:$0xff] %vm2921_vm5, %v1712_v48  ;;  %2963 = vst.msk [vmem:[%s6809_s4 + $0x148] sm:$0xff] %vm2921_vm5, %v1757_v34  ;;  %v1739_v62 = vcvt.f32.s32 %v1738_v55  ;;  %v1784_v52 = vcvt.f32.s32 %v1783_v8  ;;  %vm2126_vm6 = vcmp.eq.s32.totalorder %v7139_v14, %v1712_v48  ;;  %vm2129_vm7 = vcmp.eq.s32.totalorder %v7139_v14, %v1757_v34 }
 0x319   :  { %v3327_v56 = vadd.f32 %v3326_v1, %v3325_v3  ;;  %v3529_v61 = vsel %vm2126_vm6, 1.0, %v4078_v47  ;;  %v3532_v15 = vsel %vm2129_vm7, 1.0, %v4078_v47  ;;  %v1905_v11 = vcvt.f32.s32 %v7143_v0 }
 0x31a   :  { %v1742_v49 = vadd.s32 %v1741_v18, %v1739_v62  ;;  %v1787_v28 = vadd.s32 %v1786_v50, %v1784_v52  ;;  %3912 = vmatprep.mubr.msk.f32.mxu1 %vm807_vm2, %v3529_v61  ;;  %v3328_v22 = vsel %vm807_vm2, %v3529_v61, 0.0  ;;  %v3334_v40 = vsel %vm807_vm2, %v3532_v15, 0.0 }
 0x31b   :  { %v3329_v30 = vadd.f32 %v3328_v22, %v3327_v56  ;;  %v1768_v5 = vpop.xlane.xlu0 %1767  ;;  %3913 = vmatmul.mubr.msk.f32.gmra.mrb[38].mxu1 %vm807_vm2, %v3530_v19  ;;  %v1813_v60 = vpop.xlane.xlu1 %1812  ;;  %v1876_v50 = vshll.u32 %v1875_v42, 16  ;;  %v1831_v57 = vshll.u32 %v1830_v23, 16  ;;  %v1906_v38 = vshll.u32 %v1905_v11, 16  ;;  %v7146_v19 = vld [vmem:[#allocation30_spill] sm:$0xff] }
 0x31c   :  { %2962 = vst.msk [vmem:[%s6809_s4 + $0x140] sm:$0xff] %vm2921_vm5, %v1742_v49  ;;  %2965 = vst.msk [vmem:[%s6809_s4 + $0x158] sm:$0xff] %vm2921_vm5, %v1787_v28  ;;  %v1769_v35 = vcvt.f32.s32 %v1768_v5  ;;  %v1814_v9 = vcvt.f32.s32 %v1813_v60  ;;  %vm2128_vm8 = vcmp.eq.s32.totalorder %v7139_v14, %v1742_v49  ;;  %vm2131_vm9 = vcmp.eq.s32.totalorder %v7139_v14, %v1787_v28 }
 0x31d   :  { %v3331_v10 = vadd.f32 %v3330_v4, %v3329_v30  ;;  %v3531_v44 = vsel %vm2128_vm8, 1.0, %v4078_v47  ;;  %v3534_v58 = vsel %vm2131_vm9, 1.0, %v4078_v47  ;;  %v1935_v56 = vcvt.f32.s32 %v7145_v2  ;;  %v7147_v30 = vld [vmem:[#allocation29_spill] sm:$0xff] }
 0x31e   :  { %v1772_v33 = vadd.s32 %v1771_v37, %v1769_v35  ;;  %v1817_v17 = vadd.s32 %v1816_v12, %v1814_v9  ;;  %3915 = vmatprep.mubr.msk.f32.mxu1 %vm807_vm2, %v3531_v44  ;;  %v3332_v54 = vsel %vm807_vm2, %v3531_v44, 0.0  ;;  %v3338_v25 = vsel %vm807_vm2, %v3534_v58, 0.0 }
 0x31f   :  { %v3333_v16 = vadd.f32 %v3332_v54, %v3331_v10  ;;  %v1798_v45 = vpop.xlane.xlu0 %1797  ;;  %3916 = vmatmul.mubr.msk.f32.gmra.mrb[40].mxu1 %vm807_vm2, %v3532_v15  ;;  %v1843_v29 = vpop.xlane.xlu1 %1842  ;;  %v1861_v61 = vshll.u32 %v1860_v39, 16  ;;  %v1890_v49 = vcvt.f32.s32 %v7146_v19  ;;  %v1965_v5 = vcvt.f32.s32 %v7147_v30 }
 0x320   :  { %2964 = vst.msk [vmem:[%s6809_s4 + $0x150] sm:$0xff] %vm2921_vm5, %v1772_v33  ;;  %2967 = vst.msk [vmem:[%s6809_s4 + $0x168] sm:$0xff] %vm2921_vm5, %v1817_v17  ;;  %v1799_v27 = vcvt.f32.s32 %v1798_v45  ;;  %v1844_v63 = vcvt.f32.s32 %v1843_v29  ;;  %vm2130_vm10 = vcmp.eq.s32.totalorder %v7139_v14, %v1772_v33  ;;  %vm2133_vm11 = vcmp.eq.s32.totalorder %v7139_v14, %v1817_v17  ;;  %v7148_v33 = vld [vmem:[#allocation32_spill] sm:$0xff] }
 0x321   :  { %v3335_v24 = vadd.f32 %v3334_v40, %v3333_v16  ;;  %v3533_v13 = vsel %vm2130_vm10, 1.0, %v4078_v47  ;;  %v3536_v8 = vsel %vm2133_vm11, 1.0, %v4078_v47  ;;  %v1936_v44 = vshll.u32 %v1935_v56, 16 }
 0x322   :  { %v1802_v41 = vadd.s32 %v1801_v6, %v1799_v27  ;;  %v1847_v59 = vadd.s32 %v1846_v20, %v1844_v63  ;;  %3918 = vmatprep.mubr.msk.f32.mxu1 %vm807_vm2, %v3533_v13  ;;  %v3336_v43 = vsel %vm807_vm2, %v3533_v13, 0.0  ;;  %v3342_v36 = vsel %vm807_vm2, %v3536_v8, 0.0 }
 0x323   :  { %v3337_v48 = vadd.f32 %v3336_v43, %v3335_v24  ;;  %v1828_v34 = vpop.xlane.xlu0 %1827  ;;  %3919 = vmatmul.mubr.msk.f32.gmra.mrb[42].mxu1 %vm807_vm2, %v3534_v58  ;;  %v1873_v21 = vpop.xlane.xlu1 %1872  ;;  %v1891_v15 = vshll.u32 %v1890_v49, 16  ;;  %v1920_v17 = vcvt.f32.s32 %v7148_v33  ;;  %v1966_v45 = vshll.u32 %v1965_v5, 16  ;;  %v7149_v24 = vld [vmem:[#allocation31_spill] sm:$0xff] }
 0x324   :  { %2966 = vst.msk [vmem:[%s6809_s4 + $0x160] sm:$0xff] %vm2921_vm5, %v1802_v41  ;;  %2969 = vst.msk [vmem:[%s6809_s4 + $0x178] sm:$0xff] %vm2921_vm5, %v1847_v59  ;;  %v1829_v26 = vcvt.f32.s32 %v1828_v34  ;;  %v1874_v18 = vcvt.f32.s32 %v1873_v21  ;;  %vm2132_vm12 = vcmp.eq.s32.totalorder %v7139_v14, %v1802_v41  ;;  %vm2135_vm13 = vcmp.eq.s32.totalorder %v7139_v14, %v1847_v59  ;;  %v7152_v5 = vld [vmem:[#allocation35_spill] sm:$0xff] }
 0x325   :  { %v3339_v3 = vadd.f32 %v3338_v25, %v3337_v48  ;;  %v3535_v55 = vsel %vm2132_vm12, 1.0, %v4078_v47  ;;  %v3538_v4 = vsel %vm2135_vm13, 1.0, %v4078_v47  ;;  %v1995_v13 = vcvt.f32.s32 %v7149_v24 }
 0x326   :  { %v1832_v62 = vadd.s32 %v1831_v57, %v1829_v26  ;;  %v1877_v1 = vadd.s32 %v1876_v50, %v1874_v18  ;;  %3921 = vmatprep.mubr.msk.f32.mxu1 %vm807_vm2, %v3535_v55  ;;  %v3340_v52 = vsel %vm807_vm2, %v3535_v55, 0.0  ;;  %v3346_v23 = vsel %vm807_vm2, %v3538_v4, 0.0  ;;  %v7150_v55 = vld [vmem:[#allocation33_spill] sm:$0xff] }
 0x327   :  { %v3341_v28 = vadd.f32 %v3340_v52, %v3339_v3  ;;  %v1858_v22 = vpop.xlane.xlu0 %1857  ;;  %3922 = vmatmul.mubr.msk.f32.gmra.mrb[44].mxu1 %vm807_vm2, %v3536_v8  ;;  %v1903_v12 = vpop.xlane.xlu1 %1902  ;;  %v1921_v58 = vshll.u32 %v1920_v17, 16  ;;  %v1950_v41 = vcvt.f32.s32 %v5606_v46  ;;  %v2025_v46 = vcvt.f32.s32 %v5608_v7 }
 0x328   :  { %2968 = vst.msk [vmem:[%s6809_s4 + $0x170] sm:$0xff] %vm2921_vm5, %v1832_v62  ;;  %2971 = vst.msk [vmem:[%s6809_s4 + $0x188] sm:$0xff] %vm2921_vm5, %v1877_v1  ;;  %v1859_v37 = vcvt.f32.s32 %v1858_v22  ;;  %v1904_v51 = vcvt.f32.s32 %v1903_v12  ;;  %vm2134_vm14 = vcmp.eq.s32.totalorder %v7139_v14, %v1832_v62  ;;  %vm2137_vm15 = vcmp.eq.s32.totalorder %v7139_v14, %v1877_v1 }
 0x329   :  { %v3343_v60 = vadd.f32 %v3342_v36, %v3341_v28  ;;  %v3537_v35 = vsel %vm2134_vm14, 1.0, %v4078_v47  ;;  %v3540_v40 = vsel %vm2137_vm15, 1.0, %v4078_v47  ;;  %v1951_v3 = vshll.u32 %v1950_v41, 16 }
 0x32a   :  { %v1862_v9 = vadd.s32 %v1861_v61, %v1859_v37  ;;  %v1907_v20 = vadd.s32 %v1906_v38, %v1904_v51  ;;  %3924 = vmatprep.mubr.msk.f32.mxu1 %vm807_vm2, %v3537_v35  ;;  %v3344_v10 = vsel %vm807_vm2, %v3537_v35, 0.0  ;;  %v3350_v32 = vsel %vm807_vm2, %v3540_v40, 0.0  ;;  %v7151_v51 = vld [vmem:[#allocation34_spill] sm:$0xff] }
 0x32b   :  { %v3345_v54 = vadd.f32 %v3344_v10, %v3343_v60  ;;  %v1888_v53 = vpop.xlane.xlu0 %1887  ;;  %3925 = vmatmul.mubr.msk.f32.gmra.mrb[46].mxu1 %vm807_vm2, %v3538_v4  ;;  %v1933_v42 = vpop.xlane.xlu1 %1932  ;;  %v1996_v38 = vshll.u32 %v1995_v13, 16  ;;  %v1980_v8 = vcvt.f32.s32 %v7150_v55  ;;  %v2026_v61 = vshll.u32 %v2025_v46, 16 }
 0x32c   :  { %2970 = vst.msk [vmem:[%s6809_s4 + $0x180] sm:$0xff] %vm2921_vm5, %v1862_v9  ;;  %2973 = vst.msk [vmem:[%s6809_s4 + $0x198] sm:$0xff] %vm2921_vm5, %v1907_v20  ;;  %v1889_v6 = vcvt.f32.s32 %v1888_v53  ;;  %v1934_v16 = vcvt.f32.s32 %v1933_v42  ;;  %vm2136_vm1 = vcmp.eq.s32.totalorder %v7139_v14, %v1862_v9  ;;  %vm2139_vm3 = vcmp.eq.s32.totalorder %v7139_v14, %v1907_v20 }
 0x32d   :  { %v3347_v29 = vadd.f32 %v3346_v23, %v3345_v54  ;;  %v3539_v27 = vsel %vm2136_vm1, 1.0, %v4078_v47  ;;  %v3542_v21 = vsel %vm2139_vm3, 1.0, %v4078_v47  ;;  %v1981_v36 = vshll.u32 %v1980_v8, 16 }
 0x32e   :  { %v1892_v63 = vadd.s32 %v1891_v15, %v1889_v6  ;;  %v1937_v0 = vadd.s32 %v1936_v44, %v1934_v16  ;;  %3927 = vmatprep.mubr.msk.f32.mxu1 %vm807_vm2, %v3539_v27  ;;  %v3348_v11 = vsel %vm807_vm2, %v3539_v27, 0.0  ;;  %v3354_v2 = vsel %vm807_vm2, %v3542_v21, 0.0  ;;  %v7153_v16 = vld [vmem:[#allocation36_spill] sm:$0xff] }
 0x32f   :  { %v3349_v59 = vadd.f32 %v3348_v11, %v3347_v29  ;;  %v1918_v43 = vpop.xlane.xlu0 %1917  ;;  %3928 = vmatmul.mubr.msk.f32.gmra.mrb[48].mxu1 %vm807_vm2, %v3540_v40  ;;  %v1963_v50 = vpop.xlane.xlu1 %1962  ;;  %v2010_v30 = vcvt.f32.s32 %v7151_v51  ;;  %v2055_v60 = vcvt.f32.s32 %v7152_v5 }
 0x330   :  { %2972 = vst.msk [vmem:[%s6809_s4 + $0x190] sm:$0xff] %vm2921_vm5, %v1892_v63  ;;  %2975 = vst.msk [vmem:[%s6809_s4 + $0x1a8] sm:$0xff] %vm2921_vm5, %v1937_v0  ;;  %v1919_v57 = vcvt.f32.s32 %v1918_v43  ;;  %v1964_v39 = vcvt.f32.s32 %v1963_v50  ;;  %vm2138_vm4 = vcmp.eq.s32.totalorder %v7139_v14, %v1892_v63  ;;  %vm2141_vm6 = vcmp.eq.s32.totalorder %v7139_v14, %v1937_v0  ;;  %v7154_v50 = vld [vmem:[#allocation37_spill] sm:$0xff] }
 0x331   :  { %v3351_v48 = vadd.f32 %v3350_v32, %v3349_v59  ;;  %v3541_v34 = vsel %vm2138_vm4, 1.0, %v4078_v47  ;;  %v3544_v28 = vsel %vm2141_vm6, 1.0, %v4078_v47  ;;  %v2011_v6 = vshll.u32 %v2010_v30, 16 }
 0x332   :  { %v1922_v26 = vadd.s32 %v1921_v58, %v1919_v57  ;;  %v1967_v25 = vadd.s32 %v1966_v45, %v1964_v39  ;;  %3930 = vmatprep.mubr.msk.f32.mxu1 %vm807_vm2, %v3541_v34  ;;  %v3352_v18 = vsel %vm807_vm2, %v3541_v34, 0.0  ;;  %v3358_v10 = vsel %vm807_vm2, %v3544_v28, 0.0 }
 0x333   :  { %v3353_v7 = vadd.f32 %v3352_v18, %v3351_v48  ;;  %v1948_v62 = vpop.xlane.xlu0 %1947  ;;  %3931 = vmatmul.mubr.msk.f32.gmra.mrb[50].mxu1 %vm807_vm2, %v3542_v21  ;;  %v1993_v1 = vpop.xlane.xlu1 %1992  ;;  %v2056_v23 = vshll.u32 %v2055_v60, 16  ;;  %v2040_v45 = vcvt.f32.s32 %v7153_v16  ;;  %v2085_v57 = vcvt.f32.s32 %v7154_v50 }
 0x334   :  { %2974 = vst.msk [vmem:[%s6809_s4 + $0x1a0] sm:$0xff] %vm2921_vm5, %v1922_v26  ;;  %2977 = vst.msk [vmem:[%s6809_s4 + $0x1b8] sm:$0xff] %vm2921_vm5, %v1967_v25  ;;  %v1949_v52 = vcvt.f32.s32 %v1948_v62  ;;  %v1994_v56 = vcvt.f32.s32 %v1993_v1  ;;  %vm2140_vm7 = vcmp.eq.s32.totalorder %v7139_v14, %v1922_v26  ;;  %vm2143_vm8 = vcmp.eq.s32.totalorder %v7139_v14, %v1967_v25 }
 0x335   :  { %v3355_v19 = vadd.f32 %v3354_v2, %v3353_v7  ;;  %v3543_v49 = vsel %vm2140_vm7, 1.0, %v4078_v47  ;;  %v3546_v17 = vsel %vm2143_vm8, 1.0, %v4078_v47  ;;  %v2041_v46 = vshll.u32 %v2040_v45, 16 }
 0x336   :  { %v1952_v22 = vadd.s32 %v1951_v3, %v1949_v52  ;;  %v1997_v12 = vadd.s32 %v1996_v38, %v1994_v56  ;;  %3933 = vmatprep.mubr.msk.f32.mxu1 %vm807_vm2, %v3543_v49  ;;  %v3356_v37 = vsel %vm807_vm2, %v3543_v49, 0.0  ;;  %v3362_v0 = vsel %vm807_vm2, %v3546_v17, 0.0 }
 0x337   :  { %v3357_v35 = vadd.f32 %v3356_v37, %v3355_v19  ;;  %v1978_v4 = vpop.xlane.xlu0 %1977  ;;  %3934 = vmatmul.mubr.msk.f32.gmra.mrb[52].mxu1 %vm807_vm2, %v3544_v28  ;;  %v2023_v9 = vpop.xlane.xlu1 %2022  ;;  %v2086_v3 = vshll.u32 %v2085_v57, 16  ;;  %v2070_v7 = vcvt.f32.s32 %v5643_v31 }
 0x338   :  { %2976 = vst.msk [vmem:[%s6809_s4 + $0x1b0] sm:$0xff] %vm2921_vm5, %v1952_v22  ;;  %2979 = vst.msk [vmem:[%s6809_s4 + $0x1c8] sm:$0xff] %vm2921_vm5, %v1997_v12  ;;  %v1979_v20 = vcvt.f32.s32 %v1978_v4  ;;  %v2024_v44 = vcvt.f32.s32 %v2023_v9  ;;  %vm2142_vm9 = vcmp.eq.s32.totalorder %v7139_v14, %v1952_v22  ;;  %vm2145_vm10 = vcmp.eq.s32.totalorder %v7139_v14, %v1997_v12 }
 0x339   :  { %v3359_v15 = vadd.f32 %v3358_v10, %v3357_v35  ;;  %v3545_v33 = vsel %vm2142_vm9, 1.0, %v4078_v47  ;;  %v3548_v58 = vsel %vm2145_vm10, 1.0, %v4078_v47  ;;  %v2071_v28 = vshll.u32 %v2070_v7, 16 }
 0x33a   :  { %v1982_v54 = vadd.s32 %v1981_v36, %v1979_v20  ;;  %v2027_v53 = vadd.s32 %v2026_v61, %v2024_v44  ;;  %3936 = vmatprep.mubr.msk.f32.mxu1 %vm807_vm2, %v3545_v33  ;;  %v3360_v42 = vsel %vm807_vm2, %v3545_v33, 0.0  ;;  %v3366_v34 = vsel %vm807_vm2, %v3548_v58, 0.0 }
 0x33b   :  { %v3361_v29 = vadd.f32 %v3360_v42, %v3359_v15  ;;  %v2008_v27 = vpop.xlane.xlu0 %2007  ;;  %3937 = vmatmul.mubr.msk.f32.gmra.mrb[54].mxu1 %vm807_vm2, %v3546_v17  ;;  %v2053_v40 = vpop.xlane.xlu1 %2052 }
 0x33c   :  { %2978 = vst.msk [vmem:[%s6809_s4 + $0x1c0] sm:$0xff] %vm2921_vm5, %v1982_v54  ;;  %2981 = vst.msk [vmem:[%s6809_s4 + $0x1d8] sm:$0xff] %vm2921_vm5, %v2027_v53  ;;  %v2009_v63 = vcvt.f32.s32 %v2008_v27  ;;  %v2054_v11 = vcvt.f32.s32 %v2053_v40  ;;  %vm2144_vm11 = vcmp.eq.s32.totalorder %v7139_v14, %v1982_v54  ;;  %vm2147_vm12 = vcmp.eq.s32.totalorder %v7139_v14, %v2027_v53  ;;  %v3967_v53 = vld [vmem:[%s6805_s0] sm:$0xff] }
 0x33d   :  { %v3363_v24 = vadd.f32 %v3362_v0, %v3361_v29  ;;  %v3547_v13 = vsel %vm2144_vm11, 1.0, %v4078_v47  ;;  %v3550_v25 = vsel %vm2147_vm12, 1.0, %v4078_v47  ;;  %v3968_v29 = vld [vmem:[%s6805_s0 + $0x18] sm:$0xff]  ;;  %v3969_v0 = vld [vmem:[%s6805_s0 + $0x10] sm:$0xff] }
 0x33e   :  { %v2012_v41 = vadd.s32 %v2011_v6, %v2009_v63  ;;  %v2057_v59 = vadd.s32 %v2056_v23, %v2054_v11  ;;  %3939 = vmatprep.mubr.msk.f32.mxu1 %vm807_vm2, %v3547_v13  ;;  %v3364_v43 = vsel %vm807_vm2, %v3547_v13, 0.0  ;;  %v3370_v62 = vsel %vm807_vm2, %v3550_v25, 0.0 }
 0x33f   :  { %v3365_v32 = vadd.f32 %v3364_v43, %v3363_v24  ;;  %v2038_v39 = vpop.xlane.xlu0 %2037  ;;  %3940 = vmatmul.mubr.msk.f32.gmra.mrb[56].mxu1 %vm807_vm2, %v3548_v58 }
 0x340   :  { %2980 = vst.msk [vmem:[%s6809_s4 + $0x1d0] sm:$0xff] %vm2921_vm5, %v2012_v41  ;;  %2983 = vst.msk [vmem:[%s6809_s4 + $0x1e8] sm:$0xff] %vm2921_vm5, %v2057_v59  ;;  %v2039_v48 = vcvt.f32.s32 %v2038_v39  ;;  %vm2146_vm13 = vcmp.eq.s32.totalorder %v7139_v14, %v2012_v41  ;;  %vm2149_vm14 = vcmp.eq.s32.totalorder %v7139_v14, %v2057_v59  ;;  %v3970_v59 = vld [vmem:[%s6805_s0 + $0x28] sm:$0xff] }
 0x341   :  { %v3367_v21 = vadd.f32 %v3366_v34, %v3365_v32  ;;  %v3549_v26 = vsel %vm2146_vm13, 1.0, %v4078_v47  ;;  %v3552_v56 = vsel %vm2149_vm14, 1.0, %v4078_v47  ;;  %v3971_v32 = vld [vmem:[%s6805_s0 + $0x20] sm:$0xff] }
 0x342   :  { %v2042_v18 = vadd.s32 %v2041_v46, %v2039_v48  ;;  %3942 = vmatprep.mubr.msk.f32.mxu1 %vm807_vm2, %v3549_v26  ;;  %v3368_v38 = vsel %vm807_vm2, %v3549_v26, 0.0  ;;  %v3374_v12 = vsel %vm807_vm2, %v3552_v56, 0.0 }
 0x343   :  { %v3369_v55 = vadd.f32 %v3368_v38, %v3367_v21  ;;  %3943 = vmatmul.mubr.msk.f32.gmra.mrb[58].mxu1 %vm807_vm2, %v3550_v25  ;;  %v2083_v8 = vpop.xlane.xlu1 %2082 }
 0x344   :  { %2982 = vst.msk [vmem:[%s6809_s4 + $0x1e0] sm:$0xff] %vm2921_vm5, %v2042_v18  ;;  %v2084_v1 = vcvt.f32.s32 %v2083_v8  ;;  %vm2148_vm15 = vcmp.eq.s32.totalorder %v7139_v14, %v2042_v18  ;;  %v3972_v18 = vld [vmem:[%s6805_s0 + $0x38] sm:$0xff]  ;;  %v3973_v8 = vld [vmem:[%s6805_s0 + $0x30] sm:$0xff] }
 0x345   :  { %v3371_v52 = vadd.f32 %v3370_v62, %v3369_v55  ;;  %v3551_v2 = vsel %vm2148_vm15, 1.0, %v4078_v47 }
 0x346   :  { %v2087_v61 = vadd.s32 %v2086_v3, %v2084_v1  ;;  %3945 = vmatprep.mubr.msk.f32.mxu1 %vm807_vm2, %v3551_v2  ;;  %v3372_v31 = vsel %vm807_vm2, %v3551_v2, 0.0 }
 0x347   :  { %v3373_v19 = vadd.f32 %v3372_v31, %v3371_v52  ;;  %v2068_v49 = vpop.xlane.xlu0 %2067  ;;  %3946 = vmatmul.mubr.msk.f32.gmra.mrb[60].mxu1 %vm807_vm2, %v3552_v56  ;;  %v3974_v31 = vld [vmem:[%s6805_s0 + $0x48] sm:$0xff] }
 0x348   :  { %2985 = vst.msk [vmem:[%s6809_s4 + $0x1f8] sm:$0xff] %vm2921_vm5, %v2087_v61  ;;  %v2069_v22 = vcvt.f32.s32 %v2068_v49  ;;  %vm2151_vm1 = vcmp.eq.s32.totalorder %v7139_v14, %v2087_v61 }
 0x349   :  { %v3375_v37 = vadd.f32 %v3374_v12, %v3373_v19  ;;  %v3554_v30 = vsel %vm2151_vm1, 1.0, %v4078_v47 }
 0x34a   :  { %v2072_v36 = vadd.s32 %v2071_v28, %v2069_v22  ;;  %v3378_v35 = vsel %vm807_vm2, %v3554_v30, 0.0  ;;  %v3975_v22 = vld [vmem:[%s6805_s0 + $0x40] sm:$0xff] }
 0x34c   :  { %2984 = vst.msk [vmem:[%s6809_s4 + $0x1f0] sm:$0xff] %vm2921_vm5, %v2072_v36  ;;  %vm2150_vm3 = vcmp.eq.s32.totalorder %v7139_v14, %v2072_v36  ;;  %vm3386_vm5 = vcmask 122880  }
 0x34d   :  { %v3553_v51 = vsel %vm2150_vm3, 1.0, %v4078_v47  ;;  %v3966_v47 = vld [vmem:[%s6805_s0 + $0x8] sm:$0xff] }
 0x34e   :  { %3948 = vmatprep.mubr.msk.f32.mxu1 %vm807_vm2, %v3553_v51  ;;  %v3376_v5 = vsel %vm807_vm2, %v3553_v51, 0.0 }
 0x34f   :  { %v3377_v60 = vadd.f32 %v3376_v5, %v3375_v37  ;;  %3949 = vmatmul.mubr.msk.f32.gmra.mrb[62].mxu1 %vm807_vm2, %v3554_v30 }
 0x351   :  { %v3379_v4 = vadd.f32 %v3378_v35, %v3377_v60  ;;  %v3976_v35 = vld [vmem:[%s6805_s0 + $0x58] sm:$0xff] }
 0x353   :  { %v3380_v9 = vrot.slane %v3379_v4, 4 }
 0x355   :  { %v3381_v20 = vadd.f32 %v3380_v9, %v3379_v4 }
 0x357   :  { %v3382_v10 = vrot.slane %v3381_v20, 2 }
 0x359   :  { %v3383_v44 = vadd.f32 %v3382_v10, %v3381_v20  ;;  %v3977_v10 = vld [vmem:[%s6805_s0 + $0x50] sm:$0xff] }
 0x35b   :  { %v3384_v15 = vrot.slane %v3383_v44, 1 }
 0x35d   :  { %v3385_v14 = vadd.f32 %v3384_v15, %v3383_v44 }
 0x35f   :  { %3387 = vst.msk [vmem:[#allocation4] sm:$0x1] %vm3386_vm5, %v3385_v14 }
 0x396   :  { %v3857_v33 = vpop.f32.mrb[0].mxu1 }
 0x397   :  { %2858 = vst.msk [vmem:[%s6808_s3 + $0x8] sm:$0xff] %vm87_vm0, %v3857_v33  ;;  %v2987_v17 = vsub.f32 %v3857_v33, %v3966_v47  ;;  %v2538_v54 = vpop.f32.mrb[1].mxu1 }
 0x398   :  { %2857 = vst.msk [vmem:[%s6808_s3] sm:$0xff] %vm87_vm0, %v2538_v54  ;;  %v2986_v42 = vsub.f32 %v2538_v54, %v3967_v53  ;;  %v3978_v53 = vld [vmem:[%s6805_s0 + $0x68] sm:$0xff] }
 0x399   :  { %v3051_v6 = vmul.f32 %v2987_v17, %v2987_v17 }
 0x39a   :  { %v3050_v23 = vmul.f32 %v2986_v42, %v2986_v42  ;;  %v3860_v16 = vpop.f32.mrb[2].mxu1 }
 0x39b   :  { %v3115_v45 = vsel %vm87_vm0, %v3051_v6, 0.0  ;;  %2860 = vst.msk [vmem:[%s6808_s3 + $0x18] sm:$0xff] %vm87_vm0, %v3860_v16  ;;  %v2989_v27 = vsub.f32 %v3860_v16, %v3968_v29  ;;  %v2548_v40 = vpop.f32.mrb[3].mxu1  ;;  %v3979_v16 = vld [vmem:[%s6805_s0 + $0x60] sm:$0xff] }
 0x39c   :  { %v3114_v63 = vsel %vm87_vm0, %v3050_v23, 0.0  ;;  %2859 = vst.msk [vmem:[%s6808_s3 + $0x10] sm:$0xff] %vm87_vm0, %v2548_v40  ;;  %v2988_v11 = vsub.f32 %v2548_v40, %v3969_v0 }
 0x39d   :  { %v3116_v24 = vadd.f32 %v3115_v45, %v3114_v63  ;;  %v3053_v13 = vmul.f32 %v2989_v27, %v2989_v27 }
 0x39e   :  { %v3052_v58 = vmul.f32 %v2988_v11, %v2988_v11  ;;  %v3863_v41 = vpop.f32.mrb[4].mxu1 }
 0x39f   :  { %2862 = vst.msk [vmem:[%s6808_s3 + $0x28] sm:$0xff] %vm87_vm0, %v3863_v41  ;;  %v2991_v43 = vsub.f32 %v3863_v41, %v3970_v59  ;;  %v2558_v50 = vpop.f32.mrb[5].mxu1  ;;  %v3119_v48 = vsel %vm87_vm0, %v3053_v13, 0.0  ;;  %v3981_v59 = vld [vmem:[%s6805_s0 + $0x70] sm:$0xff] }
 0x3a0   :  { %v3117_v57 = vsel %vm87_vm0, %v3052_v58, 0.0  ;;  %2861 = vst.msk [vmem:[%s6808_s3 + $0x20] sm:$0xff] %vm87_vm0, %v2558_v50  ;;  %v2990_v39 = vsub.f32 %v2558_v50, %v3971_v32 }
 0x3a1   :  { %v3118_v46 = vadd.f32 %v3117_v57, %v3116_v24  ;;  %v3055_v34 = vmul.f32 %v2991_v43, %v2991_v43  ;;  %v3980_v24 = vld [vmem:[%s6805_s0 + $0x78] sm:$0xff] }
 0x3a2   :  { %v3054_v21 = vmul.f32 %v2990_v39, %v2990_v39  ;;  %v3866_v26 = vpop.f32.mrb[6].mxu1 }
 0x3a3   :  { %v3120_v25 = vadd.f32 %v3119_v48, %v3118_v46  ;;  %2864 = vst.msk [vmem:[%s6808_s3 + $0x38] sm:$0xff] %vm87_vm0, %v3866_v26  ;;  %v2993_v38 = vsub.f32 %v3866_v26, %v3972_v18  ;;  %v2568_v3 = vpop.f32.mrb[7].mxu1  ;;  %v3123_v1 = vsel %vm87_vm0, %v3055_v34, 0.0  ;;  %v3982_v34 = vld [vmem:[%s6805_s0 + $0x88] sm:$0xff]  ;;  %v3983_v18 = vld [vmem:[%s6805_s0 + $0x80] sm:$0xff] }
 0x3a4   :  { %v3121_v55 = vsel %vm87_vm0, %v3054_v21, 0.0  ;;  %2863 = vst.msk [vmem:[%s6808_s3 + $0x30] sm:$0xff] %vm87_vm0, %v2568_v3  ;;  %v2992_v7 = vsub.f32 %v2568_v3, %v3973_v8 }
 0x3a5   :  { %v3122_v62 = vadd.f32 %v3121_v55, %v3120_v25  ;;  %v3057_v52 = vmul.f32 %v2993_v38, %v2993_v38 }
 0x3a6   :  { %v3056_v2 = vmul.f32 %v2992_v7, %v2992_v7  ;;  %v3869_v56 = vpop.f32.mrb[8].mxu1 }
 0x3a7   :  { %v3124_v61 = vadd.f32 %v3123_v1, %v3122_v62  ;;  %2866 = vst.msk [vmem:[%s6808_s3 + $0x48] sm:$0xff] %vm87_vm0, %v3869_v56  ;;  %v2995_v19 = vsub.f32 %v3869_v56, %v3974_v31  ;;  %v2578_v49 = vpop.f32.mrb[9].mxu1  ;;  %v3127_v36 = vsel %vm87_vm0, %v3057_v52, 0.0 }
 0x3a8   :  { %v3125_v28 = vsel %vm87_vm0, %v3056_v2, 0.0  ;;  %2865 = vst.msk [vmem:[%s6808_s3 + $0x40] sm:$0xff] %vm87_vm0, %v2578_v49  ;;  %v2994_v12 = vsub.f32 %v2578_v49, %v3975_v22 }
 0x3a9   :  { %v3126_v37 = vadd.f32 %v3125_v28, %v3124_v61  ;;  %v3059_v51 = vmul.f32 %v2995_v19, %v2995_v19  ;;  %v3984_v61 = vld [vmem:[%s6805_s0 + $0x98] sm:$0xff]  ;;  %v3985_v28 = vld [vmem:[%s6805_s0 + $0x90] sm:$0xff] }
 0x3aa   :  { %v3058_v30 = vmul.f32 %v2994_v12, %v2994_v12  ;;  %v3872_v5 = vpop.f32.mrb[10].mxu1 }
 0x3ab   :  { %v3128_v60 = vadd.f32 %v3127_v36, %v3126_v37  ;;  %2868 = vst.msk [vmem:[%s6808_s3 + $0x58] sm:$0xff] %vm87_vm0, %v3872_v5  ;;  %v2997_v4 = vsub.f32 %v3872_v5, %v3976_v35  ;;  %v2588_v9 = vpop.f32.mrb[11].mxu1  ;;  %v3131_v14 = vsel %vm87_vm0, %v3059_v51, 0.0 }
 0x3ac   :  { %v3129_v20 = vsel %vm87_vm0, %v3058_v30, 0.0  ;;  %2867 = vst.msk [vmem:[%s6808_s3 + $0x50] sm:$0xff] %vm87_vm0, %v2588_v9  ;;  %v2996_v44 = vsub.f32 %v2588_v9, %v3977_v10 }
 0x3ad   :  { %v3130_v15 = vadd.f32 %v3129_v20, %v3128_v60  ;;  %v3061_v33 = vmul.f32 %v2997_v4, %v2997_v4  ;;  %v3986_v60 = vld [vmem:[%s6805_s0 + $0xa8] sm:$0xff]  ;;  %v3987_v20 = vld [vmem:[%s6805_s0 + $0xa0] sm:$0xff] }
 0x3ae   :  { %v3060_v47 = vmul.f32 %v2996_v44, %v2996_v44  ;;  %v3875_v17 = vpop.f32.mrb[12].mxu1 }
 0x3af   :  { %v3132_v54 = vadd.f32 %v3131_v14, %v3130_v15  ;;  %2870 = vst.msk [vmem:[%s6808_s3 + $0x68] sm:$0xff] %vm87_vm0, %v3875_v17  ;;  %v2999_v42 = vsub.f32 %v3875_v17, %v3978_v53  ;;  %v2598_v6 = vpop.f32.mrb[13].mxu1  ;;  %v3135_v27 = vsel %vm87_vm0, %v3061_v33, 0.0 }
 0x3b0   :  { %v3133_v23 = vsel %vm87_vm0, %v3060_v47, 0.0  ;;  %2869 = vst.msk [vmem:[%s6808_s3 + $0x60] sm:$0xff] %vm87_vm0, %v2598_v6  ;;  %v2998_v45 = vsub.f32 %v2598_v6, %v3979_v16 }
 0x3b1   :  { %v3134_v29 = vadd.f32 %v3133_v23, %v3132_v54  ;;  %v3063_v40 = vmul.f32 %v2999_v42, %v2999_v42  ;;  %v3988_v54 = vld [vmem:[%s6805_s0 + $0xb8] sm:$0xff]  ;;  %v3989_v23 = vld [vmem:[%s6805_s0 + $0xb0] sm:$0xff] }
 0x3b2   :  { %v3062_v63 = vmul.f32 %v2998_v45, %v2998_v45  ;;  %v3878_v0 = vpop.f32.mrb[14].mxu1 }
 0x3b3   :  { %v3136_v11 = vadd.f32 %v3135_v27, %v3134_v29  ;;  %2872 = vst.msk [vmem:[%s6808_s3 + $0x78] sm:$0xff] %vm87_vm0, %v3878_v0  ;;  %v3001_v13 = vsub.f32 %v3878_v0, %v3980_v24  ;;  %v2608_v58 = vpop.f32.mrb[15].mxu1  ;;  %v3139_v57 = vsel %vm87_vm0, %v3063_v40, 0.0  ;;  %v3990_v40 = vld [vmem:[%s6805_s0 + $0xc8] sm:$0xff]  ;;  %v3991_v24 = vld [vmem:[%s6805_s0 + $0xc0] sm:$0xff] }
 0x3b4   :  { %v3137_v41 = vsel %vm87_vm0, %v3062_v63, 0.0  ;;  %2871 = vst.msk [vmem:[%s6808_s3 + $0x70] sm:$0xff] %vm87_vm0, %v2608_v58  ;;  %v3000_v43 = vsub.f32 %v2608_v58, %v3981_v59 }
 0x3b5   :  { %v3138_v50 = vadd.f32 %v3137_v41, %v3136_v11  ;;  %v3065_v32 = vmul.f32 %v3001_v13, %v3001_v13 }
 0x3b6   :  { %v3064_v39 = vmul.f32 %v3000_v43, %v3000_v43  ;;  %v3881_v46 = vpop.f32.mrb[16].mxu1 }
 0x3b7   :  { %v3140_v48 = vadd.f32 %v3139_v57, %v3138_v50  ;;  %2874 = vst.msk [vmem:[%s6808_s3 + $0x88] sm:$0xff] %vm87_vm0, %v3881_v46  ;;  %v3003_v21 = vsub.f32 %v3881_v46, %v3982_v34  ;;  %v2618_v26 = vpop.f32.mrb[17].mxu1  ;;  %v3143_v55 = vsel %vm87_vm0, %v3065_v32, 0.0  ;;  %v3992_v32 = vld [vmem:[%s6805_s0 + $0xd8] sm:$0xff]  ;;  %v3993_v34 = vld [vmem:[%s6805_s0 + $0xd0] sm:$0xff] }
 0x3b8   :  { %v3141_v25 = vsel %vm87_vm0, %v3064_v39, 0.0  ;;  %2873 = vst.msk [vmem:[%s6808_s3 + $0x80] sm:$0xff] %vm87_vm0, %v2618_v26  ;;  %v3002_v38 = vsub.f32 %v2618_v26, %v3983_v18 }
 0x3b9   :  { %v3142_v3 = vadd.f32 %v3141_v25, %v3140_v48  ;;  %v3067_v8 = vmul.f32 %v3003_v21, %v3003_v21 }
 0x3ba   :  { %v3066_v7 = vmul.f32 %v3002_v38, %v3002_v38 }
 0x3bb   :  { %v3144_v62 = vadd.f32 %v3143_v55, %v3142_v3  ;;  %v3147_v2 = vsel %vm87_vm0, %v3067_v8, 0.0  ;;  %v3994_v8 = vld [vmem:[%s6805_s0 + $0xe8] sm:$0xff] }
 0x3bc   :  { %v3145_v1 = vsel %vm87_vm0, %v3066_v7, 0.0 }
 0x3bd   :  { %v3146_v52 = vadd.f32 %v3145_v1, %v3144_v62 }
 0x3be   :  { %v3884_v56 = vpop.f32.mrb[18].mxu1 }
 0x3bf   :  { %2876 = vst.msk [vmem:[%s6808_s3 + $0x98] sm:$0xff] %vm87_vm0, %v3884_v56  ;;  %v3005_v31 = vsub.f32 %v3884_v56, %v3984_v61  ;;  %v2628_v19 = vpop.f32.mrb[19].mxu1  ;;  %v3148_v49 = vadd.f32 %v3147_v2, %v3146_v52  ;;  %v3995_v52 = vld [vmem:[%s6805_s0 + $0xe0] sm:$0xff] }
 0x3c0   :  { %2875 = vst.msk [vmem:[%s6808_s3 + $0x90] sm:$0xff] %vm87_vm0, %v2628_v19  ;;  %v3004_v22 = vsub.f32 %v2628_v19, %v3985_v28 }
 0x3c1   :  { %v3069_v12 = vmul.f32 %v3005_v31, %v3005_v31 }
 0x3c2   :  { %v3068_v37 = vmul.f32 %v3004_v22, %v3004_v22  ;;  %v3996_v22 = vld [vmem:[%s6805_s0 + $0xf8] sm:$0xff] }
 0x3c3   :  { %v3151_v30 = vsel %vm87_vm0, %v3069_v12, 0.0 }
 0x3c4   :  { %v3149_v36 = vsel %vm87_vm0, %v3068_v37, 0.0 }
 0x3c5   :  { %v3150_v51 = vadd.f32 %v3149_v36, %v3148_v49 }
 0x3c6   :  { %v3887_v5 = vpop.f32.mrb[20].mxu1 }
 0x3c7   :  { %2878 = vst.msk [vmem:[%s6808_s3 + $0xa8] sm:$0xff] %vm87_vm0, %v3887_v5  ;;  %v3007_v35 = vsub.f32 %v3887_v5, %v3986_v60  ;;  %v2638_v4 = vpop.f32.mrb[21].mxu1  ;;  %v3152_v9 = vadd.f32 %v3151_v30, %v3150_v51  ;;  %v3997_v51 = vld [vmem:[%s6805_s0 + $0xf0] sm:$0xff] }
 0x3c8   :  { %2877 = vst.msk [vmem:[%s6808_s3 + $0xa0] sm:$0xff] %vm87_vm0, %v2638_v4  ;;  %v3006_v10 = vsub.f32 %v2638_v4, %v3987_v20 }
 0x3c9   :  { %v3071_v44 = vmul.f32 %v3007_v35, %v3007_v35 }
 0x3ca   :  { %v3070_v15 = vmul.f32 %v3006_v10, %v3006_v10  ;;  %v3998_v10 = vld [vmem:[%s6805_s0 + $0x108] sm:$0xff] }
 0x3cb   :  { %v3155_v47 = vsel %vm87_vm0, %v3071_v44, 0.0 }
 0x3cc   :  { %v3153_v14 = vsel %vm87_vm0, %v3070_v15, 0.0 }
 0x3cd   :  { %v3154_v33 = vadd.f32 %v3153_v14, %v3152_v9 }
 0x3ce   :  { %v3890_v17 = vpop.f32.mrb[22].mxu1 }
 0x3cf   :  { %2880 = vst.msk [vmem:[%s6808_s3 + $0xb8] sm:$0xff] %vm87_vm0, %v3890_v17  ;;  %v3009_v53 = vsub.f32 %v3890_v17, %v3988_v54  ;;  %v2648_v42 = vpop.f32.mrb[23].mxu1  ;;  %v3156_v6 = vadd.f32 %v3155_v47, %v3154_v33  ;;  %v3999_v33 = vld [vmem:[%s6805_s0 + $0x100] sm:$0xff] }
 0x3d0   :  { %2879 = vst.msk [vmem:[%s6808_s3 + $0xb0] sm:$0xff] %vm87_vm0, %v2648_v42  ;;  %v3008_v16 = vsub.f32 %v2648_v42, %v3989_v23 }
 0x3d1   :  { %v3073_v45 = vmul.f32 %v3009_v53, %v3009_v53 }
 0x3d2   :  { %v3072_v29 = vmul.f32 %v3008_v16, %v3008_v16  ;;  %v3893_v27 = vpop.f32.mrb[24].mxu1  ;;  %v4000_v16 = vld [vmem:[%s6805_s0 + $0x118] sm:$0xff] }
 0x3d3   :  { %2882 = vst.msk [vmem:[%s6808_s3 + $0xc8] sm:$0xff] %vm87_vm0, %v3893_v27  ;;  %v3011_v63 = vsub.f32 %v3893_v27, %v3990_v40  ;;  %v2658_v0 = vpop.f32.mrb[25].mxu1  ;;  %v3159_v41 = vsel %vm87_vm0, %v3073_v45, 0.0  ;;  %v4001_v40 = vld [vmem:[%s6805_s0 + $0x110] sm:$0xff] }
 0x3d4   :  { %v3157_v11 = vsel %vm87_vm0, %v3072_v29, 0.0  ;;  %2881 = vst.msk [vmem:[%s6808_s3 + $0xc0] sm:$0xff] %vm87_vm0, %v2658_v0  ;;  %v3010_v13 = vsub.f32 %v2658_v0, %v3991_v24 }
 0x3d5   :  { %v3158_v58 = vadd.f32 %v3157_v11, %v3156_v6  ;;  %v3075_v59 = vmul.f32 %v3011_v63, %v3011_v63 }
 0x3d6   :  { %v3074_v43 = vmul.f32 %v3010_v13, %v3010_v13  ;;  %v3896_v50 = vpop.f32.mrb[26].mxu1 }
 0x3d7   :  { %v3160_v57 = vadd.f32 %v3159_v41, %v3158_v58  ;;  %2884 = vst.msk [vmem:[%s6808_s3 + $0xd8] sm:$0xff] %vm87_vm0, %v3896_v50  ;;  %v3013_v39 = vsub.f32 %v3896_v50, %v3992_v32  ;;  %v2668_v46 = vpop.f32.mrb[27].mxu1  ;;  %v3163_v25 = vsel %vm87_vm0, %v3075_v59, 0.0  ;;  %v4002_v59 = vld [vmem:[%s6805_s0 + $0x128] sm:$0xff]  ;;  %v4003_v32 = vld [vmem:[%s6805_s0 + $0x120] sm:$0xff] }
 0x3d8   :  { %v3161_v48 = vsel %vm87_vm0, %v3074_v43, 0.0  ;;  %2883 = vst.msk [vmem:[%s6808_s3 + $0xd0] sm:$0xff] %vm87_vm0, %v2668_v46  ;;  %v3012_v21 = vsub.f32 %v2668_v46, %v3993_v34 }
 0x3d9   :  { %v3162_v26 = vadd.f32 %v3161_v48, %v3160_v57  ;;  %v3077_v18 = vmul.f32 %v3013_v39, %v3013_v39 }
 0x3da   :  { %v3076_v38 = vmul.f32 %v3012_v21, %v3012_v21  ;;  %v3899_v3 = vpop.f32.mrb[28].mxu1 }
 0x3db   :  { %v3164_v55 = vadd.f32 %v3163_v25, %v3162_v26  ;;  %2886 = vst.msk [vmem:[%s6808_s3 + $0xe8] sm:$0xff] %vm87_vm0, %v3899_v3  ;;  %v3015_v7 = vsub.f32 %v3899_v3, %v3994_v8  ;;  %v2678_v62 = vpop.f32.mrb[29].mxu1  ;;  %v3167_v61 = vsel %vm87_vm0, %v3077_v18, 0.0  ;;  %v4004_v18 = vld [vmem:[%s6805_s0 + $0x138] sm:$0xff]  ;;  %v4005_v8 = vld [vmem:[%s6805_s0 + $0x130] sm:$0xff] }
 0x3dc   :  { %v3165_v1 = vsel %vm87_vm0, %v3076_v38, 0.0  ;;  %2885 = vst.msk [vmem:[%s6808_s3 + $0xe0] sm:$0xff] %vm87_vm0, %v2678_v62  ;;  %v3014_v2 = vsub.f32 %v2678_v62, %v3995_v52 }
 0x3dd   :  { %v3166_v56 = vadd.f32 %v3165_v1, %v3164_v55  ;;  %v3079_v31 = vmul.f32 %v3015_v7, %v3015_v7 }
 0x3de   :  { %v3078_v19 = vmul.f32 %v3014_v2, %v3014_v2  ;;  %v3902_v49 = vpop.f32.mrb[30].mxu1 }
 0x3df   :  { %v3168_v28 = vadd.f32 %v3167_v61, %v3166_v56  ;;  %2888 = vst.msk [vmem:[%s6808_s3 + $0xf8] sm:$0xff] %vm87_vm0, %v3902_v49  ;;  %v3017_v12 = vsub.f32 %v3902_v49, %v3996_v22  ;;  %v2688_v37 = vpop.f32.mrb[31].mxu1  ;;  %v3171_v60 = vsel %vm87_vm0, %v3079_v31, 0.0  ;;  %v4006_v31 = vld [vmem:[%s6805_s0 + $0x148] sm:$0xff]  ;;  %v4007_v22 = vld [vmem:[%s6805_s0 + $0x140] sm:$0xff] }
 0x3e0   :  { %v3169_v36 = vsel %vm87_vm0, %v3078_v19, 0.0  ;;  %2887 = vst.msk [vmem:[%s6808_s3 + $0xf0] sm:$0xff] %vm87_vm0, %v2688_v37  ;;  %v3016_v30 = vsub.f32 %v2688_v37, %v3997_v51 }
 0x3e1   :  { %v3170_v5 = vadd.f32 %v3169_v36, %v3168_v28  ;;  %v3081_v35 = vmul.f32 %v3017_v12, %v3017_v12 }
 0x3e2   :  { %v3080_v4 = vmul.f32 %v3016_v30, %v3016_v30  ;;  %v3905_v9 = vpop.f32.mrb[32].mxu1 }
 0x3e3   :  { %v3172_v20 = vadd.f32 %v3171_v60, %v3170_v5  ;;  %2890 = vst.msk [vmem:[%s6808_s3 + $0x108] sm:$0xff] %vm87_vm0, %v3905_v9  ;;  %v3019_v44 = vsub.f32 %v3905_v9, %v3998_v10  ;;  %v2698_v15 = vpop.f32.mrb[33].mxu1  ;;  %v3175_v54 = vsel %vm87_vm0, %v3081_v35, 0.0  ;;  %v4008_v35 = vld [vmem:[%s6805_s0 + $0x158] sm:$0xff]  ;;  %v4009_v10 = vld [vmem:[%s6805_s0 + $0x150] sm:$0xff] }
 0x3e4   :  { %v3173_v14 = vsel %vm87_vm0, %v3080_v4, 0.0  ;;  %2889 = vst.msk [vmem:[%s6808_s3 + $0x100] sm:$0xff] %vm87_vm0, %v2698_v15  ;;  %v3018_v47 = vsub.f32 %v2698_v15, %v3999_v33 }
 0x3e5   :  { %v3174_v17 = vadd.f32 %v3173_v14, %v3172_v20  ;;  %v3083_v53 = vmul.f32 %v3019_v44, %v3019_v44 }
 0x3e6   :  { %v3082_v42 = vmul.f32 %v3018_v47, %v3018_v47  ;;  %v3908_v6 = vpop.f32.mrb[34].mxu1 }
 0x3e7   :  { %v3176_v23 = vadd.f32 %v3175_v54, %v3174_v17  ;;  %2892 = vst.msk [vmem:[%s6808_s3 + $0x118] sm:$0xff] %vm87_vm0, %v3908_v6  ;;  %v3021_v45 = vsub.f32 %v3908_v6, %v4000_v16  ;;  %v2708_v29 = vpop.f32.mrb[35].mxu1  ;;  %v3179_v11 = vsel %vm87_vm0, %v3083_v53, 0.0  ;;  %v4010_v53 = vld [vmem:[%s6805_s0 + $0x168] sm:$0xff]  ;;  %v4011_v16 = vld [vmem:[%s6805_s0 + $0x160] sm:$0xff] }
 0x3e8   :  { %v3177_v27 = vsel %vm87_vm0, %v3082_v42, 0.0  ;;  %2891 = vst.msk [vmem:[%s6808_s3 + $0x110] sm:$0xff] %vm87_vm0, %v2708_v29  ;;  %v3020_v63 = vsub.f32 %v2708_v29, %v4001_v40 }
 0x3e9   :  { %v3178_v0 = vadd.f32 %v3177_v27, %v3176_v23  ;;  %v3085_v24 = vmul.f32 %v3021_v45, %v3021_v45 }
 0x3ea   :  { %v3084_v13 = vmul.f32 %v3020_v63, %v3020_v63  ;;  %v3911_v58 = vpop.f32.mrb[36].mxu1 }
 0x3eb   :  { %v3180_v41 = vadd.f32 %v3179_v11, %v3178_v0  ;;  %2894 = vst.msk [vmem:[%s6808_s3 + $0x128] sm:$0xff] %vm87_vm0, %v3911_v58  ;;  %v3023_v43 = vsub.f32 %v3911_v58, %v4002_v59  ;;  %v2718_v50 = vpop.f32.mrb[37].mxu1  ;;  %v3183_v48 = vsel %vm87_vm0, %v3085_v24, 0.0  ;;  %v4012_v24 = vld [vmem:[%s6805_s0 + $0x178] sm:$0xff]  ;;  %v4013_v59 = vld [vmem:[%s6805_s0 + $0x170] sm:$0xff] }
 0x3ec   :  { %v3181_v57 = vsel %vm87_vm0, %v3084_v13, 0.0  ;;  %2893 = vst.msk [vmem:[%s6808_s3 + $0x120] sm:$0xff] %vm87_vm0, %v2718_v50  ;;  %v3022_v39 = vsub.f32 %v2718_v50, %v4003_v32 }
 0x3ed   :  { %v3182_v46 = vadd.f32 %v3181_v57, %v3180_v41  ;;  %v3087_v34 = vmul.f32 %v3023_v43, %v3023_v43 }
 0x3ee   :  { %v3086_v21 = vmul.f32 %v3022_v39, %v3022_v39  ;;  %v3914_v26 = vpop.f32.mrb[38].mxu1 }
 0x3ef   :  { %v3184_v25 = vadd.f32 %v3183_v48, %v3182_v46  ;;  %2896 = vst.msk [vmem:[%s6808_s3 + $0x138] sm:$0xff] %vm87_vm0, %v3914_v26  ;;  %v3025_v38 = vsub.f32 %v3914_v26, %v4004_v18  ;;  %v2728_v3 = vpop.f32.mrb[39].mxu1  ;;  %v3187_v1 = vsel %vm87_vm0, %v3087_v34, 0.0  ;;  %v4014_v34 = vld [vmem:[%s6805_s0 + $0x188] sm:$0xff]  ;;  %v4015_v18 = vld [vmem:[%s6805_s0 + $0x180] sm:$0xff] }
 0x3f0   :  { %v3185_v55 = vsel %vm87_vm0, %v3086_v21, 0.0  ;;  %2895 = vst.msk [vmem:[%s6808_s3 + $0x130] sm:$0xff] %vm87_vm0, %v2728_v3  ;;  %v3024_v7 = vsub.f32 %v2728_v3, %v4005_v8 }
 0x3f1   :  { %v3186_v62 = vadd.f32 %v3185_v55, %v3184_v25  ;;  %v3089_v52 = vmul.f32 %v3025_v38, %v3025_v38 }
 0x3f2   :  { %v3088_v2 = vmul.f32 %v3024_v7, %v3024_v7  ;;  %v3917_v56 = vpop.f32.mrb[40].mxu1 }
 0x3f3   :  { %v3188_v61 = vadd.f32 %v3187_v1, %v3186_v62  ;;  %2898 = vst.msk [vmem:[%s6808_s3 + $0x148] sm:$0xff] %vm87_vm0, %v3917_v56  ;;  %v3027_v19 = vsub.f32 %v3917_v56, %v4006_v31  ;;  %v2738_v49 = vpop.f32.mrb[41].mxu1  ;;  %v3191_v36 = vsel %vm87_vm0, %v3089_v52, 0.0  ;;  %v4016_v52 = vld [vmem:[%s6805_s0 + $0x198] sm:$0xff]  ;;  %v4017_v31 = vld [vmem:[%s6805_s0 + $0x190] sm:$0xff] }
 0x3f4   :  { %v3189_v28 = vsel %vm87_vm0, %v3088_v2, 0.0  ;;  %2897 = vst.msk [vmem:[%s6808_s3 + $0x140] sm:$0xff] %vm87_vm0, %v2738_v49  ;;  %v3026_v12 = vsub.f32 %v2738_v49, %v4007_v22 }
 0x3f5   :  { %v3190_v37 = vadd.f32 %v3189_v28, %v3188_v61  ;;  %v3091_v51 = vmul.f32 %v3027_v19, %v3027_v19 }
 0x3f6   :  { %v3090_v30 = vmul.f32 %v3026_v12, %v3026_v12  ;;  %v3920_v5 = vpop.f32.mrb[42].mxu1 }
 0x3f7   :  { %v3192_v60 = vadd.f32 %v3191_v36, %v3190_v37  ;;  %2900 = vst.msk [vmem:[%s6808_s3 + $0x158] sm:$0xff] %vm87_vm0, %v3920_v5  ;;  %v3029_v4 = vsub.f32 %v3920_v5, %v4008_v35  ;;  %v2748_v9 = vpop.f32.mrb[43].mxu1  ;;  %v3195_v14 = vsel %vm87_vm0, %v3091_v51, 0.0  ;;  %v4018_v51 = vld [vmem:[%s6805_s0 + $0x1a8] sm:$0xff]  ;;  %v4019_v35 = vld [vmem:[%s6805_s0 + $0x1a0] sm:$0xff] }
 0x3f8   :  { %v3193_v20 = vsel %vm87_vm0, %v3090_v30, 0.0  ;;  %2899 = vst.msk [vmem:[%s6808_s3 + $0x150] sm:$0xff] %vm87_vm0, %v2748_v9  ;;  %v3028_v44 = vsub.f32 %v2748_v9, %v4009_v10 }
 0x3f9   :  { %v3194_v15 = vadd.f32 %v3193_v20, %v3192_v60  ;;  %v3093_v33 = vmul.f32 %v3029_v4, %v3029_v4 }
 0x3fa   :  { %v3092_v47 = vmul.f32 %v3028_v44, %v3028_v44  ;;  %v3923_v17 = vpop.f32.mrb[44].mxu1 }
 0x3fb   :  { %v3196_v54 = vadd.f32 %v3195_v14, %v3194_v15  ;;  %2902 = vst.msk [vmem:[%s6808_s3 + $0x168] sm:$0xff] %vm87_vm0, %v3923_v17  ;;  %v3031_v42 = vsub.f32 %v3923_v17, %v4010_v53  ;;  %v2758_v6 = vpop.f32.mrb[45].mxu1  ;;  %v3199_v27 = vsel %vm87_vm0, %v3093_v33, 0.0  ;;  %v4020_v33 = vld [vmem:[%s6805_s0 + $0x1b8] sm:$0xff]  ;;  %v4021_v53 = vld [vmem:[%s6805_s0 + $0x1b0] sm:$0xff] }
 0x3fc   :  { %v3197_v23 = vsel %vm87_vm0, %v3092_v47, 0.0  ;;  %2901 = vst.msk [vmem:[%s6808_s3 + $0x160] sm:$0xff] %vm87_vm0, %v2758_v6  ;;  %v3030_v45 = vsub.f32 %v2758_v6, %v4011_v16 }
 0x3fd   :  { %v3198_v29 = vadd.f32 %v3197_v23, %v3196_v54  ;;  %v3095_v40 = vmul.f32 %v3031_v42, %v3031_v42 }
 0x3fe   :  { %v3094_v63 = vmul.f32 %v3030_v45, %v3030_v45  ;;  %v3926_v0 = vpop.f32.mrb[46].mxu1 }
 0x3ff   :  { %v3200_v11 = vadd.f32 %v3199_v27, %v3198_v29  ;;  %2904 = vst.msk [vmem:[%s6808_s3 + $0x178] sm:$0xff] %vm87_vm0, %v3926_v0  ;;  %v3033_v13 = vsub.f32 %v3926_v0, %v4012_v24  ;;  %v2768_v58 = vpop.f32.mrb[47].mxu1  ;;  %v3203_v57 = vsel %vm87_vm0, %v3095_v40, 0.0  ;;  %v4022_v40 = vld [vmem:[%s6805_s0 + $0x1c8] sm:$0xff]  ;;  %v4023_v24 = vld [vmem:[%s6805_s0 + $0x1c0] sm:$0xff] }
 0x400   :  { %v3201_v41 = vsel %vm87_vm0, %v3094_v63, 0.0  ;;  %2903 = vst.msk [vmem:[%s6808_s3 + $0x170] sm:$0xff] %vm87_vm0, %v2768_v58  ;;  %v3032_v43 = vsub.f32 %v2768_v58, %v4013_v59 }
 0x401   :  { %v3202_v50 = vadd.f32 %v3201_v41, %v3200_v11  ;;  %v3097_v32 = vmul.f32 %v3033_v13, %v3033_v13 }
 0x402   :  { %v3096_v39 = vmul.f32 %v3032_v43, %v3032_v43  ;;  %v3929_v46 = vpop.f32.mrb[48].mxu1 }
 0x403   :  { %v3204_v48 = vadd.f32 %v3203_v57, %v3202_v50  ;;  %2906 = vst.msk [vmem:[%s6808_s3 + $0x188] sm:$0xff] %vm87_vm0, %v3929_v46  ;;  %v3035_v21 = vsub.f32 %v3929_v46, %v4014_v34  ;;  %v2778_v26 = vpop.f32.mrb[49].mxu1  ;;  %v3207_v55 = vsel %vm87_vm0, %v3097_v32, 0.0  ;;  %v4024_v32 = vld [vmem:[%s6805_s0 + $0x1d8] sm:$0xff]  ;;  %v4025_v34 = vld [vmem:[%s6805_s0 + $0x1d0] sm:$0xff] }
 0x404   :  { %v3205_v25 = vsel %vm87_vm0, %v3096_v39, 0.0  ;;  %2905 = vst.msk [vmem:[%s6808_s3 + $0x180] sm:$0xff] %vm87_vm0, %v2778_v26  ;;  %v3034_v38 = vsub.f32 %v2778_v26, %v4015_v18 }
 0x405   :  { %v3206_v3 = vadd.f32 %v3205_v25, %v3204_v48  ;;  %v3099_v8 = vmul.f32 %v3035_v21, %v3035_v21 }
 0x406   :  { %v3098_v7 = vmul.f32 %v3034_v38, %v3034_v38  ;;  %v3932_v62 = vpop.f32.mrb[50].mxu1 }
 0x407   :  { %v3208_v1 = vadd.f32 %v3207_v55, %v3206_v3  ;;  %2908 = vst.msk [vmem:[%s6808_s3 + $0x198] sm:$0xff] %vm87_vm0, %v3932_v62  ;;  %v3037_v2 = vsub.f32 %v3932_v62, %v4016_v52  ;;  %v2788_v56 = vpop.f32.mrb[51].mxu1  ;;  %v3211_v28 = vsel %vm87_vm0, %v3099_v8, 0.0  ;;  %v4026_v8 = vld [vmem:[%s6805_s0 + $0x1e8] sm:$0xff]  ;;  %v4027_v52 = vld [vmem:[%s6805_s0 + $0x1e0] sm:$0xff] }
 0x408   :  { %v3209_v61 = vsel %vm87_vm0, %v3098_v7, 0.0  ;;  %2907 = vst.msk [vmem:[%s6808_s3 + $0x190] sm:$0xff] %vm87_vm0, %v2788_v56  ;;  %v3036_v19 = vsub.f32 %v2788_v56, %v4017_v31 }
 0x409   :  { %v3210_v49 = vadd.f32 %v3209_v61, %v3208_v1  ;;  %v3101_v22 = vmul.f32 %v3037_v2, %v3037_v2 }
 0x40a   :  { %v3100_v12 = vmul.f32 %v3036_v19, %v3036_v19  ;;  %v3935_v37 = vpop.f32.mrb[52].mxu1 }
 0x40b   :  { %v3212_v36 = vadd.f32 %v3211_v28, %v3210_v49  ;;  %2910 = vst.msk [vmem:[%s6808_s3 + $0x1a8] sm:$0xff] %vm87_vm0, %v3935_v37  ;;  %v3039_v30 = vsub.f32 %v3935_v37, %v4018_v51  ;;  %v2798_v5 = vpop.f32.mrb[53].mxu1  ;;  %v3215_v20 = vsel %vm87_vm0, %v3101_v22, 0.0 }
 0x40c   :  { %v3213_v60 = vsel %vm87_vm0, %v3100_v12, 0.0  ;;  %2909 = vst.msk [vmem:[%s6808_s3 + $0x1a0] sm:$0xff] %vm87_vm0, %v2798_v5  ;;  %v3038_v4 = vsub.f32 %v2798_v5, %v4019_v35 }
 0x40d   :  { %v3214_v9 = vadd.f32 %v3213_v60, %v3212_v36  ;;  %v3103_v10 = vmul.f32 %v3039_v30, %v3039_v30  ;;  %v4028_v36 = vld [vmem:[%s6805_s0 + $0x1f8] sm:$0xff]  ;;  %v4029_v60 = vld [vmem:[%s6805_s0 + $0x1f0] sm:$0xff] }
 0x40e   :  { %v3102_v44 = vmul.f32 %v3038_v4, %v3038_v4  ;;  %v3938_v15 = vpop.f32.mrb[54].mxu1 }
 0x40f   :  { %v3216_v14 = vadd.f32 %v3215_v20, %v3214_v9  ;;  %2912 = vst.msk [vmem:[%s6808_s3 + $0x1b8] sm:$0xff] %vm87_vm0, %v3938_v15  ;;  %v3041_v47 = vsub.f32 %v3938_v15, %v4020_v33  ;;  %v2808_v17 = vpop.f32.mrb[55].mxu1  ;;  %v3219_v23 = vsel %vm87_vm0, %v3103_v10, 0.0 }
 0x410   :  { %v3217_v54 = vsel %vm87_vm0, %v3102_v44, 0.0  ;;  %2911 = vst.msk [vmem:[%s6808_s3 + $0x1b0] sm:$0xff] %vm87_vm0, %v2808_v17  ;;  %v3040_v42 = vsub.f32 %v2808_v17, %v4021_v53 }
 0x411   :  { %v3218_v6 = vadd.f32 %v3217_v54, %v3216_v14  ;;  %v3105_v16 = vmul.f32 %v3041_v47, %v3041_v47 }
 0x412   :  { %v3104_v45 = vmul.f32 %v3040_v42, %v3040_v42  ;;  %v3941_v29 = vpop.f32.mrb[56].mxu1 }
 0x413   :  { %v3220_v27 = vadd.f32 %v3219_v23, %v3218_v6  ;;  %2914 = vst.msk [vmem:[%s6808_s3 + $0x1c8] sm:$0xff] %vm87_vm0, %v3941_v29  ;;  %v3043_v63 = vsub.f32 %v3941_v29, %v4022_v40  ;;  %v2818_v0 = vpop.f32.mrb[57].mxu1  ;;  %v3223_v41 = vsel %vm87_vm0, %v3105_v16, 0.0 }
 0x414   :  { %v3221_v11 = vsel %vm87_vm0, %v3104_v45, 0.0  ;;  %2913 = vst.msk [vmem:[%s6808_s3 + $0x1c0] sm:$0xff] %vm87_vm0, %v2818_v0  ;;  %v3042_v13 = vsub.f32 %v2818_v0, %v4023_v24 }
 0x415   :  { %v3222_v58 = vadd.f32 %v3221_v11, %v3220_v27  ;;  %v3107_v59 = vmul.f32 %v3043_v63, %v3043_v63 }
 0x416   :  { %v3106_v43 = vmul.f32 %v3042_v13, %v3042_v13  ;;  %v3944_v50 = vpop.f32.mrb[58].mxu1 }
 0x417   :  { %v3224_v57 = vadd.f32 %v3223_v41, %v3222_v58  ;;  %2916 = vst.msk [vmem:[%s6808_s3 + $0x1d8] sm:$0xff] %vm87_vm0, %v3944_v50  ;;  %v3045_v39 = vsub.f32 %v3944_v50, %v4024_v32  ;;  %v2828_v46 = vpop.f32.mrb[59].mxu1  ;;  %v3227_v25 = vsel %vm87_vm0, %v3107_v59, 0.0 }
 0x418   :  { %v3225_v48 = vsel %vm87_vm0, %v3106_v43, 0.0  ;;  %2915 = vst.msk [vmem:[%s6808_s3 + $0x1d0] sm:$0xff] %vm87_vm0, %v2828_v46  ;;  %v3044_v21 = vsub.f32 %v2828_v46, %v4025_v34 }
 0x419   :  { %v3226_v26 = vadd.f32 %v3225_v48, %v3224_v57  ;;  %v3109_v18 = vmul.f32 %v3045_v39, %v3045_v39 }
 0x41a   :  { %v3108_v38 = vmul.f32 %v3044_v21, %v3044_v21  ;;  %v3947_v3 = vpop.f32.mrb[60].mxu1 }
 0x41b   :  { %v3228_v55 = vadd.f32 %v3227_v25, %v3226_v26  ;;  %2918 = vst.msk [vmem:[%s6808_s3 + $0x1e8] sm:$0xff] %vm87_vm0, %v3947_v3  ;;  %v3047_v7 = vsub.f32 %v3947_v3, %v4026_v8  ;;  %v2838_v62 = vpop.f32.mrb[61].mxu1  ;;  %v3231_v61 = vsel %vm87_vm0, %v3109_v18, 0.0 }
 0x41c   :  { %v3229_v1 = vsel %vm87_vm0, %v3108_v38, 0.0  ;;  %2917 = vst.msk [vmem:[%s6808_s3 + $0x1e0] sm:$0xff] %vm87_vm0, %v2838_v62  ;;  %v3046_v2 = vsub.f32 %v2838_v62, %v4027_v52 }
 0x41d   :  { %v3230_v56 = vadd.f32 %v3229_v1, %v3228_v55  ;;  %v3111_v31 = vmul.f32 %v3047_v7, %v3047_v7 }
 0x41e   :  { %v3110_v19 = vmul.f32 %v3046_v2, %v3046_v2 }
 0x41f   :  { %v3232_v49 = vadd.f32 %v3231_v61, %v3230_v56  ;;  %v3235_v12 = vsel %vm87_vm0, %v3111_v31, 0.0 }
 0x420   :  { %v3233_v28 = vsel %vm87_vm0, %v3110_v19, 0.0 }
 0x421   :  { %v3234_v22 = vadd.f32 %v3233_v28, %v3232_v49 }
 0x422   :  { %v3950_v37 = vpop.f32.mrb[62].mxu1 }
 0x423   :  { %2920 = vst.msk [vmem:[%s6808_s3 + $0x1f8] sm:$0xff] %vm87_vm0, %v3950_v37  ;;  %v3049_v51 = vsub.f32 %v3950_v37, %v4028_v36  ;;  %v2848_v30 = vpop.f32.mrb[63].mxu1  ;;  %v3236_v5 = vadd.f32 %v3235_v12, %v3234_v22 }
 0x424   :  { %2919 = vst.msk [vmem:[%s6808_s3 + $0x1f0] sm:$0xff] %vm87_vm0, %v2848_v30  ;;  %v3048_v35 = vsub.f32 %v2848_v30, %v4029_v60  ;;  %s4034_s3 = scalar_lea.vmem %s3409_s15, 32 }
 0x425   :  { %v3113_v4 = vmul.f32 %v3049_v51, %v3049_v51  ;;  %p4036_p2 = scmp.lt.s32.totalorder %s4034_s3, %s4030_s16 }
 0x426   :  { %v3112_v9 = vmul.f32 %v3048_v35, %v3048_v35 }
 0x427   :  { %v3239_v44 = vsel %vm87_vm0, %v3113_v4, 0.0  ;;  %p4037_p3 = por %p4036_p2, %p4035_p1 }
 0x428   :  { %v3237_v20 = vsel %vm87_vm0, %v3112_v9, 0.0 }
 0x429   :  { %v3238_v10 = vadd.f32 %v3237_v20, %v3236_v5  ;;  %p4038_p4 = pnand %p4037_p3, %p4031_p0 }
 0x42b   :  { %v3240_v15 = vadd.f32 %v3239_v44, %v3238_v10 }
 0x42d   :  { %3241 = vadd.xlane.f32.xlu0 %v3240_v15 }
 0x42e   :  { %4041 = shalt.err (!%p4038_p4)
}
 0x42f   :  { %s4042_s18 = scalar_lea.hbm %s6811_s6, 16 }
 0x430   :  { %p4043_p5 = scmp.ne.s32.totalorder %s6811_s6, %s4042_s18  ;;  %p4046_p6 = scmp.lt.u32.totalorder %s4042_s18, %s6811_s6 }
 0x432   :  { %p4048_p7 = pnand %p4046_p6, %p4043_p5 }
 0x434   :  { %4051 = shalt.err (!%p4048_p7)
}
 0x435   :  { %3411 = dma.vmem_to_hbm [thread:$0]  %s3409_s15, 16, %s6811_s6, [#allocation5]   ;;  %vm3251_vm0 = vcmask 0  }
 0x436   :  { %s4080_s25 = smov [#allocation2]  }
 0x437   :  { %s3398_s26 = sshll.u32 %s4080_s25, 4  ;;  %s3399_s26 = int_to_ptr.vmem [resolvable:$true] %s3398_s26 }
 0x438   :  { %s4052_s4 = scalar_lea.vmem %s3399_s26, 16  ;;  %s4056_s28 = scalar_lea.vmem %s3399_s26, 32 }
 0x439   :  { %p4053_p8 = scmp.ne.s32.totalorder %s3399_s26, %s4052_s4  ;;  %p4057_p9 = scmp.lt.s32.totalorder %s3399_s26, %s3399_s26 }
 0x43a   :  { %p4058_p10 = scmp.lt.s32.totalorder %s4056_s28, %s4052_s4 }
 0x43c   :  { %p4059_p11 = por %p4058_p10, %p4057_p9 }
 0x43e   :  { %p4060_p12 = pnand %p4059_p11, %p4053_p8 }
 0x4ba   :  { %v3242_v14 = vpop.xlane.xlu0 %3241 }
 0x4bb   :  { %v3243_v33 = vrot.slane %v3242_v14, 4 }
 0x4bd   :  { %v3244_v47 = vadd.f32 %v3243_v33, %v3242_v14 }
 0x4bf   :  { %v3245_v17 = vrot.slane %v3244_v47, 2 }
 0x4c1   :  { %v3246_v54 = vadd.f32 %v3245_v17, %v3244_v47 }
 0x4c3   :  { %v3247_v53 = vrot.slane %v3246_v54, 1 }
 0x4c5   :  { %v3248_v42 = vadd.f32 %v3247_v53, %v3246_v54 }
 0x4c7   :  { %3961 = vpush %v3248_v42 }
 0x4f8   :  { %s3962_s27 = spop %3961 }
 0x4f9   :  { %v3250_v6 = vstv %s3962_s27 }
 0x4fa   :  { %3252 = vst.msk [vmem:[#allocation2] sm:$0x1] %vm3251_vm0, %v3250_v6 }
 0x4fb   :  { %4063 = shalt.err (!%p4060_p12)
}
 0x4fc   :  { %s4064_s2 = scalar_lea.hbm %s6810_s5, 16 }
 0x4fd   :  { %p4065_p13 = scmp.ne.s32.totalorder %s6810_s5, %s4064_s2  ;;  %p4068_p0 = scmp.lt.u32.totalorder %s4064_s2, %s6810_s5 }
 0x4ff   :  { %p4070_p1 = pnand %p4068_p0, %p4065_p13 }
 0x501   :  { %4073 = shalt.err (!%p4070_p1)
}
 0x502   :  { %3401 = dma.vmem_to_hbm [thread:$0]  %s3399_s26, 16, %s6810_s5, [#allocation3]  }
 0x503   :  { %4074 = dma.done.wait [#allocation3], 16  }
 0x504   :  { %4075 = vsyncadd [#allocation3], 4294967280 }
 0x505   :  { %4076 = dma.done.wait [#allocation5], 16  }
 0x506   :  { %4077 = vsyncadd [#allocation5], 4294967280 }
 0x507   :  { %3422 = vsyncpa [#allocation3], 1 }
 0x508   :  { %3423 = vsyncpa [#allocation5], 1 }

</bundles_post_ra>
